<compile_context>
chip_gen: v7x
topology: tpu7x:2x2x1
jax: 0.10.0
libtpu: 0.0.40
codegen_flags: <defaults>
</compile_context>

<pallas_src>
import functools

import jax
import jax.numpy as jnp
from jax.experimental import pallas as pl
from jax.experimental.pallas import tpu as pltpu


def _round_up(x, m):
    return ((x + m - 1) // m) * m


def _pick_tile(dim, unit, tmax):
    """Largest tile (multiple of `unit`, <= tmax) minimizing padding of `dim`."""
    r = _round_up(dim, unit)
    if r <= tmax:
        return r
    best_t, best_pad = unit, None
    t = unit
    while t <= tmax:
        pad = _round_up(dim, t) - dim
        if best_pad is None or pad < best_pad or (pad == best_pad and t > best_t):
            best_t, best_pad = t, pad
        t += unit
    return best_t


# --------------------------------------------------------------------------
# Pallas kernels
# --------------------------------------------------------------------------
def _matmul_fused_kernel(a_ref, b_ref, scale_ref, shift_ref, o_ref, *rest,
                         act, stats):
    """Tiled MXU matmul, fused per-column affine + activation epilogue, and
    (optionally) fused per-tile BN partial sums / sums-of-squares."""
    if stats:
        sum_ref, sq_ref, acc_ref = rest
    else:
        (acc_ref,) = rest

    @pl.when(pl.program_id(2) == 0)
    def _():
        acc_ref[...] = jnp.zeros_like(acc_ref)

    acc_ref[...] += jnp.dot(a_ref[...], b_ref[...],
                            preferred_element_type=jnp.float32)

    @pl.when(pl.program_id(2) == pl.num_programs(2) - 1)
    def _():
        acc = acc_ref[...]
        y = acc * scale_ref[...] + shift_ref[...]        # f32 epilogue math
        if act == "leaky_relu":
            y = jnp.where(y >= 0, y, 0.01 * y)           # nn.LeakyReLU default
        elif act == "tanh":
            y = jnp.tanh(y)
        o_ref[...] = y.astype(o_ref.dtype)
        if stats:
            # Per-(i,j)-tile partial stats of the raw (pre-affine) matmul output.
            sum_ref[...] = jnp.zeros_like(sum_ref)
            sq_ref[...] = jnp.zeros_like(sq_ref)
            sum_ref[0:1, :] = jnp.sum(acc, axis=0, keepdims=True)
            sq_ref[0:1, :] = jnp.sum(acc * acc, axis=0, keepdims=True)


def matmul_fused(a, b, scale=None, shift=None, act="none",
                 out_dtype=jnp.bfloat16, stats=False,
                 tm_max=512, tk_max=512, tn_max=256):
    """(M,K)@(K,N): bf16 operands, f32 accumulation, fused affine/act epilogue.

    With stats=True also returns per-column (sum, sum_sq) of the raw matmul
    output over the M rows (padded rows are zero, so they do not perturb it).
    """
    M, K = a.shape
    K2, N = b.shape
    assert K == K2
    if scale is None:
        scale = jnp.ones((N,), jnp.float32)
    if shift is None:
        shift = jnp.zeros((N,), jnp.float32)

    tm = _pick_tile(M, 8, tm_max)
    tk = _pick_tile(K, 128, tk_max)
    tn = _pick_tile(N, 128, tn_max)
    Mp, Kp, Np = _round_up(M, tm), _round_up(K, tk), _round_up(N, tn)
    ni, nj, nk = Mp // tm, Np // tn, Kp // tk

    a_p = jnp.pad(a.astype(jnp.bfloat16), ((0, Mp - M), (0, Kp - K)))
    b_p = jnp.pad(b.astype(jnp.bfloat16), ((0, Kp - K), (0, Np - N)))
    sc_p = jnp.pad(scale.astype(jnp.float32).reshape(1, N), ((0, 0), (0, Np - N)))
    sh_p = jnp.pad(shift.astype(jnp.float32).reshape(1, N), ((0, 0), (0, Np - N)))

    if stats:
        out_shape = (jax.ShapeDtypeStruct((Mp, Np), out_dtype),
                     jax.ShapeDtypeStruct((ni * 8, Np), jnp.float32),
                     jax.ShapeDtypeStruct((ni * 8, Np), jnp.float32))
        out_specs = (pl.BlockSpec((tm, tn), lambda i, j, k: (i, j)),
                     pl.BlockSpec((8, tn), lambda i, j, k: (i, j)),
                     pl.BlockSpec((8, tn), lambda i, j, k: (i, j)))
    else:
        out_shape = jax.ShapeDtypeStruct((Mp, Np), out_dtype)
        out_specs = pl.BlockSpec((tm, tn), lambda i, j, k: (i, j))

    # Double-buffered VMEM footprint (A/B bf16 in, out, acc, scale/shift, stats).
    out_itemsize = jnp.dtype(out_dtype).itemsize
    footprint = (2 * (tm * tk + tk * tn) * 2 + 2 * tm * tn * out_itemsize
                 + tm * tn * 4 + 2 * 2 * tn * 4
                 + (2 * 2 * 8 * tn * 4 if stats else 0))
    vmem_limit = max(32 * 1024 * 1024, min(2 * footprint, 64 * 1024 * 1024))

    res = pl.pallas_call(
        functools.partial(_matmul_fused_kernel, act=act, stats=stats),
        out_shape=out_shape,
        grid_spec=pltpu.PrefetchScalarGridSpec(
            num_scalar_prefetch=0,
            grid=(ni, nj, nk),
            in_specs=[pl.BlockSpec((tm, tk), lambda i, j, k: (i, k)),
                      pl.BlockSpec((tk, tn), lambda i, j, k: (k, j)),
                      pl.BlockSpec((1, tn), lambda i, j, k: (0, j)),
                      pl.BlockSpec((1, tn), lambda i, j, k: (0, j))],
            out_specs=out_specs,
            scratch_shapes=[pltpu.VMEM((tm, tn), jnp.float32)]),
        compiler_params=pltpu.CompilerParams(
            dimension_semantics=("parallel", "parallel", "arbitrary"),
            vmem_limit_bytes=vmem_limit),
    )(a_p, b_p, sc_p, sh_p)

    if stats:
        out, ssum, ssq = res
        return out[:M, :N], ssum.sum(axis=0)[:N], ssq.sum(axis=0)[:N]
    return res[:M, :N]


def _affine_act_kernel(x_ref, scale_ref, shift_ref, o_ref, *, act):
    y = x_ref[...].astype(jnp.float32) * scale_ref[...] + shift_ref[...]
    if act == "leaky_relu":
        y = jnp.where(y >= 0, y, 0.01 * y)
    elif act == "tanh":
        y = jnp.tanh(y)
    o_ref[...] = y.astype(o_ref.dtype)


def affine_act(x2d, scale, shift, act="none", out_dtype=jnp.bfloat16, tr_max=1024):
    """Row-tiled per-column affine + activation (pipelined, bf16 in/out)."""
    R, C = x2d.shape
    tr = _pick_tile(R, 8, tr_max)
    Rp = _round_up(R, tr)
    x_p = jnp.pad(x2d, ((0, Rp - R), (0, 0)))
    out = pl.pallas_call(
        functools.partial(_affine_act_kernel, act=act),
        out_shape=jax.ShapeDtypeStruct((Rp, C), out_dtype),
        grid=(Rp // tr,),
        in_specs=[pl.BlockSpec((tr, C), lambda i: (i, 0)),
                  pl.BlockSpec((1, C), lambda i: (0, 0)),
                  pl.BlockSpec((1, C), lambda i: (0, 0))],
        out_specs=pl.BlockSpec((tr, C), lambda i: (i, 0)),
        compiler_params=pltpu.CompilerParams(
            dimension_semantics=("parallel",)),
    )(x_p, scale.reshape(1, C).astype(jnp.float32),
      shift.reshape(1, C).astype(jnp.float32))
    return out[:R, :]


# --------------------------------------------------------------------------
# Conv3d / ConvTranspose3d via im2col + fused Pallas matmul
# --------------------------------------------------------------------------
def im2col_3d(x, ksize, stride, pad_lo, pad_hi):
    # x: (B, D, H, W, C) -> cols (B*Do*Ho*Wo, kd*kh*kw*C), tap-major / ch-minor.
    # TODO(synk): the patch buffer is still staged through HBM; an in-kernel
    # tap gather (tap grid axis with shifted-window DMAs) would remove it.
    B, D, H, W, C = x.shape
    kd, kh, kw = ksize
    sd, sh, sw = stride
    Do = (D + pad_lo[0] + pad_hi[0] - kd) // sd + 1
    Ho = (H + pad_lo[1] + pad_hi[1] - kh) // sh + 1
    Wo = (W + pad_lo[2] + pad_hi[2] - kw) // sw + 1
    xp = jnp.pad(x, ((0, 0), (pad_lo[0], pad_hi[0]), (pad_lo[1], pad_hi[1]),
                     (pad_lo[2], pad_hi[2]), (0, 0)))
    cols = []
    for a in range(kd):
        for b in range(kh):
            for c in range(kw):
                cols.append(xp[:,
                               a:a + (Do - 1) * sd + 1:sd,
                               b:b + (Ho - 1) * sh + 1:sh,
                               c:c + (Wo - 1) * sw + 1:sw, :])
    cols = jnp.stack(cols, axis=4)                       # (B,Do,Ho,Wo,taps,C)
    return cols.reshape(B * Do * Ho * Wo, kd * kh * kw * C), (B, Do, Ho, Wo)


def conv3d(x, w, stride=(1, 1, 1), pad_lo=(1, 1, 1), pad_hi=None, bias=None,
           act="none", out_dtype=jnp.bfloat16, stats=False):
    # w layout: (kd, kh, kw, Cin, Cout); asymmetric padding supported.
    if pad_hi is None:
        pad_hi = pad_lo
    kd, kh, kw = w.shape[:3]
    cols, (B, Do, Ho, Wo) = im2col_3d(x.astype(jnp.bfloat16), (kd, kh, kw),
                                      stride, pad_lo, pad_hi)
    Cout = w.shape[-1]
    res = matmul_fused(cols, w.reshape(-1, Cout), shift=bias, act=act,
                       out_dtype=out_dtype, stats=stats)
    if stats:
        y, s, q = res
        return y.reshape(B, Do, Ho, Wo, Cout), s, q
    return res.reshape(B, Do, Ho, Wo, Cout)


def conv_transpose3d_s122(x, wf, out_dtype=jnp.bfloat16, stats=False):
    """ConvTranspose3d(k=3, stride=(1,2,2), padding=(1,1,1), out_padding=(0,1,1))
    via sub-pixel phase decomposition: 4 small stride-1 convs over the
    un-dilated input, interleaved. No zero-stuffed buffer, ~4x fewer MACs.

    wf: equivalent forward-conv kernel (spatially flipped, channel-swapped),
        layout (3, 3, 3, Cin, Cout). BN stats (if requested) are summed over
        the 4 phases, which together cover every output position exactly once.
    """
    B, D, H, W, C = x.shape
    Cout = wf.shape[-1]
    # Output even phase uses the center tap; odd phase uses taps {0, 2} at
    # window offsets {0, +1} (one-sided high pad), independently per H and W.
    k_ee = wf[:, 1:2, 1:2]       # (3,1,1)
    k_eo = wf[:, 1:2, 0::2]      # (3,1,2)
    k_oe = wf[:, 0::2, 1:2]      # (3,2,1)
    k_oo = wf[:, 0::2, 0::2]     # (3,2,2)

    def phase(kern, ph_hi, pw_hi):
        return conv3d(x, kern, stride=(1, 1, 1), pad_lo=(1, 0, 0),
                      pad_hi=(1, ph_hi, pw_hi), out_dtype=out_dtype, stats=stats)

    r_ee = phase(k_ee, 0, 0)
    r_eo = phase(k_eo, 0, 1)
    r_oe = phase(k_oe, 1, 0)
    r_oo = phase(k_oo, 1, 1)
    if stats:
        (ee, s0, q0), (eo, s1, q1), (oe, s2, q2), (oo, s3, q3) = r_ee, r_eo, r_oe, r_oo
    else:
        ee, eo, oe, oo = r_ee, r_eo, r_oe, r_oo

    y = jnp.stack([jnp.stack([ee, eo], axis=4),
                   jnp.stack([oe, oo], axis=4)], axis=3)  # (B,D,H,2,W,2,Cout)
    y = y.reshape(B, D, 2 * H, 2 * W, Cout)
    if stats:
        return y, s0 + s1 + s2 + s3, q0 + q1 + q2 + q3
    return y


def _lane_fold_factor(R, C):
    """Fold rows into the lane axis so the elementwise kernels see >=128 lanes."""
    if C >= 128 or 128 % C != 0:
        return 1
    g = 128 // C
    while g > 1 and R % g != 0:
        g //= 2
    return g


def bn_leaky_relu(y, ssum, ssq, gamma, beta, eps=1e-5):
    # Training-mode BatchNorm3d over (N,D,H,W) per channel, then LeakyReLU(0.01).
    # (sum, sum_sq) come fused out of the conv matmul epilogue -> no extra HBM
    # read of y for statistics. The preceding conv bias shifts the batch mean
    # by the same constant and cancels exactly in training-mode BN, so it is
    # not applied upstream.
    B, D, H, W, C = y.shape
    R = B * D * H * W
    mean = ssum / R
    var = jnp.maximum(ssq / R - mean * mean, 0.0)     # biased (training) variance
    scale = gamma / jnp.sqrt(var + eps)
    shift = beta - scale * mean
    y2d = y.reshape(R, C)
    g = _lane_fold_factor(R, C)
    yf = y2d.reshape(R // g, g * C)                   # lane-dense view
    out = affine_act(yf, jnp.tile(scale, g), jnp.tile(shift, g),
                     act="leaky_relu", out_dtype=jnp.bfloat16)
    return out.reshape(B, D, H, W, C)


# --------------------------------------------------------------------------
# Parameter init (deterministic, shapes follow VAE.__init__)
# --------------------------------------------------------------------------
def init_params(key, in_channels, out_channels, latent_dim, hidden_dims,
                coils, spatial):
    params = {}

    def nrm(shape, scale=0.05):
        nonlocal key
        key, sub = jax.random.split(key)
        return scale * jax.random.normal(sub, shape, dtype=jnp.float32)

    c_in = in_channels
    for i, h in enumerate(hidden_dims):
        params[f"enc{i}_w"] = nrm((3, 3, 3, c_in, h))
        # Conv/ConvT biases feeding training-mode BN cancel exactly -> omitted.
        params[f"enc{i}_gamma"] = jnp.ones((h,), jnp.float32)
        params[f"enc{i}_beta"] = jnp.zeros((h,), jnp.float32)
        c_in = h

    hf = spatial // (2 ** len(hidden_dims))
    conv_out = hidden_dims[-1] * coils * hf * hf
    # mu / log_var projections fused into one pre-transposed head weight.
    params["W_head"] = nrm((conv_out, 2 * latent_dim))
    params["b_head"] = nrm((2 * latent_dim,))
    params["W_dec_t"] = nrm((latent_dim, conv_out))   # decoder_input, pre-transposed
    params["b_dec"] = nrm((conv_out,))

    hid_r = hidden_dims[::-1]
    for i in range(len(hid_r) - 1):
        # Stored directly as the flipped / channel-swapped forward-conv kernel.
        params[f"dec{i}_wf"] = nrm((3, 3, 3, hid_r[i], hid_r[i + 1]))
        params[f"dec{i}_gamma"] = jnp.ones((hid_r[i + 1],), jnp.float32)
        params[f"dec{i}_beta"] = jnp.zeros((hid_r[i + 1],), jnp.float32)

    params["fin_wf"] = nrm((3, 3, 3, hid_r[-1], hid_r[-1]))
    params["fin_gamma"] = jnp.ones((hid_r[-1],), jnp.float32)
    params["fin_beta"] = jnp.zeros((hid_r[-1],), jnp.float32)
    params["fin_conv_w"] = nrm((3, 3, 3, hid_r[-1], out_channels))
    params["fin_conv_b"] = nrm((out_channels,))
    return params, conv_out, hf


# --------------------------------------------------------------------------
# VAE forward
# --------------------------------------------------------------------------
def vae_forward(params, x_ncdhw, eps_noise, *, hidden_dims, latent_dim,
                coils, spatial, out_channels, conv_out, hf):
    B = x_ncdhw.shape[0]
    x = jnp.transpose(x_ncdhw, (0, 2, 3, 4, 1))        # NDHWC

    # ---- encode ----
    h = x
    for i in range(len(hidden_dims)):
        y, s, q = conv3d(h, params[f"enc{i}_w"], stride=(1, 2, 2),
                         pad_lo=(1, 1, 1), stats=True)
        h = bn_leaky_relu(y, s, q, params[f"enc{i}_gamma"], params[f"enc{i}_beta"])
    # torch.flatten(x, start_dim=1) on an NCDHW tensor -> (C,D,H,W) ordering
    flat = jnp.transpose(h, (0, 4, 1, 2, 3)).reshape(B, -1)
    head = matmul_fused(flat, params["W_head"], shift=params["b_head"],
                        out_dtype=jnp.float32)          # fused mu|log_var
    mu = head[:, :latent_dim]
    log_var = head[:, latent_dim:]

    # ---- reparameterize ----
    std = jnp.exp(0.5 * log_var)
    z = eps_noise * std + mu

    # ---- decode ----
    hid_r = hidden_dims[::-1]
    d = matmul_fused(z, params["W_dec_t"], shift=params["b_dec"],
                     out_dtype=jnp.bfloat16)
    d = d.reshape(B, hid_r[0], coils, hf, hf)           # NCDHW view (as in PyTorch)
    h = jnp.transpose(d, (0, 2, 3, 4, 1))               # -> NDHWC
    for i in range(len(hid_r) - 1):
        y, s, q = conv_transpose3d_s122(h, params[f"dec{i}_wf"], stats=True)
        h = bn_leaky_relu(y, s, q, params[f"dec{i}_gamma"], params[f"dec{i}_beta"])

    # final layer: ConvTranspose3d -> BN -> LeakyReLU -> Conv3d (+bias, tanh fused)
    y, s, q = conv_transpose3d_s122(h, params["fin_wf"], stats=True)
    h = bn_leaky_relu(y, s, q, params["fin_gamma"], params["fin_beta"])
    recon = conv3d(h, params["fin_conv_w"], stride=(1, 1, 1), pad_lo=(1, 1, 1),
                   bias=params["fin_conv_b"], act="tanh", out_dtype=jnp.float32)
    recon_ncdhw = jnp.transpose(recon, (0, 4, 1, 2, 3))
    return [recon_ncdhw, x_ncdhw, mu, log_var]


# --------------------------------------------------------------------------
if __name__ == "__main__":
    # Small, consistent configuration (original: hidden=[32..512], 320x320, coils).
    B = 2
    in_channels = 2          # "channels" axis (real/imag k-space)
    out_channels = 2
    coils = 2                # depth axis D
    spatial = 16             # H = W
    latent_dim = 8
    hidden_dims = [8, 16]    # 2 stride-(1,2,2) downsamples: 16 -> 8 -> 4

    key = jax.random.PRNGKey(0)
    kp, kx, ke = jax.random.split(key, 3)

    params, conv_out, hf = init_params(kp, in_channels, out_channels,
                                       latent_dim, hidden_dims, coils, spatial)

    # PyTorch-convention input: (B, C, coils, H, W)
    x = jax.random.normal(kx, (B, in_channels, coils, spatial, spatial),
                          dtype=jnp.float32)
    # TODO(synk): torch.randn_like in reparameterize is non-deterministic; replaced
    # with a fixed-key normal draw of the same shape.
    eps_noise = jax.random.normal(ke, (B, latent_dim), dtype=jnp.float32)

    fwd = jax.jit(functools.partial(
        vae_forward, hidden_dims=tuple(hidden_dims), latent_dim=latent_dim,
        coils=coils, spatial=spatial, out_channels=out_channels,
        conv_out=conv_out, hf=hf))

    recon, inp, mu, log_var = fwd(params, x, eps_noise)

    jax.block_until_ready(recon)
    assert recon.shape == (B, out_channels, coils, spatial, spatial)
    assert mu.shape == (B, latent_dim) and log_var.shape == (B, latent_dim)
    assert bool(jnp.all(jnp.isfinite(recon)))
    assert bool(jnp.all(jnp.abs(recon) <= 1.0 + 1e-3))   # tanh output range
    print("KERNEL_OK")
</pallas_src>

<mosaic_0001>
module attributes {stable_mosaic.version = 11 : i64} {
  func.func @_matmul_fused_kernel(%arg0: i32, %arg1: i32, %arg2: i32, %arg3: memref<256x128xbf16, #tpu.memory_space<vmem>>, %arg4: memref<128x128xbf16, #tpu.memory_space<vmem>>, %arg5: memref<1x128xf32, #tpu.memory_space<vmem>>, %arg6: memref<1x128xf32, #tpu.memory_space<vmem>>, %arg7: memref<256x128xbf16, #tpu.memory_space<vmem>>, %arg8: memref<8x128xf32, #tpu.memory_space<vmem>>, %arg9: memref<8x128xf32, #tpu.memory_space<vmem>>, %arg10: memref<256x128xf32, #tpu.memory_space<vmem>>) attributes {dimension_semantics = [#tpu.dimension_semantics<parallel>, #tpu.dimension_semantics<parallel>, #tpu.dimension_semantics<arbitrary>], iteration_bounds = array<i64: 1, 1, 1>, scalar_prefetch = 0 : i64, scratch_operands = 1 : i64, tpu.core_type = #tpu.core_type<tc>, window_params = [{transform_indices = @transform_0, window_bounds = array<i64: 256, 128>}, {transform_indices = @transform_1, window_bounds = array<i64: 128, 128>}, {transform_indices = @transform_2, window_bounds = array<i64: 1, 128>}, {transform_indices = @transform_3, window_bounds = array<i64: 1, 128>}, {transform_indices = @transform_4, window_bounds = array<i64: 256, 128>}, {transform_indices = @transform_5, window_bounds = array<i64: 8, 128>}, {transform_indices = @transform_6, window_bounds = array<i64: 8, 128>}]} {
    %c0_i32 = arith.constant 0 : i32
    %0 = arith.cmpi eq, %arg2, %c0_i32 : i32
    %1 = arith.extui %0 : i1 to i32
    %c0_i32_0 = arith.constant 0 : i32
    %2 = arith.cmpi ne, %1, %c0_i32_0 : i32
    scf.if %2 {
      %cst_10 = arith.constant 0.000000e+00 : f32
      %12 = vector.broadcast %cst_10 : f32 to vector<256x128xf32>
      %c0_11 = arith.constant 0 : index
      %c0_12 = arith.constant 0 : index
      %13 = vector.load %arg10[%c0_11, %c0_12] : memref<256x128xf32, #tpu.memory_space<vmem>>, vector<256x128xf32>
      tpu.vector_store %arg10[%c0_11, %c0_12], %12 {strides = array<i32>} : memref<256x128xf32, #tpu.memory_space<vmem>>, vector<256x128xf32>,
    } else {
    }
    %c0 = arith.constant 0 : index
    %c0_1 = arith.constant 0 : index
    %3 = vector.load %arg10[%c0, %c0_1] : memref<256x128xf32, #tpu.memory_space<vmem>>, vector<256x128xf32>
    %c0_2 = arith.constant 0 : index
    %c0_3 = arith.constant 0 : index
    %4 = vector.load %arg3[%c0_2, %c0_3] : memref<256x128xbf16, #tpu.memory_space<vmem>>, vector<256x128xbf16>
    %c0_4 = arith.constant 0 : index
    %c0_5 = arith.constant 0 : index
    %5 = vector.load %arg4[%c0_4, %c0_5] : memref<128x128xbf16, #tpu.memory_space<vmem>>, vector<128x128xbf16>
    %cst = arith.constant dense<0.000000e+00> : vector<256x128xf32>
    %6 = tpu.matmul %4, %5, %cst {dimension_numbers = #tpu.dot_dimension_numbers<[1], [0], [0], [1], [0, 0, 1, 1], [], []>} : vector<256x128xbf16>, vector<128x128xbf16>, vector<256x128xf32> -> vector<256x128xf32>
    %7 = arith.addf %3, %6 : vector<256x128xf32>
    %c0_6 = arith.constant 0 : index
    %c0_7 = arith.constant 0 : index
    %8 = vector.load %arg10[%c0_6, %c0_7] : memref<256x128xf32, #tpu.memory_space<vmem>>, vector<256x128xf32>
    tpu.vector_store %arg10[%c0_6, %c0_7], %7 {strides = array<i32>} : memref<256x128xf32, #tpu.memory_space<vmem>>, vector<256x128xf32>,
    %c0_i32_8 = arith.constant 0 : i32
    %9 = arith.cmpi eq, %arg2, %c0_i32_8 : i32
    %10 = arith.extui %9 : i1 to i32
    %c0_i32_9 = arith.constant 0 : i32
    %11 = arith.cmpi ne, %10, %c0_i32_9 : i32
    scf.if %11 {
      %c0_10 = arith.constant 0 : index
      %c0_11 = arith.constant 0 : index
      %12 = vector.load %arg10[%c0_10, %c0_11] : memref<256x128xf32, #tpu.memory_space<vmem>>, vector<256x128xf32>
      %c0_12 = arith.constant 0 : index
      %c0_13 = arith.constant 0 : index
      %13 = vector.load %arg5[%c0_12, %c0_13] : memref<1x128xf32, #tpu.memory_space<vmem>>, vector<1x128xf32>
      %14 = vector.broadcast %13 : vector<1x128xf32> to vector<256x128xf32>
      %15 = arith.mulf %12, %14 : vector<256x128xf32>
      %c0_14 = arith.constant 0 : index
      %c0_15 = arith.constant 0 : index
      %16 = vector.load %arg6[%c0_14, %c0_15] : memref<1x128xf32, #tpu.memory_space<vmem>>, vector<1x128xf32>
      %17 = vector.broadcast %16 : vector<1x128xf32> to vector<256x128xf32>
      %18 = arith.addf %15, %17 : vector<256x128xf32>
      %19 = arith.truncf %18 : vector<256x128xf32> to vector<256x128xbf16>
      %c0_16 = arith.constant 0 : index
      %c0_17 = arith.constant 0 : index
      %20 = vector.load %arg7[%c0_16, %c0_17] : memref<256x128xbf16, #tpu.memory_space<vmem>>, vector<256x128xbf16>
      tpu.vector_store %arg7[%c0_16, %c0_17], %19 {strides = array<i32>} : memref<256x128xbf16, #tpu.memory_space<vmem>>, vector<256x128xbf16>,
      %cst_18 = arith.constant 0.000000e+00 : f32
      %21 = vector.broadcast %cst_18 : f32 to vector<8x128xf32>
      %c0_19 = arith.constant 0 : index
      %c0_20 = arith.constant 0 : index
      %22 = vector.load %arg8[%c0_19, %c0_20] : memref<8x128xf32, #tpu.memory_space<vmem>>, vector<8x128xf32>
      tpu.vector_store %arg8[%c0_19, %c0_20], %21 {strides = array<i32>} : memref<8x128xf32, #tpu.memory_space<vmem>>, vector<8x128xf32>,
      %cst_21 = arith.constant 0.000000e+00 : f32
      %23 = vector.broadcast %cst_21 : f32 to vector<8x128xf32>
      %c0_22 = arith.constant 0 : index
      %c0_23 = arith.constant 0 : index
      %24 = vector.load %arg9[%c0_22, %c0_23] : memref<8x128xf32, #tpu.memory_space<vmem>>, vector<8x128xf32>
      tpu.vector_store %arg9[%c0_22, %c0_23], %23 {strides = array<i32>} : memref<8x128xf32, #tpu.memory_space<vmem>>, vector<8x128xf32>,
      %cst_24 = arith.constant dense<0.000000e+00> : vector<128xf32>
      %25 = vector.multi_reduction <add>, %12, %cst_24 [0] : vector<256x128xf32> to vector<128xf32>
      %26 = vector.shape_cast %25 : vector<128xf32> to vector<1x128xf32>
      %c0_25 = arith.constant 0 : index
      %c0_26 = arith.constant 0 : index
      %27 = vector.load %arg8[%c0_25, %c0_26] : memref<8x128xf32, #tpu.memory_space<vmem>>, vector<1x128xf32>
      tpu.vector_store %arg8[%c0_25, %c0_26], %26 {strides = array<i32>} : memref<8x128xf32, #tpu.memory_space<vmem>>, vector<1x128xf32>,
      %28 = arith.mulf %12, %12 : vector<256x128xf32>
      %cst_27 = arith.constant dense<0.000000e+00> : vector<128xf32>
      %29 = vector.multi_reduction <add>, %28, %cst_27 [0] : vector<256x128xf32> to vector<128xf32>
      %30 = vector.shape_cast %29 : vector<128xf32> to vector<1x128xf32>
      %c0_28 = arith.constant 0 : index
      %c0_29 = arith.constant 0 : index
      %31 = vector.load %arg9[%c0_28, %c0_29] : memref<8x128xf32, #tpu.memory_space<vmem>>, vector<1x128xf32>
      tpu.vector_store %arg9[%c0_28, %c0_29], %30 {strides = array<i32>} : memref<8x128xf32, #tpu.memory_space<vmem>>, vector<1x128xf32>,
    } else {
    }
    return
  }
  func.func @transform_0(%arg0: i32, %arg1: i32, %arg2: i32) -> (i32, i32) {
    %c0_i32 = arith.constant 0 : i32
    return %arg0, %arg2 : i32, i32
  }
  func.func @transform_1(%arg0: i32, %arg1: i32, %arg2: i32) -> (i32, i32) {
    %c0_i32 = arith.constant 0 : i32
    return %arg2, %arg1 : i32, i32
  }
  func.func @transform_2(%arg0: i32, %arg1: i32, %arg2: i32) -> (i32, i32) {
    %c0_i32 = arith.constant 0 : i32
    %c0_i32_0 = arith.constant 0 : i32
    return %c0_i32, %arg1 : i32, i32
  }
  func.func @transform_3(%arg0: i32, %arg1: i32, %arg2: i32) -> (i32, i32) {
    %c0_i32 = arith.constant 0 : i32
    %c0_i32_0 = arith.constant 0 : i32
    return %c0_i32, %arg1 : i32, i32
  }
  func.func @transform_4(%arg0: i32, %arg1: i32, %arg2: i32) -> (i32, i32) {
    %c0_i32 = arith.constant 0 : i32
    return %arg0, %arg1 : i32, i32
  }
  func.func @transform_5(%arg0: i32, %arg1: i32, %arg2: i32) -> (i32, i32) {
    %c0_i32 = arith.constant 0 : i32
    return %arg0, %arg1 : i32, i32
  }
  func.func @transform_6(%arg0: i32, %arg1: i32, %arg2: i32) -> (i32, i32) {
    %c0_i32 = arith.constant 0 : i32
    return %arg0, %arg1 : i32, i32
  }
}

module attributes {stable_mosaic.version = 11 : i64} {
  func.func @_affine_act_kernel(%arg0: i32, %arg1: memref<16x128xbf16, #tpu.memory_space<vmem>>, %arg2: memref<1x128xf32, #tpu.memory_space<vmem>>, %arg3: memref<1x128xf32, #tpu.memory_space<vmem>>, %arg4: memref<16x128xbf16, #tpu.memory_space<vmem>>) attributes {dimension_semantics = [#tpu.dimension_semantics<parallel>], iteration_bounds = array<i64: 1>, scalar_prefetch = 0 : i64, scratch_operands = 0 : i64, tpu.core_type = #tpu.core_type<tc>, window_params = [{transform_indices = @transform_0, window_bounds = array<i64: 16, 128>}, {pipeline_mode = #tpu.pipeline_mode<synchronous>, transform_indices = @transform_1, window_bounds = array<i64: 1, 128>}, {pipeline_mode = #tpu.pipeline_mode<synchronous>, transform_indices = @transform_2, window_bounds = array<i64: 1, 128>}, {transform_indices = @transform_3, window_bounds = array<i64: 16, 128>}]} {
    %c0 = arith.constant 0 : index
    %c0_0 = arith.constant 0 : index
    %0 = vector.load %arg1[%c0, %c0_0] : memref<16x128xbf16, #tpu.memory_space<vmem>>, vector<16x128xbf16>
    %1 = arith.extf %0 : vector<16x128xbf16> to vector<16x128xf32>
    %c0_1 = arith.constant 0 : index
    %c0_2 = arith.constant 0 : index
    %2 = vector.load %arg2[%c0_1, %c0_2] : memref<1x128xf32, #tpu.memory_space<vmem>>, vector<1x128xf32>
    %3 = vector.broadcast %2 : vector<1x128xf32> to vector<16x128xf32>
    %4 = arith.mulf %1, %3 : vector<16x128xf32>
    %c0_3 = arith.constant 0 : index
    %c0_4 = arith.constant 0 : index
    %5 = vector.load %arg3[%c0_3, %c0_4] : memref<1x128xf32, #tpu.memory_space<vmem>>, vector<1x128xf32>
    %6 = vector.broadcast %5 : vector<1x128xf32> to vector<16x128xf32>
    %7 = arith.addf %4, %6 : vector<16x128xf32>
    %cst = arith.constant 0.000000e+00 : f32
    %8 = vector.broadcast %cst : f32 to vector<16x128xf32>
    %9 = arith.cmpf oge, %7, %8 : vector<16x128xf32>
    %cst_5 = arith.constant 0.00999999977 : f32
    %10 = vector.broadcast %cst_5 : f32 to vector<16x128xf32>
    %11 = arith.mulf %10, %7 : vector<16x128xf32>
    %12 = arith.select %9, %7, %11 : vector<16x128xi1>, vector<16x128xf32>
    %13 = arith.truncf %12 : vector<16x128xf32> to vector<16x128xbf16>
    %c0_6 = arith.constant 0 : index
    %c0_7 = arith.constant 0 : index
    %14 = vector.load %arg4[%c0_6, %c0_7] : memref<16x128xbf16, #tpu.memory_space<vmem>>, vector<16x128xbf16>
    tpu.vector_store %arg4[%c0_6, %c0_7], %13 {strides = array<i32>} : memref<16x128xbf16, #tpu.memory_space<vmem>>, vector<16x128xbf16>,
    return
  }
  func.func @transform_0(%arg0: i32) -> (i32, i32) {
    %c0_i32 = arith.constant 0 : i32
    %c0_i32_0 = arith.constant 0 : i32
    return %arg0, %c0_i32 : i32, i32
  }
  func.func @transform_1(%arg0: i32) -> (i32, i32) {
    %c0_i32 = arith.constant 0 : i32
    %c0_i32_0 = arith.constant 0 : i32
    %c0_i32_1 = arith.constant 0 : i32
    return %c0_i32, %c0_i32_0 : i32, i32
  }
  func.func @transform_2(%arg0: i32) -> (i32, i32) {
    %c0_i32 = arith.constant 0 : i32
    %c0_i32_0 = arith.constant 0 : i32
    %c0_i32_1 = arith.constant 0 : i32
    return %c0_i32, %c0_i32_0 : i32, i32
  }
  func.func @transform_3(%arg0: i32) -> (i32, i32) {
    %c0_i32 = arith.constant 0 : i32
    %c0_i32_0 = arith.constant 0 : i32
    return %arg0, %c0_i32 : i32, i32
  }
}

module attributes {stable_mosaic.version = 11 : i64} {
  func.func @_matmul_fused_kernel(%arg0: i32, %arg1: i32, %arg2: i32, %arg3: memref<64x256xbf16, #tpu.memory_space<vmem>>, %arg4: memref<256x128xbf16, #tpu.memory_space<vmem>>, %arg5: memref<1x128xf32, #tpu.memory_space<vmem>>, %arg6: memref<1x128xf32, #tpu.memory_space<vmem>>, %arg7: memref<64x128xbf16, #tpu.memory_space<vmem>>, %arg8: memref<8x128xf32, #tpu.memory_space<vmem>>, %arg9: memref<8x128xf32, #tpu.memory_space<vmem>>, %arg10: memref<64x128xf32, #tpu.memory_space<vmem>>) attributes {dimension_semantics = [#tpu.dimension_semantics<parallel>, #tpu.dimension_semantics<parallel>, #tpu.dimension_semantics<arbitrary>], iteration_bounds = array<i64: 1, 1, 1>, scalar_prefetch = 0 : i64, scratch_operands = 1 : i64, tpu.core_type = #tpu.core_type<tc>, window_params = [{transform_indices = @transform_0, window_bounds = array<i64: 64, 256>}, {transform_indices = @transform_1, window_bounds = array<i64: 256, 128>}, {transform_indices = @transform_2, window_bounds = array<i64: 1, 128>}, {transform_indices = @transform_3, window_bounds = array<i64: 1, 128>}, {transform_indices = @transform_4, window_bounds = array<i64: 64, 128>}, {transform_indices = @transform_5, window_bounds = array<i64: 8, 128>}, {transform_indices = @transform_6, window_bounds = array<i64: 8, 128>}]} {
    %c0_i32 = arith.constant 0 : i32
    %0 = arith.cmpi eq, %arg2, %c0_i32 : i32
    %1 = arith.extui %0 : i1 to i32
    %c0_i32_0 = arith.constant 0 : i32
    %2 = arith.cmpi ne, %1, %c0_i32_0 : i32
    scf.if %2 {
      %cst_10 = arith.constant 0.000000e+00 : f32
      %12 = vector.broadcast %cst_10 : f32 to vector<64x128xf32>
      %c0_11 = arith.constant 0 : index
      %c0_12 = arith.constant 0 : index
      %13 = vector.load %arg10[%c0_11, %c0_12] : memref<64x128xf32, #tpu.memory_space<vmem>>, vector<64x128xf32>
      tpu.vector_store %arg10[%c0_11, %c0_12], %12 {strides = array<i32>} : memref<64x128xf32, #tpu.memory_space<vmem>>, vector<64x128xf32>,
    } else {
    }
    %c0 = arith.constant 0 : index
    %c0_1 = arith.constant 0 : index
    %3 = vector.load %arg10[%c0, %c0_1] : memref<64x128xf32, #tpu.memory_space<vmem>>, vector<64x128xf32>
    %c0_2 = arith.constant 0 : index
    %c0_3 = arith.constant 0 : index
    %4 = vector.load %arg3[%c0_2, %c0_3] : memref<64x256xbf16, #tpu.memory_space<vmem>>, vector<64x256xbf16>
    %c0_4 = arith.constant 0 : index
    %c0_5 = arith.constant 0 : index
    %5 = vector.load %arg4[%c0_4, %c0_5] : memref<256x128xbf16, #tpu.memory_space<vmem>>, vector<256x128xbf16>
    %cst = arith.constant dense<0.000000e+00> : vector<64x128xf32>
    %6 = tpu.matmul %4, %5, %cst {dimension_numbers = #tpu.dot_dimension_numbers<[1], [0], [0], [1], [0, 0, 1, 1], [], []>} : vector<64x256xbf16>, vector<256x128xbf16>, vector<64x128xf32> -> vector<64x128xf32>
    %7 = arith.addf %3, %6 : vector<64x128xf32>
    %c0_6 = arith.constant 0 : index
    %c0_7 = arith.constant 0 : index
    %8 = vector.load %arg10[%c0_6, %c0_7] : memref<64x128xf32, #tpu.memory_space<vmem>>, vector<64x128xf32>
    tpu.vector_store %arg10[%c0_6, %c0_7], %7 {strides = array<i32>} : memref<64x128xf32, #tpu.memory_space<vmem>>, vector<64x128xf32>,
    %c0_i32_8 = arith.constant 0 : i32
    %9 = arith.cmpi eq, %arg2, %c0_i32_8 : i32
    %10 = arith.extui %9 : i1 to i32
    %c0_i32_9 = arith.constant 0 : i32
    %11 = arith.cmpi ne, %10, %c0_i32_9 : i32
    scf.if %11 {
      %c0_10 = arith.constant 0 : index
      %c0_11 = arith.constant 0 : index
      %12 = vector.load %arg10[%c0_10, %c0_11] : memref<64x128xf32, #tpu.memory_space<vmem>>, vector<64x128xf32>
      %c0_12 = arith.constant 0 : index
      %c0_13 = arith.constant 0 : index
      %13 = vector.load %arg5[%c0_12, %c0_13] : memref<1x128xf32, #tpu.memory_space<vmem>>, vector<1x128xf32>
      %14 = vector.broadcast %13 : vector<1x128xf32> to vector<64x128xf32>
      %15 = arith.mulf %12, %14 : vector<64x128xf32>
      %c0_14 = arith.constant 0 : index
      %c0_15 = arith.constant 0 : index
      %16 = vector.load %arg6[%c0_14, %c0_15] : memref<1x128xf32, #tpu.memory_space<vmem>>, vector<1x128xf32>
      %17 = vector.broadcast %16 : vector<1x128xf32> to vector<64x128xf32>
      %18 = arith.addf %15, %17 : vector<64x128xf32>
      %19 = arith.truncf %18 : vector<64x128xf32> to vector<64x128xbf16>
      %c0_16 = arith.constant 0 : index
      %c0_17 = arith.constant 0 : index
      %20 = vector.load %arg7[%c0_16, %c0_17] : memref<64x128xbf16, #tpu.memory_space<vmem>>, vector<64x128xbf16>
      tpu.vector_store %arg7[%c0_16, %c0_17], %19 {strides = array<i32>} : memref<64x128xbf16, #tpu.memory_space<vmem>>, vector<64x128xbf16>,
      %cst_18 = arith.constant 0.000000e+00 : f32
      %21 = vector.broadcast %cst_18 : f32 to vector<8x128xf32>
      %c0_19 = arith.constant 0 : index
      %c0_20 = arith.constant 0 : index
      %22 = vector.load %arg8[%c0_19, %c0_20] : memref<8x128xf32, #tpu.memory_space<vmem>>, vector<8x128xf32>
      tpu.vector_store %arg8[%c0_19, %c0_20], %21 {strides = array<i32>} : memref<8x128xf32, #tpu.memory_space<vmem>>, vector<8x128xf32>,
      %cst_21 = arith.constant 0.000000e+00 : f32
      %23 = vector.broadcast %cst_21 : f32 to vector<8x128xf32>
      %c0_22 = arith.constant 0 : index
      %c0_23 = arith.constant 0 : index
      %24 = vector.load %arg9[%c0_22, %c0_23] : memref<8x128xf32, #tpu.memory_space<vmem>>, vector<8x128xf32>
      tpu.vector_store %arg9[%c0_22, %c0_23], %23 {strides = array<i32>} : memref<8x128xf32, #tpu.memory_space<vmem>>, vector<8x128xf32>,
      %cst_24 = arith.constant dense<0.000000e+00> : vector<128xf32>
      %25 = vector.multi_reduction <add>, %12, %cst_24 [0] : vector<64x128xf32> to vector<128xf32>
      %26 = vector.shape_cast %25 : vector<128xf32> to vector<1x128xf32>
      %c0_25 = arith.constant 0 : index
      %c0_26 = arith.constant 0 : index
      %27 = vector.load %arg8[%c0_25, %c0_26] : memref<8x128xf32, #tpu.memory_space<vmem>>, vector<1x128xf32>
      tpu.vector_store %arg8[%c0_25, %c0_26], %26 {strides = array<i32>} : memref<8x128xf32, #tpu.memory_space<vmem>>, vector<1x128xf32>,
      %28 = arith.mulf %12, %12 : vector<64x128xf32>
      %cst_27 = arith.constant dense<0.000000e+00> : vector<128xf32>
      %29 = vector.multi_reduction <add>, %28, %cst_27 [0] : vector<64x128xf32> to vector<128xf32>
      %30 = vector.shape_cast %29 : vector<128xf32> to vector<1x128xf32>
      %c0_28 = arith.constant 0 : index
      %c0_29 = arith.constant 0 : index
      %31 = vector.load %arg9[%c0_28, %c0_29] : memref<8x128xf32, #tpu.memory_space<vmem>>, vector<1x128xf32>
      tpu.vector_store %arg9[%c0_28, %c0_29], %30 {strides = array<i32>} : memref<8x128xf32, #tpu.memory_space<vmem>>, vector<1x128xf32>,
    } else {
    }
    return
  }
  func.func @transform_0(%arg0: i32, %arg1: i32, %arg2: i32) -> (i32, i32) {
    %c0_i32 = arith.constant 0 : i32
    return %arg0, %arg2 : i32, i32
  }
  func.func @transform_1(%arg0: i32, %arg1: i32, %arg2: i32) -> (i32, i32) {
    %c0_i32 = arith.constant 0 : i32
    return %arg2, %arg1 : i32, i32
  }
  func.func @transform_2(%arg0: i32, %arg1: i32, %arg2: i32) -> (i32, i32) {
    %c0_i32 = arith.constant 0 : i32
    %c0_i32_0 = arith.constant 0 : i32
    return %c0_i32, %arg1 : i32, i32
  }
  func.func @transform_3(%arg0: i32, %arg1: i32, %arg2: i32) -> (i32, i32) {
    %c0_i32 = arith.constant 0 : i32
    %c0_i32_0 = arith.constant 0 : i32
    return %c0_i32, %arg1 : i32, i32
  }
  func.func @transform_4(%arg0: i32, %arg1: i32, %arg2: i32) -> (i32, i32) {
    %c0_i32 = arith.constant 0 : i32
    return %arg0, %arg1 : i32, i32
  }
  func.func @transform_5(%arg0: i32, %arg1: i32, %arg2: i32) -> (i32, i32) {
    %c0_i32 = arith.constant 0 : i32
    return %arg0, %arg1 : i32, i32
  }
  func.func @transform_6(%arg0: i32, %arg1: i32, %arg2: i32) -> (i32, i32) {
    %c0_i32 = arith.constant 0 : i32
    return %arg0, %arg1 : i32, i32
  }
}

module attributes {stable_mosaic.version = 11 : i64} {
  func.func @_affine_act_kernel(%arg0: i32, %arg1: memref<8x128xbf16, #tpu.memory_space<vmem>>, %arg2: memref<1x128xf32, #tpu.memory_space<vmem>>, %arg3: memref<1x128xf32, #tpu.memory_space<vmem>>, %arg4: memref<8x128xbf16, #tpu.memory_space<vmem>>) attributes {dimension_semantics = [#tpu.dimension_semantics<parallel>], iteration_bounds = array<i64: 1>, scalar_prefetch = 0 : i64, scratch_operands = 0 : i64, tpu.core_type = #tpu.core_type<tc>, window_params = [{transform_indices = @transform_0, window_bounds = array<i64: 8, 128>}, {pipeline_mode = #tpu.pipeline_mode<synchronous>, transform_indices = @transform_1, window_bounds = array<i64: 1, 128>}, {pipeline_mode = #tpu.pipeline_mode<synchronous>, transform_indices = @transform_2, window_bounds = array<i64: 1, 128>}, {transform_indices = @transform_3, window_bounds = array<i64: 8, 128>}]} {
    %c0 = arith.constant 0 : index
    %c0_0 = arith.constant 0 : index
    %0 = vector.load %arg1[%c0, %c0_0] : memref<8x128xbf16, #tpu.memory_space<vmem>>, vector<8x128xbf16>
    %1 = arith.extf %0 : vector<8x128xbf16> to vector<8x128xf32>
    %c0_1 = arith.constant 0 : index
    %c0_2 = arith.constant 0 : index
    %2 = vector.load %arg2[%c0_1, %c0_2] : memref<1x128xf32, #tpu.memory_space<vmem>>, vector<1x128xf32>
    %3 = vector.broadcast %2 : vector<1x128xf32> to vector<8x128xf32>
    %4 = arith.mulf %1, %3 : vector<8x128xf32>
    %c0_3 = arith.constant 0 : index
    %c0_4 = arith.constant 0 : index
    %5 = vector.load %arg3[%c0_3, %c0_4] : memref<1x128xf32, #tpu.memory_space<vmem>>, vector<1x128xf32>
    %6 = vector.broadcast %5 : vector<1x128xf32> to vector<8x128xf32>
    %7 = arith.addf %4, %6 : vector<8x128xf32>
    %cst = arith.constant 0.000000e+00 : f32
    %8 = vector.broadcast %cst : f32 to vector<8x128xf32>
    %9 = arith.cmpf oge, %7, %8 : vector<8x128xf32>
    %cst_5 = arith.constant 0.00999999977 : f32
    %10 = vector.broadcast %cst_5 : f32 to vector<8x128xf32>
    %11 = arith.mulf %10, %7 : vector<8x128xf32>
    %12 = arith.select %9, %7, %11 : vector<8x128xi1>, vector<8x128xf32>
    %13 = arith.truncf %12 : vector<8x128xf32> to vector<8x128xbf16>
    %c0_6 = arith.constant 0 : index
    %c0_7 = arith.constant 0 : index
    %14 = vector.load %arg4[%c0_6, %c0_7] : memref<8x128xbf16, #tpu.memory_space<vmem>>, vector<8x128xbf16>
    tpu.vector_store %arg4[%c0_6, %c0_7], %13 {strides = array<i32>} : memref<8x128xbf16, #tpu.memory_space<vmem>>, vector<8x128xbf16>,
    return
  }
  func.func @transform_0(%arg0: i32) -> (i32, i32) {
    %c0_i32 = arith.constant 0 : i32
    %c0_i32_0 = arith.constant 0 : i32
    return %arg0, %c0_i32 : i32, i32
  }
  func.func @transform_1(%arg0: i32) -> (i32, i32) {
    %c0_i32 = arith.constant 0 : i32
    %c0_i32_0 = arith.constant 0 : i32
    %c0_i32_1 = arith.constant 0 : i32
    return %c0_i32, %c0_i32_0 : i32, i32
  }
  func.func @transform_2(%arg0: i32) -> (i32, i32) {
    %c0_i32 = arith.constant 0 : i32
    %c0_i32_0 = arith.constant 0 : i32
    %c0_i32_1 = arith.constant 0 : i32
    return %c0_i32, %c0_i32_0 : i32, i32
  }
  func.func @transform_3(%arg0: i32) -> (i32, i32) {
    %c0_i32 = arith.constant 0 : i32
    %c0_i32_0 = arith.constant 0 : i32
    return %arg0, %c0_i32 : i32, i32
  }
}

module attributes {stable_mosaic.version = 11 : i64} {
  func.func @_matmul_fused_kernel(%arg0: i32, %arg1: i32, %arg2: i32, %arg3: memref<8x512xbf16, #tpu.memory_space<vmem>>, %arg4: memref<512x128xbf16, #tpu.memory_space<vmem>>, %arg5: memref<1x128xf32, #tpu.memory_space<vmem>>, %arg6: memref<1x128xf32, #tpu.memory_space<vmem>>, %arg7: memref<8x128xf32, #tpu.memory_space<vmem>>, %arg8: memref<8x128xf32, #tpu.memory_space<vmem>>) attributes {dimension_semantics = [#tpu.dimension_semantics<parallel>, #tpu.dimension_semantics<parallel>, #tpu.dimension_semantics<arbitrary>], iteration_bounds = array<i64: 1, 1, 1>, scalar_prefetch = 0 : i64, scratch_operands = 1 : i64, tpu.core_type = #tpu.core_type<tc>, window_params = [{transform_indices = @transform_0, window_bounds = array<i64: 8, 512>}, {transform_indices = @transform_1, window_bounds = array<i64: 512, 128>}, {transform_indices = @transform_2, window_bounds = array<i64: 1, 128>}, {transform_indices = @transform_3, window_bounds = array<i64: 1, 128>}, {transform_indices = @transform_4, window_bounds = array<i64: 8, 128>}]} {
    %c0_i32 = arith.constant 0 : i32
    %0 = arith.cmpi eq, %arg2, %c0_i32 : i32
    %1 = arith.extui %0 : i1 to i32
    %c0_i32_0 = arith.constant 0 : i32
    %2 = arith.cmpi ne, %1, %c0_i32_0 : i32
    scf.if %2 {
      %cst_10 = arith.constant 0.000000e+00 : f32
      %12 = vector.broadcast %cst_10 : f32 to vector<8x128xf32>
      %c0_11 = arith.constant 0 : index
      %c0_12 = arith.constant 0 : index
      %13 = vector.load %arg8[%c0_11, %c0_12] : memref<8x128xf32, #tpu.memory_space<vmem>>, vector<8x128xf32>
      tpu.vector_store %arg8[%c0_11, %c0_12], %12 {strides = array<i32>} : memref<8x128xf32, #tpu.memory_space<vmem>>, vector<8x128xf32>,
    } else {
    }
    %c0 = arith.constant 0 : index
    %c0_1 = arith.constant 0 : index
    %3 = vector.load %arg8[%c0, %c0_1] : memref<8x128xf32, #tpu.memory_space<vmem>>, vector<8x128xf32>
    %c0_2 = arith.constant 0 : index
    %c0_3 = arith.constant 0 : index
    %4 = vector.load %arg3[%c0_2, %c0_3] : memref<8x512xbf16, #tpu.memory_space<vmem>>, vector<8x512xbf16>
    %c0_4 = arith.constant 0 : index
    %c0_5 = arith.constant 0 : index
    %5 = vector.load %arg4[%c0_4, %c0_5] : memref<512x128xbf16, #tpu.memory_space<vmem>>, vector<512x128xbf16>
    %cst = arith.constant dense<0.000000e+00> : vector<8x128xf32>
    %6 = tpu.matmul %4, %5, %cst {dimension_numbers = #tpu.dot_dimension_numbers<[1], [0], [0], [1], [0, 0, 1, 1], [], []>} : vector<8x512xbf16>, vector<512x128xbf16>, vector<8x128xf32> -> vector<8x128xf32>
    %7 = arith.addf %3, %6 : vector<8x128xf32>
    %c0_6 = arith.constant 0 : index
    %c0_7 = arith.constant 0 : index
    %8 = vector.load %arg8[%c0_6, %c0_7] : memref<8x128xf32, #tpu.memory_space<vmem>>, vector<8x128xf32>
    tpu.vector_store %arg8[%c0_6, %c0_7], %7 {strides = array<i32>} : memref<8x128xf32, #tpu.memory_space<vmem>>, vector<8x128xf32>,
    %c0_i32_8 = arith.constant 0 : i32
    %9 = arith.cmpi eq, %arg2, %c0_i32_8 : i32
    %10 = arith.extui %9 : i1 to i32
    %c0_i32_9 = arith.constant 0 : i32
    %11 = arith.cmpi ne, %10, %c0_i32_9 : i32
    scf.if %11 {
      %c0_10 = arith.constant 0 : index
      %c0_11 = arith.constant 0 : index
      %12 = vector.load %arg8[%c0_10, %c0_11] : memref<8x128xf32, #tpu.memory_space<vmem>>, vector<8x128xf32>
      %c0_12 = arith.constant 0 : index
      %c0_13 = arith.constant 0 : index
      %13 = vector.load %arg5[%c0_12, %c0_13] : memref<1x128xf32, #tpu.memory_space<vmem>>, vector<1x128xf32>
      %14 = vector.broadcast %13 : vector<1x128xf32> to vector<8x128xf32>
      %15 = arith.mulf %12, %14 : vector<8x128xf32>
      %c0_14 = arith.constant 0 : index
      %c0_15 = arith.constant 0 : index
      %16 = vector.load %arg6[%c0_14, %c0_15] : memref<1x128xf32, #tpu.memory_space<vmem>>, vector<1x128xf32>
      %17 = vector.broadcast %16 : vector<1x128xf32> to vector<8x128xf32>
      %18 = arith.addf %15, %17 : vector<8x128xf32>
      %c0_16 = arith.constant 0 : index
      %c0_17 = arith.constant 0 : index
      %19 = vector.load %arg7[%c0_16, %c0_17] : memref<8x128xf32, #tpu.memory_space<vmem>>, vector<8x128xf32>
      tpu.vector_store %arg7[%c0_16, %c0_17], %18 {strides = array<i32>} : memref<8x128xf32, #tpu.memory_space<vmem>>, vector<8x128xf32>,
    } else {
    }
    return
  }
  func.func @transform_0(%arg0: i32, %arg1: i32, %arg2: i32) -> (i32, i32) {
    %c0_i32 = arith.constant 0 : i32
    return %arg0, %arg2 : i32, i32
  }
  func.func @transform_1(%arg0: i32, %arg1: i32, %arg2: i32) -> (i32, i32) {
    %c0_i32 = arith.constant 0 : i32
    return %arg2, %arg1 : i32, i32
  }
  func.func @transform_2(%arg0: i32, %arg1: i32, %arg2: i32) -> (i32, i32) {
    %c0_i32 = arith.constant 0 : i32
    %c0_i32_0 = arith.constant 0 : i32
    return %c0_i32, %arg1 : i32, i32
  }
  func.func @transform_3(%arg0: i32, %arg1: i32, %arg2: i32) -> (i32, i32) {
    %c0_i32 = arith.constant 0 : i32
    %c0_i32_0 = arith.constant 0 : i32
    return %c0_i32, %arg1 : i32, i32
  }
  func.func @transform_4(%arg0: i32, %arg1: i32, %arg2: i32) -> (i32, i32) {
    %c0_i32 = arith.constant 0 : i32
    return %arg0, %arg1 : i32, i32
  }
}

module attributes {stable_mosaic.version = 11 : i64} {
  func.func @_matmul_fused_kernel(%arg0: i32, %arg1: i32, %arg2: i32, %arg3: memref<8x128xbf16, #tpu.memory_space<vmem>>, %arg4: memref<128x256xbf16, #tpu.memory_space<vmem>>, %arg5: memref<1x256xf32, #tpu.memory_space<vmem>>, %arg6: memref<1x256xf32, #tpu.memory_space<vmem>>, %arg7: memref<8x256xbf16, #tpu.memory_space<vmem>>, %arg8: memref<8x256xf32, #tpu.memory_space<vmem>>) attributes {dimension_semantics = [#tpu.dimension_semantics<parallel>, #tpu.dimension_semantics<parallel>, #tpu.dimension_semantics<arbitrary>], iteration_bounds = array<i64: 1, 2, 1>, scalar_prefetch = 0 : i64, scratch_operands = 1 : i64, tpu.core_type = #tpu.core_type<tc>, window_params = [{transform_indices = @transform_0, window_bounds = array<i64: 8, 128>}, {transform_indices = @transform_1, window_bounds = array<i64: 128, 256>}, {transform_indices = @transform_2, window_bounds = array<i64: 1, 256>}, {transform_indices = @transform_3, window_bounds = array<i64: 1, 256>}, {transform_indices = @transform_4, window_bounds = array<i64: 8, 256>}]} {
    %c0_i32 = arith.constant 0 : i32
    %0 = arith.cmpi eq, %arg2, %c0_i32 : i32
    %1 = arith.extui %0 : i1 to i32
    %c0_i32_0 = arith.constant 0 : i32
    %2 = arith.cmpi ne, %1, %c0_i32_0 : i32
    scf.if %2 {
      %cst_10 = arith.constant 0.000000e+00 : f32
      %12 = vector.broadcast %cst_10 : f32 to vector<8x256xf32>
      %c0_11 = arith.constant 0 : index
      %c0_12 = arith.constant 0 : index
      %13 = vector.load %arg8[%c0_11, %c0_12] : memref<8x256xf32, #tpu.memory_space<vmem>>, vector<8x256xf32>
      tpu.vector_store %arg8[%c0_11, %c0_12], %12 {strides = array<i32>} : memref<8x256xf32, #tpu.memory_space<vmem>>, vector<8x256xf32>,
    } else {
    }
    %c0 = arith.constant 0 : index
    %c0_1 = arith.constant 0 : index
    %3 = vector.load %arg8[%c0, %c0_1] : memref<8x256xf32, #tpu.memory_space<vmem>>, vector<8x256xf32>
    %c0_2 = arith.constant 0 : index
    %c0_3 = arith.constant 0 : index
    %4 = vector.load %arg3[%c0_2, %c0_3] : memref<8x128xbf16, #tpu.memory_space<vmem>>, vector<8x128xbf16>
    %c0_4 = arith.constant 0 : index
    %c0_5 = arith.constant 0 : index
    %5 = vector.load %arg4[%c0_4, %c0_5] : memref<128x256xbf16, #tpu.memory_space<vmem>>, vector<128x256xbf16>
    %cst = arith.constant dense<0.000000e+00> : vector<8x256xf32>
    %6 = tpu.matmul %4, %5, %cst {dimension_numbers = #tpu.dot_dimension_numbers<[1], [0], [0], [1], [0, 0, 1, 1], [], []>} : vector<8x128xbf16>, vector<128x256xbf16>, vector<8x256xf32> -> vector<8x256xf32>
    %7 = arith.addf %3, %6 : vector<8x256xf32>
    %c0_6 = arith.constant 0 : index
    %c0_7 = arith.constant 0 : index
    %8 = vector.load %arg8[%c0_6, %c0_7] : memref<8x256xf32, #tpu.memory_space<vmem>>, vector<8x256xf32>
    tpu.vector_store %arg8[%c0_6, %c0_7], %7 {strides = array<i32>} : memref<8x256xf32, #tpu.memory_space<vmem>>, vector<8x256xf32>,
    %c0_i32_8 = arith.constant 0 : i32
    %9 = arith.cmpi eq, %arg2, %c0_i32_8 : i32
    %10 = arith.extui %9 : i1 to i32
    %c0_i32_9 = arith.constant 0 : i32
    %11 = arith.cmpi ne, %10, %c0_i32_9 : i32
    scf.if %11 {
      %c0_10 = arith.constant 0 : index
      %c0_11 = arith.constant 0 : index
      %12 = vector.load %arg8[%c0_10, %c0_11] : memref<8x256xf32, #tpu.memory_space<vmem>>, vector<8x256xf32>
      %c0_12 = arith.constant 0 : index
      %c0_13 = arith.constant 0 : index
      %13 = vector.load %arg5[%c0_12, %c0_13] : memref<1x256xf32, #tpu.memory_space<vmem>>, vector<1x256xf32>
      %14 = vector.broadcast %13 : vector<1x256xf32> to vector<8x256xf32>
      %15 = arith.mulf %12, %14 : vector<8x256xf32>
      %c0_14 = arith.constant 0 : index
      %c0_15 = arith.constant 0 : index
      %16 = vector.load %arg6[%c0_14, %c0_15] : memref<1x256xf32, #tpu.memory_space<vmem>>, vector<1x256xf32>
      %17 = vector.broadcast %16 : vector<1x256xf32> to vector<8x256xf32>
      %18 = arith.addf %15, %17 : vector<8x256xf32>
      %19 = arith.truncf %18 : vector<8x256xf32> to vector<8x256xbf16>
      %c0_16 = arith.constant 0 : index
      %c0_17 = arith.constant 0 : index
      %20 = vector.load %arg7[%c0_16, %c0_17] : memref<8x256xbf16, #tpu.memory_space<vmem>>, vector<8x256xbf16>
      tpu.vector_store %arg7[%c0_16, %c0_17], %19 {strides = array<i32>} : memref<8x256xbf16, #tpu.memory_space<vmem>>, vector<8x256xbf16>,
    } else {
    }
    return
  }
  func.func @transform_0(%arg0: i32, %arg1: i32, %arg2: i32) -> (i32, i32) {
    %c0_i32 = arith.constant 0 : i32
    return %arg0, %arg2 : i32, i32
  }
  func.func @transform_1(%arg0: i32, %arg1: i32, %arg2: i32) -> (i32, i32) {
    %c0_i32 = arith.constant 0 : i32
    return %arg2, %arg1 : i32, i32
  }
  func.func @transform_2(%arg0: i32, %arg1: i32, %arg2: i32) -> (i32, i32) {
    %c0_i32 = arith.constant 0 : i32
    %c0_i32_0 = arith.constant 0 : i32
    return %c0_i32, %arg1 : i32, i32
  }
  func.func @transform_3(%arg0: i32, %arg1: i32, %arg2: i32) -> (i32, i32) {
    %c0_i32 = arith.constant 0 : i32
    %c0_i32_0 = arith.constant 0 : i32
    return %c0_i32, %arg1 : i32, i32
  }
  func.func @transform_4(%arg0: i32, %arg1: i32, %arg2: i32) -> (i32, i32) {
    %c0_i32 = arith.constant 0 : i32
    return %arg0, %arg1 : i32, i32
  }
}

module attributes {stable_mosaic.version = 11 : i64} {
  func.func @_matmul_fused_kernel(%arg0: i32, %arg1: i32, %arg2: i32, %arg3: memref<64x128xbf16, #tpu.memory_space<vmem>>, %arg4: memref<128x128xbf16, #tpu.memory_space<vmem>>, %arg5: memref<1x128xf32, #tpu.memory_space<vmem>>, %arg6: memref<1x128xf32, #tpu.memory_space<vmem>>, %arg7: memref<64x128xbf16, #tpu.memory_space<vmem>>, %arg8: memref<8x128xf32, #tpu.memory_space<vmem>>, %arg9: memref<8x128xf32, #tpu.memory_space<vmem>>, %arg10: memref<64x128xf32, #tpu.memory_space<vmem>>) attributes {dimension_semantics = [#tpu.dimension_semantics<parallel>, #tpu.dimension_semantics<parallel>, #tpu.dimension_semantics<arbitrary>], iteration_bounds = array<i64: 1, 1, 1>, scalar_prefetch = 0 : i64, scratch_operands = 1 : i64, tpu.core_type = #tpu.core_type<tc>, window_params = [{transform_indices = @transform_0, window_bounds = array<i64: 64, 128>}, {transform_indices = @transform_1, window_bounds = array<i64: 128, 128>}, {transform_indices = @transform_2, window_bounds = array<i64: 1, 128>}, {transform_indices = @transform_3, window_bounds = array<i64: 1, 128>}, {transform_indices = @transform_4, window_bounds = array<i64: 64, 128>}, {transform_indices = @transform_5, window_bounds = array<i64: 8, 128>}, {transform_indices = @transform_6, window_bounds = array<i64: 8, 128>}]} {
    %c0_i32 = arith.constant 0 : i32
    %0 = arith.cmpi eq, %arg2, %c0_i32 : i32
    %1 = arith.extui %0 : i1 to i32
    %c0_i32_0 = arith.constant 0 : i32
    %2 = arith.cmpi ne, %1, %c0_i32_0 : i32
    scf.if %2 {
      %cst_10 = arith.constant 0.000000e+00 : f32
      %12 = vector.broadcast %cst_10 : f32 to vector<64x128xf32>
      %c0_11 = arith.constant 0 : index
      %c0_12 = arith.constant 0 : index
      %13 = vector.load %arg10[%c0_11, %c0_12] : memref<64x128xf32, #tpu.memory_space<vmem>>, vector<64x128xf32>
      tpu.vector_store %arg10[%c0_11, %c0_12], %12 {strides = array<i32>} : memref<64x128xf32, #tpu.memory_space<vmem>>, vector<64x128xf32>,
    } else {
    }
    %c0 = arith.constant 0 : index
    %c0_1 = arith.constant 0 : index
    %3 = vector.load %arg10[%c0, %c0_1] : memref<64x128xf32, #tpu.memory_space<vmem>>, vector<64x128xf32>
    %c0_2 = arith.constant 0 : index
    %c0_3 = arith.constant 0 : index
    %4 = vector.load %arg3[%c0_2, %c0_3] : memref<64x128xbf16, #tpu.memory_space<vmem>>, vector<64x128xbf16>
    %c0_4 = arith.constant 0 : index
    %c0_5 = arith.constant 0 : index
    %5 = vector.load %arg4[%c0_4, %c0_5] : memref<128x128xbf16, #tpu.memory_space<vmem>>, vector<128x128xbf16>
    %cst = arith.constant dense<0.000000e+00> : vector<64x128xf32>
    %6 = tpu.matmul %4, %5, %cst {dimension_numbers = #tpu.dot_dimension_numbers<[1], [0], [0], [1], [0, 0, 1, 1], [], []>} : vector<64x128xbf16>, vector<128x128xbf16>, vector<64x128xf32> -> vector<64x128xf32>
    %7 = arith.addf %3, %6 : vector<64x128xf32>
    %c0_6 = arith.constant 0 : index
    %c0_7 = arith.constant 0 : index
    %8 = vector.load %arg10[%c0_6, %c0_7] : memref<64x128xf32, #tpu.memory_space<vmem>>, vector<64x128xf32>
    tpu.vector_store %arg10[%c0_6, %c0_7], %7 {strides = array<i32>} : memref<64x128xf32, #tpu.memory_space<vmem>>, vector<64x128xf32>,
    %c0_i32_8 = arith.constant 0 : i32
    %9 = arith.cmpi eq, %arg2, %c0_i32_8 : i32
    %10 = arith.extui %9 : i1 to i32
    %c0_i32_9 = arith.constant 0 : i32
    %11 = arith.cmpi ne, %10, %c0_i32_9 : i32
    scf.if %11 {
      %c0_10 = arith.constant 0 : index
      %c0_11 = arith.constant 0 : index
      %12 = vector.load %arg10[%c0_10, %c0_11] : memref<64x128xf32, #tpu.memory_space<vmem>>, vector<64x128xf32>
      %c0_12 = arith.constant 0 : index
      %c0_13 = arith.constant 0 : index
      %13 = vector.load %arg5[%c0_12, %c0_13] : memref<1x128xf32, #tpu.memory_space<vmem>>, vector<1x128xf32>
      %14 = vector.broadcast %13 : vector<1x128xf32> to vector<64x128xf32>
      %15 = arith.mulf %12, %14 : vector<64x128xf32>
      %c0_14 = arith.constant 0 : index
      %c0_15 = arith.constant 0 : index
      %16 = vector.load %arg6[%c0_14, %c0_15] : memref<1x128xf32, #tpu.memory_space<vmem>>, vector<1x128xf32>
      %17 = vector.broadcast %16 : vector<1x128xf32> to vector<64x128xf32>
      %18 = arith.addf %15, %17 : vector<64x128xf32>
      %19 = arith.truncf %18 : vector<64x128xf32> to vector<64x128xbf16>
      %c0_16 = arith.constant 0 : index
      %c0_17 = arith.constant 0 : index
      %20 = vector.load %arg7[%c0_16, %c0_17] : memref<64x128xbf16, #tpu.memory_space<vmem>>, vector<64x128xbf16>
      tpu.vector_store %arg7[%c0_16, %c0_17], %19 {strides = array<i32>} : memref<64x128xbf16, #tpu.memory_space<vmem>>, vector<64x128xbf16>,
      %cst_18 = arith.constant 0.000000e+00 : f32
      %21 = vector.broadcast %cst_18 : f32 to vector<8x128xf32>
      %c0_19 = arith.constant 0 : index
      %c0_20 = arith.constant 0 : index
      %22 = vector.load %arg8[%c0_19, %c0_20] : memref<8x128xf32, #tpu.memory_space<vmem>>, vector<8x128xf32>
      tpu.vector_store %arg8[%c0_19, %c0_20], %21 {strides = array<i32>} : memref<8x128xf32, #tpu.memory_space<vmem>>, vector<8x128xf32>,
      %cst_21 = arith.constant 0.000000e+00 : f32
      %23 = vector.broadcast %cst_21 : f32 to vector<8x128xf32>
      %c0_22 = arith.constant 0 : index
      %c0_23 = arith.constant 0 : index
      %24 = vector.load %arg9[%c0_22, %c0_23] : memref<8x128xf32, #tpu.memory_space<vmem>>, vector<8x128xf32>
      tpu.vector_store %arg9[%c0_22, %c0_23], %23 {strides = array<i32>} : memref<8x128xf32, #tpu.memory_space<vmem>>, vector<8x128xf32>,
      %cst_24 = arith.constant dense<0.000000e+00> : vector<128xf32>
      %25 = vector.multi_reduction <add>, %12, %cst_24 [0] : vector<64x128xf32> to vector<128xf32>
      %26 = vector.shape_cast %25 : vector<128xf32> to vector<1x128xf32>
      %c0_25 = arith.constant 0 : index
      %c0_26 = arith.constant 0 : index
      %27 = vector.load %arg8[%c0_25, %c0_26] : memref<8x128xf32, #tpu.memory_space<vmem>>, vector<1x128xf32>
      tpu.vector_store %arg8[%c0_25, %c0_26], %26 {strides = array<i32>} : memref<8x128xf32, #tpu.memory_space<vmem>>, vector<1x128xf32>,
      %28 = arith.mulf %12, %12 : vector<64x128xf32>
      %cst_27 = arith.constant dense<0.000000e+00> : vector<128xf32>
      %29 = vector.multi_reduction <add>, %28, %cst_27 [0] : vector<64x128xf32> to vector<128xf32>
      %30 = vector.shape_cast %29 : vector<128xf32> to vector<1x128xf32>
      %c0_28 = arith.constant 0 : index
      %c0_29 = arith.constant 0 : index
      %31 = vector.load %arg9[%c0_28, %c0_29] : memref<8x128xf32, #tpu.memory_space<vmem>>, vector<1x128xf32>
      tpu.vector_store %arg9[%c0_28, %c0_29], %30 {strides = array<i32>} : memref<8x128xf32, #tpu.memory_space<vmem>>, vector<1x128xf32>,
    } else {
    }
    return
  }
  func.func @transform_0(%arg0: i32, %arg1: i32, %arg2: i32) -> (i32, i32) {
    %c0_i32 = arith.constant 0 : i32
    return %arg0, %arg2 : i32, i32
  }
  func.func @transform_1(%arg0: i32, %arg1: i32, %arg2: i32) -> (i32, i32) {
    %c0_i32 = arith.constant 0 : i32
    return %arg2, %arg1 : i32, i32
  }
  func.func @transform_2(%arg0: i32, %arg1: i32, %arg2: i32) -> (i32, i32) {
    %c0_i32 = arith.constant 0 : i32
    %c0_i32_0 = arith.constant 0 : i32
    return %c0_i32, %arg1 : i32, i32
  }
  func.func @transform_3(%arg0: i32, %arg1: i32, %arg2: i32) -> (i32, i32) {
    %c0_i32 = arith.constant 0 : i32
    %c0_i32_0 = arith.constant 0 : i32
    return %c0_i32, %arg1 : i32, i32
  }
  func.func @transform_4(%arg0: i32, %arg1: i32, %arg2: i32) -> (i32, i32) {
    %c0_i32 = arith.constant 0 : i32
    return %arg0, %arg1 : i32, i32
  }
  func.func @transform_5(%arg0: i32, %arg1: i32, %arg2: i32) -> (i32, i32) {
    %c0_i32 = arith.constant 0 : i32
    return %arg0, %arg1 : i32, i32
  }
  func.func @transform_6(%arg0: i32, %arg1: i32, %arg2: i32) -> (i32, i32) {
    %c0_i32 = arith.constant 0 : i32
    return %arg0, %arg1 : i32, i32
  }
}

module attributes {stable_mosaic.version = 11 : i64} {
  func.func @_affine_act_kernel(%arg0: i32, %arg1: memref<64x128xbf16, #tpu.memory_space<vmem>>, %arg2: memref<1x128xf32, #tpu.memory_space<vmem>>, %arg3: memref<1x128xf32, #tpu.memory_space<vmem>>, %arg4: memref<64x128xbf16, #tpu.memory_space<vmem>>) attributes {dimension_semantics = [#tpu.dimension_semantics<parallel>], iteration_bounds = array<i64: 1>, scalar_prefetch = 0 : i64, scratch_operands = 0 : i64, tpu.core_type = #tpu.core_type<tc>, window_params = [{transform_indices = @transform_0, window_bounds = array<i64: 64, 128>}, {pipeline_mode = #tpu.pipeline_mode<synchronous>, transform_indices = @transform_1, window_bounds = array<i64: 1, 128>}, {pipeline_mode = #tpu.pipeline_mode<synchronous>, transform_indices = @transform_2, window_bounds = array<i64: 1, 128>}, {transform_indices = @transform_3, window_bounds = array<i64: 64, 128>}]} {
    %c0 = arith.constant 0 : index
    %c0_0 = arith.constant 0 : index
    %0 = vector.load %arg1[%c0, %c0_0] : memref<64x128xbf16, #tpu.memory_space<vmem>>, vector<64x128xbf16>
    %1 = arith.extf %0 : vector<64x128xbf16> to vector<64x128xf32>
    %c0_1 = arith.constant 0 : index
    %c0_2 = arith.constant 0 : index
    %2 = vector.load %arg2[%c0_1, %c0_2] : memref<1x128xf32, #tpu.memory_space<vmem>>, vector<1x128xf32>
    %3 = vector.broadcast %2 : vector<1x128xf32> to vector<64x128xf32>
    %4 = arith.mulf %1, %3 : vector<64x128xf32>
    %c0_3 = arith.constant 0 : index
    %c0_4 = arith.constant 0 : index
    %5 = vector.load %arg3[%c0_3, %c0_4] : memref<1x128xf32, #tpu.memory_space<vmem>>, vector<1x128xf32>
    %6 = vector.broadcast %5 : vector<1x128xf32> to vector<64x128xf32>
    %7 = arith.addf %4, %6 : vector<64x128xf32>
    %cst = arith.constant 0.000000e+00 : f32
    %8 = vector.broadcast %cst : f32 to vector<64x128xf32>
    %9 = arith.cmpf oge, %7, %8 : vector<64x128xf32>
    %cst_5 = arith.constant 0.00999999977 : f32
    %10 = vector.broadcast %cst_5 : f32 to vector<64x128xf32>
    %11 = arith.mulf %10, %7 : vector<64x128xf32>
    %12 = arith.select %9, %7, %11 : vector<64x128xi1>, vector<64x128xf32>
    %13 = arith.truncf %12 : vector<64x128xf32> to vector<64x128xbf16>
    %c0_6 = arith.constant 0 : index
    %c0_7 = arith.constant 0 : index
    %14 = vector.load %arg4[%c0_6, %c0_7] : memref<64x128xbf16, #tpu.memory_space<vmem>>, vector<64x128xbf16>
    tpu.vector_store %arg4[%c0_6, %c0_7], %13 {strides = array<i32>} : memref<64x128xbf16, #tpu.memory_space<vmem>>, vector<64x128xbf16>,
    return
  }
  func.func @transform_0(%arg0: i32) -> (i32, i32) {
    %c0_i32 = arith.constant 0 : i32
    %c0_i32_0 = arith.constant 0 : i32
    return %arg0, %c0_i32 : i32, i32
  }
  func.func @transform_1(%arg0: i32) -> (i32, i32) {
    %c0_i32 = arith.constant 0 : i32
    %c0_i32_0 = arith.constant 0 : i32
    %c0_i32_1 = arith.constant 0 : i32
    return %c0_i32, %c0_i32_0 : i32, i32
  }
  func.func @transform_2(%arg0: i32) -> (i32, i32) {
    %c0_i32 = arith.constant 0 : i32
    %c0_i32_0 = arith.constant 0 : i32
    %c0_i32_1 = arith.constant 0 : i32
    return %c0_i32, %c0_i32_0 : i32, i32
  }
  func.func @transform_3(%arg0: i32) -> (i32, i32) {
    %c0_i32 = arith.constant 0 : i32
    %c0_i32_0 = arith.constant 0 : i32
    return %arg0, %c0_i32 : i32, i32
  }
}

module attributes {stable_mosaic.version = 11 : i64} {
  func.func @_matmul_fused_kernel(%arg0: i32, %arg1: i32, %arg2: i32, %arg3: memref<512x256xbf16, #tpu.memory_space<vmem>>, %arg4: memref<256x128xbf16, #tpu.memory_space<vmem>>, %arg5: memref<1x128xf32, #tpu.memory_space<vmem>>, %arg6: memref<1x128xf32, #tpu.memory_space<vmem>>, %arg7: memref<512x128xf32, #tpu.memory_space<vmem>>, %arg8: memref<512x128xf32, #tpu.memory_space<vmem>>) attributes {dimension_semantics = [#tpu.dimension_semantics<parallel>, #tpu.dimension_semantics<parallel>, #tpu.dimension_semantics<arbitrary>], iteration_bounds = array<i64: 2, 1, 1>, scalar_prefetch = 0 : i64, scratch_operands = 1 : i64, tpu.core_type = #tpu.core_type<tc>, window_params = [{transform_indices = @transform_0, window_bounds = array<i64: 512, 256>}, {transform_indices = @transform_1, window_bounds = array<i64: 256, 128>}, {transform_indices = @transform_2, window_bounds = array<i64: 1, 128>}, {transform_indices = @transform_3, window_bounds = array<i64: 1, 128>}, {transform_indices = @transform_4, window_bounds = array<i64: 512, 128>}]} {
    %c0_i32 = arith.constant 0 : i32
    %0 = arith.cmpi eq, %arg2, %c0_i32 : i32
    %1 = arith.extui %0 : i1 to i32
    %c0_i32_0 = arith.constant 0 : i32
    %2 = arith.cmpi ne, %1, %c0_i32_0 : i32
    scf.if %2 {
      %cst_10 = arith.constant 0.000000e+00 : f32
      %12 = vector.broadcast %cst_10 : f32 to vector<512x128xf32>
      %c0_11 = arith.constant 0 : index
      %c0_12 = arith.constant 0 : index
      %13 = vector.load %arg8[%c0_11, %c0_12] : memref<512x128xf32, #tpu.memory_space<vmem>>, vector<512x128xf32>
      tpu.vector_store %arg8[%c0_11, %c0_12], %12 {strides = array<i32>} : memref<512x128xf32, #tpu.memory_space<vmem>>, vector<512x128xf32>,
    } else {
    }
    %c0 = arith.constant 0 : index
    %c0_1 = arith.constant 0 : index
    %3 = vector.load %arg8[%c0, %c0_1] : memref<512x128xf32, #tpu.memory_space<vmem>>, vector<512x128xf32>
    %c0_2 = arith.constant 0 : index
    %c0_3 = arith.constant 0 : index
    %4 = vector.load %arg3[%c0_2, %c0_3] : memref<512x256xbf16, #tpu.memory_space<vmem>>, vector<512x256xbf16>
    %c0_4 = arith.constant 0 : index
    %c0_5 = arith.constant 0 : index
    %5 = vector.load %arg4[%c0_4, %c0_5] : memref<256x128xbf16, #tpu.memory_space<vmem>>, vector<256x128xbf16>
    %cst = arith.constant dense<0.000000e+00> : vector<512x128xf32>
    %6 = tpu.matmul %4, %5, %cst {dimension_numbers = #tpu.dot_dimension_numbers<[1], [0], [0], [1], [0, 0, 1, 1], [], []>} : vector<512x256xbf16>, vector<256x128xbf16>, vector<512x128xf32> -> vector<512x128xf32>
    %7 = arith.addf %3, %6 : vector<512x128xf32>
    %c0_6 = arith.constant 0 : index
    %c0_7 = arith.constant 0 : index
    %8 = vector.load %arg8[%c0_6, %c0_7] : memref<512x128xf32, #tpu.memory_space<vmem>>, vector<512x128xf32>
    tpu.vector_store %arg8[%c0_6, %c0_7], %7 {strides = array<i32>} : memref<512x128xf32, #tpu.memory_space<vmem>>, vector<512x128xf32>,
    %c0_i32_8 = arith.constant 0 : i32
    %9 = arith.cmpi eq, %arg2, %c0_i32_8 : i32
    %10 = arith.extui %9 : i1 to i32
    %c0_i32_9 = arith.constant 0 : i32
    %11 = arith.cmpi ne, %10, %c0_i32_9 : i32
    scf.if %11 {
      %c0_10 = arith.constant 0 : index
      %c0_11 = arith.constant 0 : index
      %12 = vector.load %arg8[%c0_10, %c0_11] : memref<512x128xf32, #tpu.memory_space<vmem>>, vector<512x128xf32>
      %c0_12 = arith.constant 0 : index
      %c0_13 = arith.constant 0 : index
      %13 = vector.load %arg5[%c0_12, %c0_13] : memref<1x128xf32, #tpu.memory_space<vmem>>, vector<1x128xf32>
      %14 = vector.broadcast %13 : vector<1x128xf32> to vector<512x128xf32>
      %15 = arith.mulf %12, %14 : vector<512x128xf32>
      %c0_14 = arith.constant 0 : index
      %c0_15 = arith.constant 0 : index
      %16 = vector.load %arg6[%c0_14, %c0_15] : memref<1x128xf32, #tpu.memory_space<vmem>>, vector<1x128xf32>
      %17 = vector.broadcast %16 : vector<1x128xf32> to vector<512x128xf32>
      %18 = arith.addf %15, %17 : vector<512x128xf32>
      %19 = math.tanh %18 : vector<512x128xf32>
      %c0_16 = arith.constant 0 : index
      %c0_17 = arith.constant 0 : index
      %20 = vector.load %arg7[%c0_16, %c0_17] : memref<512x128xf32, #tpu.memory_space<vmem>>, vector<512x128xf32>
      tpu.vector_store %arg7[%c0_16, %c0_17], %19 {strides = array<i32>} : memref<512x128xf32, #tpu.memory_space<vmem>>, vector<512x128xf32>,
    } else {
    }
    return
  }
  func.func @transform_0(%arg0: i32, %arg1: i32, %arg2: i32) -> (i32, i32) {
    %c0_i32 = arith.constant 0 : i32
    return %arg0, %arg2 : i32, i32
  }
  func.func @transform_1(%arg0: i32, %arg1: i32, %arg2: i32) -> (i32, i32) {
    %c0_i32 = arith.constant 0 : i32
    return %arg2, %arg1 : i32, i32
  }
  func.func @transform_2(%arg0: i32, %arg1: i32, %arg2: i32) -> (i32, i32) {
    %c0_i32 = arith.constant 0 : i32
    %c0_i32_0 = arith.constant 0 : i32
    return %c0_i32, %arg1 : i32, i32
  }
  func.func @transform_3(%arg0: i32, %arg1: i32, %arg2: i32) -> (i32, i32) {
    %c0_i32 = arith.constant 0 : i32
    %c0_i32_0 = arith.constant 0 : i32
    return %c0_i32, %arg1 : i32, i32
  }
  func.func @transform_4(%arg0: i32, %arg1: i32, %arg2: i32) -> (i32, i32) {
    %c0_i32 = arith.constant 0 : i32
    return %arg0, %arg1 : i32, i32
  }
}

</mosaic_0001>

<bundles_post_ra>
// kernel: tile.43
= control target key start
LH: loop header
LB: loop body
LE: loop exit
PB: predicated region body
PF: predicated region fallthrough
CT: control target
= control target key end

     0   :  { %s28_s0 = inlined_call_operand.vmem [shape: f32[8], index: 0, kind: input, shape index: {}]   ;;  %s29_s1 = inlined_call_operand.vmem [shape: f32[16,8], index: 1, kind: output, shape index: {}]  }
   0x1   :  { %v4_v0 = vld [vmem:[%s28_s0] ss:$0 sm:$0xff] }
   0x2   :  { %5 = vst [vmem:[%s29_s1] sm:$0xff] %v4_v0  ;;  %8 = vst [vmem:[%s29_s1 + $0x8] sm:$0xff] %v4_v0 }

// kernel: tile.48
= control target key start
LH: loop header
LB: loop body
LE: loop exit
PB: predicated region body
PF: predicated region fallthrough
CT: control target
= control target key end

     0   :  { %s131_s10 = smov 120   ;;  %s132_s11 = smov 104   ;;  %vm3_vm0 = vcmask 64512   ;;  %vm9_vm1 = vcmask 1048512   ;;  %vm15_vm2 = vcmask 982912   ;;  %vm21_vm3 = vcmask 917312   ;;  %s207_s0 = inlined_call_operand.vmem [shape: f32[16,8], index: 0, kind: input, shape index: {}]   ;;  %s208_s1 = inlined_call_operand.vmem [shape: f32[1,128], index: 1, kind: output, shape index: {}]  }
   0x1   :  { %v101_v0 = vld [vmem:[%s207_s0 + $0xf] sm:$0x1]   ;;  %v103_v1 = vld [vmem:[%s207_s0 + $0xd] sm:$0x1]   ;;  %v102_v2 = vld [vmem:[%s207_s0 + $0xe] sm:$0x1]  }
   0x2   :  { %7 = vrot.lane.b32.xlu0 %v101_v0, %s131_s10  ;;  %19 = vrot.lane.b32.xlu1 %v103_v1, %s132_s11  ;;  %v104_v3 = vld [vmem:[%s207_s0 + $0xc] sm:$0x1]   ;;  %s133_s16 = smov 112   ;;  %s134_s17 = smov 96   ;;  %v105_v4 = vld [vmem:[%s207_s0 + $0xb] sm:$0x1]  }
   0x3   :  { %v106_v5 = vld [vmem:[%s207_s0 + $0xa] sm:$0x1]   ;;  %v2_v6 = vld [vmem:[%s207_s0] sm:$0x1]   ;;  %s135_s24 = smov 88   ;;  %s136_s25 = smov 80  }
   0x4   :  { %4 = vst.msk [vmem:[#allocation0] sm:$0x1] %vm3_vm0, %v2_v6   ;;  %v107_v7 = vld [vmem:[%s207_s0 + $0x9] sm:$0x1]   ;;  %v108_v8 = vld [vmem:[%s207_s0 + $0x8] sm:$0x1]  }
   0x5   :  { %s137_s30 = smov 72   ;;  %s138_s2 = smov 64   ;;  %v109_v9 = vld [vmem:[%s207_s0 + $0x7] sm:$0x1]   ;;  %v110_v10 = vld [vmem:[%s207_s0 + $0x6] sm:$0x1]  }
   0x6   :  { %13 = vrot.lane.b32.xlu0 %v102_v2, %s133_s16  ;;  %25 = vrot.lane.b32.xlu1 %v104_v3, %s134_s17  ;;  %s139_s7 = smov 56   ;;  %s140_s8 = smov 48   ;;  %v111_v11 = vld [vmem:[%s207_s0 + $0x5] sm:$0x1]   ;;  %v112_v12 = vld [vmem:[%s207_s0 + $0x4] sm:$0x1]  }
   0x7   :  { %s141_s13 = smov 40   ;;  %s142_s14 = smov 32   ;;  %v113_v13 = vld [vmem:[%s207_s0 + $0x3] sm:$0x1]   ;;  %v114_v14 = vld [vmem:[%s207_s0 + $0x2] sm:$0x1]  }
   0x8   :  { %s143_s19 = smov 24   ;;  %s144_s20 = smov 16   ;;  %v115_v15 = vld [vmem:[%s207_s0 + $0x1] sm:$0x1]   ;;  %vm27_vm4 = vcmask 851712   ;;  %vm33_vm5 = vcmask 786112  }
   0x9   :  { %s145_s0 = smov 8   ;;  %vm39_vm6 = vcmask 720512   ;;  %vm45_vm7 = vcmask 654912   ;;  %vm51_vm8 = vcmask 589312   ;;  %vm57_vm9 = vcmask 523712  }
   0xa   :  { %31 = vrot.lane.b32.xlu0 %v105_v4, %s135_s24  ;;  %37 = vrot.lane.b32.xlu1 %v106_v5, %s136_s25  ;;  %vm63_vm10 = vcmask 458112   ;;  %vm69_vm11 = vcmask 392512   ;;  %vm75_vm12 = vcmask 326912   ;;  %vm81_vm13 = vcmask 261312  }
   0xb   :  { %vm87_vm14 = vcmask 195712   ;;  %vm93_vm15 = vcmask 130112  }
   0xe   :  { %43 = vrot.lane.b32.xlu0 %v107_v7, %s137_s30  ;;  %49 = vrot.lane.b32.xlu1 %v108_v8, %s138_s2 }
  0x12   :  { %55 = vrot.lane.b32.xlu0 %v109_v9, %s139_s7  ;;  %61 = vrot.lane.b32.xlu1 %v110_v10, %s140_s8 }
  0x16   :  { %67 = vrot.lane.b32.xlu0 %v111_v11, %s141_s13  ;;  %73 = vrot.lane.b32.xlu1 %v112_v12, %s142_s14 }
  0x1a   :  { %79 = vrot.lane.b32.xlu0 %v113_v13, %s143_s19  ;;  %85 = vrot.lane.b32.xlu1 %v114_v14, %s144_s20 }
  0x1e   :  { %91 = vrot.lane.b32.xlu0 %v115_v15, %s145_s0 }
  0x74   :  { %v8_v16 = vpop.permute.xlu0 %7   ;;  %v20_v17 = vpop.permute.xlu1 %19  }
  0x75   :  { %10 = vst.msk [vmem:[#allocation0] sm:$0x1] %vm9_vm1, %v8_v16  }
  0x78   :  { %v14_v18 = vpop.permute.xlu0 %13   ;;  %v26_v19 = vpop.permute.xlu1 %25  }
  0x79   :  { %16 = vst.msk [vmem:[#allocation0] sm:$0x1] %vm15_vm2, %v14_v18  }
  0x7a   :  { %22 = vst.msk [vmem:[#allocation0] sm:$0x1] %vm21_vm3, %v20_v17  }
  0x7b   :  { %28 = vst.msk [vmem:[#allocation0] sm:$0x1] %vm27_vm4, %v26_v19  }
  0x7c   :  { %v32_v20 = vpop.permute.xlu0 %31   ;;  %v38_v21 = vpop.permute.xlu1 %37  }
  0x7d   :  { %34 = vst.msk [vmem:[#allocation0] sm:$0x1] %vm33_vm5, %v32_v20  }
  0x7e   :  { %40 = vst.msk [vmem:[#allocation0] sm:$0x1] %vm39_vm6, %v38_v21  }
  0x80   :  { %v44_v22 = vpop.permute.xlu0 %43   ;;  %v50_v23 = vpop.permute.xlu1 %49  }
  0x81   :  { %46 = vst.msk [vmem:[#allocation0] sm:$0x1] %vm45_vm7, %v44_v22  }
  0x82   :  { %52 = vst.msk [vmem:[#allocation0] sm:$0x1] %vm51_vm8, %v50_v23  }
  0x84   :  { %v56_v24 = vpop.permute.xlu0 %55   ;;  %v62_v25 = vpop.permute.xlu1 %61  }
  0x85   :  { %58 = vst.msk [vmem:[#allocation0] sm:$0x1] %vm57_vm9, %v56_v24  }
  0x86   :  { %64 = vst.msk [vmem:[#allocation0] sm:$0x1] %vm63_vm10, %v62_v25  }
  0x88   :  { %v68_v26 = vpop.permute.xlu0 %67   ;;  %v74_v27 = vpop.permute.xlu1 %73  }
  0x89   :  { %70 = vst.msk [vmem:[#allocation0] sm:$0x1] %vm69_vm11, %v68_v26  }
  0x8a   :  { %76 = vst.msk [vmem:[#allocation0] sm:$0x1] %vm75_vm12, %v74_v27  }
  0x8c   :  { %v80_v28 = vpop.permute.xlu0 %79   ;;  %v86_v29 = vpop.permute.xlu1 %85  }
  0x8d   :  { %82 = vst.msk [vmem:[#allocation0] sm:$0x1] %vm81_vm13, %v80_v28  }
  0x8e   :  { %88 = vst.msk [vmem:[#allocation0] sm:$0x1] %vm87_vm14, %v86_v29  }
  0x90   :  { %v92_v30 = vpop.permute.xlu0 %91  }
  0x91   :  { %94 = vst.msk [vmem:[#allocation0] sm:$0x1] %vm93_vm15, %v92_v30  }
  0x98   :  { %v98_v31 = vld [vmem:[#allocation0] sm:$0x1] }
  0x99   :  { %100 = vst [vmem:[%s208_s1] sm:$0x1] %v98_v31 }

// kernel: vae_forward.18
= control target key start
LH: loop header
LB: loop body
LE: loop exit
PB: predicated region body
PF: predicated region fallthrough
CT: control target
= control target key end

     0   :  { %s103_s0 = inlined_call_operand.vmem [shape: bf16[16,128], index: 0, kind: input, shape index: {}]   ;;  %s104_s1 = inlined_call_operand.vmem [shape: f32[1,128], index: 1, kind: input, shape index: {}]   ;;  %s105_s2 = inlined_call_operand.vmem [shape: f32[1,128], index: 2, kind: input, shape index: {}]   ;;  %s106_s3 = inlined_call_operand.vmem [shape: bf16[16,128], index: 3, kind: output, shape index: {}]  }
   0x1   :  { %v63_v0 = vld [vmem:[%s103_s0] sm:$0xff]  }
   0x2   :  { %v56_v1 = vld [vmem:[%s104_s1] ss:$0 sm:$0xff]  ;;  %v64_v2 = vunpack.c.l.bf16 %v63_v0  ;;  %v65_v3 = vunpack.c.h.bf16 %v63_v0 }
   0x3   :  { %v57_v4 = vld [vmem:[%s105_s2] ss:$0 sm:$0xff] }
   0x4   :  { %v25_v5 = vmul.f32 %v64_v2, %v56_v1  ;;  %v26_v6 = vmul.f32 %v65_v3, %v56_v1 }
   0x6   :  { %v34_v7 = vadd.f32 %v57_v4, %v25_v5  ;;  %v35_v8 = vadd.f32 %v57_v4, %v26_v6 }
   0x8   :  { %vm36_vm0 = vcmp.ge.f32.partialorder %v34_v7, 0.0  ;;  %vm37_vm1 = vcmp.ge.f32.partialorder %v35_v8, 0.0  ;;  %v38_v9 = vmul.f32 0.01, %v34_v7  ;;  %v39_v10 = vmul.f32 0.01, %v35_v8 }
   0xa   :  { %v40_v11 = vsel %vm36_vm0, %v34_v7, %v38_v9  ;;  %v41_v12 = vsel %vm37_vm1, %v35_v8, %v39_v10 }
   0xb   :  { %v69_v13 = vpack.c.bf16 %v41_v12, %v40_v11 }
   0xd   :  { %70 = vst [vmem:[%s106_s3] sm:$0xff] %v69_v13  }

// kernel: vae_forward.17
= control target key start
LH: loop header
LB: loop body
LE: loop exit
PB: predicated region body
PF: predicated region fallthrough
CT: control target
= control target key end

     0   :  { %v1199_v24 = vmov 0.0   ;;  %s1537_s1 = inlined_call_operand.vmem [shape: bf16[128,128], index: 1, kind: input, shape index: {}]   ;;  %s1538_s0 = inlined_call_operand.vmem [shape: bf16[256,128], index: 0, kind: input, shape index: {}]   ;;  %s1539_s5 = inlined_call_operand.vmem [shape: f32[8,128], index: 5, kind: output, shape index: {1}]   ;;  %s1540_s6 = inlined_call_operand.vmem [shape: f32[8,128], index: 6, kind: output, shape index: {2}]   ;;  %s1541_s2 = inlined_call_operand.vmem [shape: f32[1,128], index: 2, kind: input, shape index: {}]   ;;  %s1542_s3 = inlined_call_operand.vmem [shape: f32[1,128], index: 3, kind: input, shape index: {}]   ;;  %s1543_s4 = inlined_call_operand.vmem [shape: bf16[256,128], index: 4, kind: output, shape index: {0}]  }
   0x1   :  { %v1175_v0 = vld [vmem:[%s1537_s1] sm:$0xff]   ;;  %v1176_v1 = vld [vmem:[%s1537_s1 + $0x8] sm:$0xff]   ;;  %v1177_v2 = vld [vmem:[%s1537_s1 + $0x10] sm:$0xff]   ;;  %779 = vst [vmem:[%s1539_s5] sm:$0xff] %v1199_v24 }
   0x2   :  { %1110 = vmatprep.subr.bf16.mxu0 %v1175_v0  ;;  %1158 = vmatprep.subr.bf16.mxu1 %v1175_v0  ;;  %v1178_v3 = vld [vmem:[%s1537_s1 + $0x18] sm:$0xff]   ;;  %v1183_v4 = vld [vmem:[%s1538_s0] sm:$0xff]   ;;  %v1180_v6 = vld [vmem:[%s1537_s1 + $0x28] sm:$0xff]   ;;  %780 = vst [vmem:[%s1540_s6] sm:$0xff] %v1199_v24 }
   0x3   :  { %1111 = vmatpush3.bf16.msra.mxu0 %v1175_v0  ;;  %1166 = vmatpush3.bf16.msra.mxu1 %v1175_v0  ;;  %v1179_v5 = vld [vmem:[%s1537_s1 + $0x20] sm:$0xff]   ;;  %v1181_v8 = vld [vmem:[%s1537_s1 + $0x30] sm:$0xff]   ;;  %v1182_v9 = vld [vmem:[%s1537_s1 + $0x38] sm:$0xff]  }
   0x4   :  { %1112 = vmatprep.subr.bf16.mxu0 %v1176_v1  ;;  %1159 = vmatprep.subr.bf16.mxu1 %v1176_v1  ;;  %v1191_v7 = vld [vmem:[%s1538_s0 + $0x40] sm:$0xff]   ;;  %v1184_v10 = vld [vmem:[%s1538_s0 + $0x8] sm:$0xff]   ;;  %v1185_v12 = vld [vmem:[%s1538_s0 + $0x10] sm:$0xff]  }
   0x5   :  { %1126 = vmatprep.mubr.bf16.mxu0 %v1183_v4  ;;  %1142 = vmatprep.mubr.bf16.mxu1 %v1191_v7  ;;  %v1192_v11 = vld [vmem:[%s1538_s0 + $0x48] sm:$0xff]   ;;  %v1193_v13 = vld [vmem:[%s1538_s0 + $0x50] sm:$0xff]   ;;  %v1186_v14 = vld [vmem:[%s1538_s0 + $0x18] sm:$0xff]  }
   0x6   :  { %v1194_v15 = vld [vmem:[%s1538_s0 + $0x58] sm:$0xff]   ;;  %v1187_v16 = vld [vmem:[%s1538_s0 + $0x20] sm:$0xff]   ;;  %v1188_v18 = vld [vmem:[%s1538_s0 + $0x28] sm:$0xff]  }
   0x7   :  { %1113 = vmatpush3.bf16.msra.mxu0 %v1176_v1  ;;  %1167 = vmatpush3.bf16.msra.mxu1 %v1176_v1  ;;  %v1195_v17 = vld [vmem:[%s1538_s0 + $0x60] sm:$0xff]   ;;  %v1196_v19 = vld [vmem:[%s1538_s0 + $0x68] sm:$0xff]   ;;  %v1189_v20 = vld [vmem:[%s1538_s0 + $0x30] sm:$0xff]  }
   0x8   :  { %1114 = vmatprep.subr.bf16.mxu0 %v1177_v2  ;;  %1160 = vmatprep.subr.bf16.mxu1 %v1177_v2  ;;  %v1197_v21 = vld [vmem:[%s1538_s0 + $0x70] sm:$0xff]   ;;  %v1190_v22 = vld [vmem:[%s1538_s0 + $0x38] sm:$0xff]   ;;  %v1316_v25 = vld [vmem:[%s1541_s2] ss:$0 sm:$0xff] }
   0x9   :  { %v1198_v23 = vld [vmem:[%s1538_s0 + $0x78] sm:$0xff]   ;;  %v1324_v29 = vld [vmem:[%s1542_s3] ss:$0 sm:$0xff] }
   0xb   :  { %1115 = vmatpush3.bf16.msra.mxu0 %v1177_v2  ;;  %1168 = vmatpush3.bf16.msra.mxu1 %v1177_v2 }
   0xc   :  { %1116 = vmatprep.subr.bf16.mxu0 %v1178_v3  ;;  %1161 = vmatprep.subr.bf16.mxu1 %v1178_v3 }
   0xf   :  { %1117 = vmatpush3.bf16.msra.mxu0 %v1178_v3  ;;  %1169 = vmatpush3.bf16.msra.mxu1 %v1178_v3 }
  0x10   :  { %1118 = vmatprep.subr.bf16.mxu0 %v1179_v5  ;;  %1162 = vmatprep.subr.bf16.mxu1 %v1179_v5 }
  0x13   :  { %1119 = vmatpush3.bf16.msra.mxu0 %v1179_v5  ;;  %1170 = vmatpush3.bf16.msra.mxu1 %v1179_v5 }
  0x14   :  { %1120 = vmatprep.subr.bf16.mxu0 %v1180_v6  ;;  %1163 = vmatprep.subr.bf16.mxu1 %v1180_v6 }
  0x17   :  { %1121 = vmatpush3.bf16.msra.mxu0 %v1180_v6  ;;  %1171 = vmatpush3.bf16.msra.mxu1 %v1180_v6 }
  0x18   :  { %1122 = vmatprep.subr.bf16.mxu0 %v1181_v8  ;;  %1164 = vmatprep.subr.bf16.mxu1 %v1181_v8 }
  0x1b   :  { %1123 = vmatpush3.bf16.msra.mxu0 %v1181_v8  ;;  %1172 = vmatpush3.bf16.msra.mxu1 %v1181_v8 }
  0x1c   :  { %1124 = vmatprep.subr.bf16.mxu0 %v1182_v9  ;;  %1165 = vmatprep.subr.bf16.mxu1 %v1182_v9 }
  0x1f   :  { %1125 = vmatpush3.bf16.msra.mxu0 %v1182_v9  ;;  %1173 = vmatpush3.bf16.msra.mxu1 %v1182_v9 }
  0x22   :  { %1127 = vmatmul.mubr.bf16.vlgmr.msra.gmra.mrb[0].mxu0 %v1184_v10  ;;  %1143 = vmatmul.mubr.bf16.vlgmr.msra.gmra.mrb[0].mxu1 %v1192_v11 }
  0x23   :  { %1130 = vmatprep.mubr.bf16.mxu0 %v1185_v12  ;;  %1146 = vmatprep.mubr.bf16.mxu1 %v1193_v13 }
  0x2a   :  { %1131 = vmatmul.mubr.bf16.gmra.mrb[4].mxu0 %v1186_v14  ;;  %1147 = vmatmul.mubr.bf16.gmra.mrb[4].mxu1 %v1194_v15 }
  0x2b   :  { %1134 = vmatprep.mubr.bf16.mxu0 %v1187_v16  ;;  %1150 = vmatprep.mubr.bf16.mxu1 %v1195_v17 }
  0x32   :  { %1135 = vmatmul.mubr.bf16.gmra.mrb[8].mxu0 %v1188_v18  ;;  %1151 = vmatmul.mubr.bf16.gmra.mrb[8].mxu1 %v1196_v19 }
  0x33   :  { %1138 = vmatprep.mubr.bf16.mxu0 %v1189_v20  ;;  %1154 = vmatprep.mubr.bf16.mxu1 %v1197_v21 }
  0x3a   :  { %1139 = vmatmul.mubr.bf16.gmra.mrb[12].mxu0 %v1190_v22  ;;  %1155 = vmatmul.mubr.bf16.gmra.mrb[12].mxu1 %v1198_v23 }
  0xf5   :  { %v1128_v26 = vpop.f32.mrb[0].mxu0  ;;  %v1318_v27 = vpop.f32.mrb[0].mxu1 }
  0xf6   :  { %v550_v28 = vmul.f32 %v1128_v26, %v1316_v25  ;;  %v315_v30 = vpop.f32.mrb[1].mxu0  ;;  %v566_v31 = vmul.f32 %v1318_v27, %v1316_v25  ;;  %v1328_v32 = vpop.f32.mrb[1].mxu1  ;;  %v821_v36 = vmul.f32 %v1128_v26, %v1128_v26 }
  0xf7   :  { %v548_v33 = vmul.f32 %v1316_v25, %v315_v30  ;;  %v1129_v34 = vpop.f32.mrb[2].mxu0  ;;  %v1331_v35 = vpop.f32.mrb[2].mxu1  ;;  %v819_v37 = vmul.f32 %v315_v30, %v315_v30  ;;  %v564_v40 = vmul.f32 %v1316_v25, %v1328_v32 }
  0xf8   :  { %v551_v38 = vmul.f32 %v1129_v34, %v1316_v25  ;;  %v318_v39 = vpop.f32.mrb[3].mxu0  ;;  %v1336_v41 = vpop.f32.mrb[3].mxu1  ;;  %v589_v42 = vadd.f32 %v1324_v29, %v550_v28  ;;  %v605_v48 = vadd.f32 %v1324_v29, %v566_v31  ;;  %v567_v49 = vmul.f32 %v1331_v35, %v1316_v25 }
  0xf9   :  { %v549_v43 = vmul.f32 %v1316_v25, %v318_v39  ;;  %v781_v44 = vadd.f32 %v318_v39, %v315_v30  ;;  %v820_v45 = vmul.f32 %v318_v39, %v318_v39  ;;  %v587_v46 = vadd.f32 %v1324_v29, %v548_v33 }
  0xfa   :  { %v590_v47 = vadd.f32 %v1324_v29, %v551_v38  ;;  %v565_v53 = vmul.f32 %v1316_v25, %v1336_v41  ;;  %v822_v55 = vmul.f32 %v1129_v34, %v1129_v34  ;;  %v603_v56 = vadd.f32 %v1324_v29, %v564_v40 }
  0xfb   :  { %v588_v50 = vadd.f32 %v1324_v29, %v549_v43  ;;  %v782_v51 = vadd.f32 %v1128_v26, %v781_v44  ;;  %v851_v52 = vadd.f32 %v820_v45, %v819_v37  ;;  %v606_v57 = vadd.f32 %v1324_v29, %v567_v49 }
  0xfc   :  { %v999_v54 = vpack.c.bf16 %v590_v47, %v589_v42  ;;  %v604_v62 = vadd.f32 %v1324_v29, %v565_v53 }
  0xfd   :  { %v994_v58 = vpack.c.bf16 %v588_v50, %v587_v46  ;;  %v852_v59 = vadd.f32 %v851_v52, %v821_v36  ;;  %v1132_v60 = vpop.f32.mrb[4].mxu0  ;;  %v783_v61 = vadd.f32 %v1129_v34, %v782_v51  ;;  %v1351_v63 = vpop.f32.mrb[4].mxu1  ;;  %v1039_v2 = vpack.c.bf16 %v606_v57, %v605_v48 }
  0xfe   :  { %1071 = vst [vmem:[%s1543_s4 + $0x8] sm:$0xff] %v999_v54   ;;  %v554_v0 = vmul.f32 %v1132_v60, %v1316_v25  ;;  %v331_v1 = vpop.f32.mrb[5].mxu0  ;;  %v1357_v3 = vpop.f32.mrb[5].mxu1  ;;  %v1034_v12 = vpack.c.bf16 %v604_v62, %v603_v56  ;;  %v570_v17 = vmul.f32 %v1351_v63, %v1316_v25  ;;  %v825_v19 = vmul.f32 %v1132_v60, %v1132_v60 }
  0xff   :  { %995 = vst [vmem:[%s1543_s4] sm:$0xff] %v994_v58   ;;  %v552_v4 = vmul.f32 %v1316_v25, %v331_v1  ;;  %v784_v5 = vadd.f32 %v783_v61, %v331_v1  ;;  %v823_v6 = vmul.f32 %v331_v1, %v331_v1  ;;  %v853_v7 = vadd.f32 %v852_v59, %v822_v55  ;;  %v1133_v8 = vpop.f32.mrb[6].mxu0  ;;  %v1363_v9 = vpop.f32.mrb[6].mxu1 }
 0x100   :  { %v555_v10 = vmul.f32 %v1133_v8, %v1316_v25  ;;  %v334_v11 = vpop.f32.mrb[7].mxu0  ;;  %1079 = vst [vmem:[%s1543_s4 + $0x48] sm:$0xff] %v1039_v2   ;;  %v1369_v13 = vpop.f32.mrb[7].mxu1  ;;  %v593_v18 = vadd.f32 %v1324_v29, %v554_v0  ;;  %1078 = vst [vmem:[%s1543_s4 + $0x40] sm:$0xff] %v1034_v12   ;;  %v568_v26 = vmul.f32 %v1316_v25, %v1357_v3 }
 0x101   :  { %v854_v14 = vadd.f32 %v853_v7, %v823_v6  ;;  %v553_v15 = vmul.f32 %v1316_v25, %v334_v11  ;;  %v785_v16 = vadd.f32 %v784_v5, %v334_v11  ;;  %v824_v21 = vmul.f32 %v334_v11, %v334_v11 }
 0x102   :  { %v594_v20 = vadd.f32 %v1324_v29, %v555_v10  ;;  %v591_v22 = vadd.f32 %v1324_v29, %v552_v4  ;;  %v826_v30 = vmul.f32 %v1133_v8, %v1133_v8  ;;  %v571_v33 = vmul.f32 %v1363_v9, %v1316_v25 }
 0x103   :  { %v592_v23 = vadd.f32 %v1324_v29, %v553_v15  ;;  %v786_v24 = vadd.f32 %v1132_v60, %v785_v16  ;;  %v855_v31 = vadd.f32 %v854_v14, %v824_v21  ;;  %v609_v38 = vadd.f32 %v1324_v29, %v570_v17 }
 0x104   :  { %v1009_v28 = vpack.c.bf16 %v594_v20, %v593_v18  ;;  %v569_v39 = vmul.f32 %v1316_v25, %v1369_v13  ;;  %v607_v45 = vadd.f32 %v1324_v29, %v568_v26  ;;  %v610_v46 = vadd.f32 %v1324_v29, %v571_v33 }
 0x105   :  { %v1004_v34 = vpack.c.bf16 %v592_v23, %v591_v22  ;;  %v1136_v36 = vpop.f32.mrb[8].mxu0  ;;  %v787_v37 = vadd.f32 %v1133_v8, %v786_v24  ;;  %v1388_v40 = vpop.f32.mrb[8].mxu1  ;;  %v856_v42 = vadd.f32 %v855_v31, %v825_v19 }
 0x106   :  { %1073 = vst [vmem:[%s1543_s4 + $0x18] sm:$0xff] %v1009_v28   ;;  %v558_v43 = vmul.f32 %v1136_v36, %v1316_v25  ;;  %v347_v44 = vpop.f32.mrb[9].mxu0  ;;  %v1396_v47 = vpop.f32.mrb[9].mxu1  ;;  %v608_v52 = vadd.f32 %v1324_v29, %v569_v39  ;;  %v1049_v1 = vpack.c.bf16 %v610_v46, %v609_v38  ;;  %v829_v7 = vmul.f32 %v1136_v36, %v1136_v36 }
 0x107   :  { %1072 = vst [vmem:[%s1543_s4 + $0x10] sm:$0xff] %v1004_v34   ;;  %v556_v48 = vmul.f32 %v1316_v25, %v347_v44  ;;  %v788_v49 = vadd.f32 %v787_v37, %v347_v44  ;;  %v827_v50 = vmul.f32 %v347_v44, %v347_v44  ;;  %v1137_v51 = vpop.f32.mrb[10].mxu0  ;;  %v1403_v53 = vpop.f32.mrb[10].mxu1  ;;  %v857_v54 = vadd.f32 %v856_v42, %v826_v30 }
 0x108   :  { %v559_v55 = vmul.f32 %v1137_v51, %v1316_v25  ;;  %v350_v56 = vpop.f32.mrb[11].mxu0  ;;  %v1406_v57 = vpop.f32.mrb[11].mxu1  ;;  %v597_v58 = vadd.f32 %v1324_v29, %v558_v43  ;;  %v1044_v2 = vpack.c.bf16 %v608_v52, %v607_v45  ;;  %1081 = vst [vmem:[%s1543_s4 + $0x58] sm:$0xff] %v1049_v1   ;;  %v574_v11 = vmul.f32 %v1388_v40, %v1316_v25 }
 0x109   :  { %v557_v59 = vmul.f32 %v1316_v25, %v350_v56  ;;  %v789_v60 = vadd.f32 %v788_v49, %v350_v56  ;;  %v828_v61 = vmul.f32 %v350_v56, %v350_v56  ;;  %v858_v62 = vadd.f32 %v857_v54, %v827_v50 }
 0x10a   :  { %v598_v0 = vadd.f32 %v1324_v29, %v559_v55  ;;  %v595_v4 = vadd.f32 %v1324_v29, %v556_v48  ;;  %1080 = vst [vmem:[%s1543_s4 + $0x50] sm:$0xff] %v1044_v2   ;;  %v572_v16 = vmul.f32 %v1316_v25, %v1396_v47  ;;  %v830_v18 = vmul.f32 %v1137_v51, %v1137_v51 }
 0x10b   :  { %v596_v5 = vadd.f32 %v1324_v29, %v557_v59  ;;  %v790_v6 = vadd.f32 %v1136_v36, %v789_v60  ;;  %v859_v10 = vadd.f32 %v858_v62, %v828_v61  ;;  %v575_v30 = vmul.f32 %v1403_v53, %v1316_v25 }
 0x10c   :  { %v1019_v8 = vpack.c.bf16 %v598_v0, %v597_v58  ;;  %v613_v38 = vadd.f32 %v1324_v29, %v574_v11  ;;  %v611_v45 = vadd.f32 %v1324_v29, %v572_v16  ;;  %v573_v55 = vmul.f32 %v1316_v25, %v1406_v57 }
 0x10d   :  { %v1014_v12 = vpack.c.bf16 %v596_v5, %v595_v4  ;;  %v1140_v14 = vpop.f32.mrb[12].mxu0  ;;  %v791_v15 = vadd.f32 %v1137_v51, %v790_v6  ;;  %v1423_v17 = vpop.f32.mrb[12].mxu1  ;;  %v860_v19 = vadd.f32 %v859_v10, %v829_v7  ;;  %v614_v50 = vadd.f32 %v1324_v29, %v575_v30 }
 0x10e   :  { %1075 = vst [vmem:[%s1543_s4 + $0x28] sm:$0xff] %v1019_v8   ;;  %v562_v20 = vmul.f32 %v1140_v14, %v1316_v25  ;;  %v363_v21 = vpop.f32.mrb[13].mxu0  ;;  %v1429_v22 = vpop.f32.mrb[13].mxu1  ;;  %v833_v33 = vmul.f32 %v1140_v14, %v1140_v14  ;;  %v578_v60 = vmul.f32 %v1423_v17, %v1316_v25  ;;  %v612_v0 = vadd.f32 %v1324_v29, %v573_v55 }
 0x10f   :  { %1074 = vst [vmem:[%s1543_s4 + $0x20] sm:$0xff] %v1014_v12   ;;  %v560_v23 = vmul.f32 %v1316_v25, %v363_v21  ;;  %v792_v24 = vadd.f32 %v791_v15, %v363_v21  ;;  %v831_v26 = vmul.f32 %v363_v21, %v363_v21  ;;  %v1141_v28 = vpop.f32.mrb[14].mxu0  ;;  %v1437_v31 = vpop.f32.mrb[14].mxu1  ;;  %v861_v34 = vadd.f32 %v860_v19, %v830_v18 }
 0x110   :  { %v563_v36 = vmul.f32 %v1141_v28, %v1316_v25  ;;  %v366_v37 = vpop.f32.mrb[15].mxu0  ;;  %v1441_v39 = vpop.f32.mrb[15].mxu1  ;;  %v601_v46 = vadd.f32 %v1324_v29, %v562_v20  ;;  %v1059_v59 = vpack.c.bf16 %v614_v50, %v613_v38  ;;  %v834_v1 = vmul.f32 %v1141_v28, %v1141_v28 }
 0x111   :  { %v561_v42 = vmul.f32 %v1316_v25, %v366_v37  ;;  %v793_v43 = vadd.f32 %v792_v24, %v366_v37  ;;  %v832_v44 = vmul.f32 %v366_v37, %v366_v37  ;;  %v862_v48 = vadd.f32 %v861_v34, %v831_v26 }
 0x112   :  { %v602_v49 = vadd.f32 %v1324_v29, %v563_v36  ;;  %v599_v51 = vadd.f32 %v1324_v29, %v560_v23  ;;  %v835_v4 = vmul.f32 %v1328_v32, %v1328_v32  ;;  %1083 = vst [vmem:[%s1543_s4 + $0x68] sm:$0xff] %v1059_v59   ;;  %v576_v5 = vmul.f32 %v1316_v25, %v1429_v22 }
 0x113   :  { %v600_v52 = vadd.f32 %v1324_v29, %v561_v42  ;;  %v794_v54 = vadd.f32 %v1140_v14, %v793_v43  ;;  %v863_v58 = vadd.f32 %v862_v48, %v832_v44  ;;  %v1054_v7 = vpack.c.bf16 %v612_v0, %v611_v45 }
 0x114   :  { %v1029_v56 = vpack.c.bf16 %v602_v49, %v601_v46  ;;  %v617_v8 = vadd.f32 %v1324_v29, %v578_v60  ;;  %v579_v10 = vmul.f32 %v1437_v31, %v1316_v25  ;;  %v615_v12 = vadd.f32 %v1324_v29, %v576_v5 }
 0x115   :  { %v1024_v61 = vpack.c.bf16 %v600_v52, %v599_v51  ;;  %v795_v62 = vadd.f32 %v1141_v28, %v794_v54  ;;  %v864_v2 = vadd.f32 %v863_v58, %v833_v33  ;;  %v577_v14 = vmul.f32 %v1316_v25, %v1441_v39  ;;  %1082 = vst [vmem:[%s1543_s4 + $0x60] sm:$0xff] %v1054_v7  }
 0x116   :  { %1077 = vst [vmem:[%s1543_s4 + $0x38] sm:$0xff] %v1029_v56   ;;  %v836_v18 = vmul.f32 %v1336_v41, %v1336_v41  ;;  %v837_v25 = vmul.f32 %v1318_v27, %v1318_v27  ;;  %v838_v28 = vmul.f32 %v1331_v35, %v1331_v35  ;;  %v840_v36 = vmul.f32 %v1369_v13, %v1369_v13 }
 0x117   :  { %1076 = vst [vmem:[%s1543_s4 + $0x30] sm:$0xff] %v1024_v61   ;;  %v796_v6 = vadd.f32 %v795_v62, %v1328_v32  ;;  %v865_v11 = vadd.f32 %v864_v2, %v834_v1  ;;  %v618_v32 = vadd.f32 %v1324_v29, %v579_v10  ;;  %v616_v19 = vadd.f32 %v1324_v29, %v577_v14 }
 0x118   :  { %v839_v29 = vmul.f32 %v1357_v3, %v1357_v3  ;;  %v842_v43 = vmul.f32 %v1363_v9, %v1363_v9  ;;  %v844_v49 = vmul.f32 %v1406_v57, %v1406_v57  ;;  %v845_v50 = vmul.f32 %v1388_v40, %v1388_v40 }
 0x119   :  { %v797_v15 = vadd.f32 %v796_v6, %v1336_v41  ;;  %v866_v16 = vadd.f32 %v865_v11, %v835_v4  ;;  %v1069_v21 = vpack.c.bf16 %v618_v32, %v617_v8  ;;  %v1064_v24 = vpack.c.bf16 %v616_v19, %v615_v12 }
 0x11a   :  { %v846_v52 = vmul.f32 %v1403_v53, %v1403_v53  ;;  %v848_v59 = vmul.f32 %v1441_v39, %v1441_v39  ;;  %v849_v60 = vmul.f32 %v1423_v17, %v1423_v17  ;;  %v850_v62 = vmul.f32 %v1437_v31, %v1437_v31 }
 0x11b   :  { %v798_v20 = vadd.f32 %v1318_v27, %v797_v15  ;;  %v867_v23 = vadd.f32 %v866_v16, %v836_v18  ;;  %1085 = vst [vmem:[%s1543_s4 + $0x78] sm:$0xff] %v1069_v21   ;;  %1084 = vst [vmem:[%s1543_s4 + $0x70] sm:$0xff] %v1064_v24  }
 0x11d   :  { %v799_v26 = vadd.f32 %v1331_v35, %v798_v20  ;;  %v868_v41 = vadd.f32 %v867_v23, %v837_v25  ;;  %v841_v35 = vmul.f32 %v1351_v63, %v1351_v63 }
 0x11f   :  { %v800_v27 = vadd.f32 %v799_v26, %v1357_v3  ;;  %v869_v30 = vadd.f32 %v868_v41, %v838_v28  ;;  %v843_v3 = vmul.f32 %v1396_v47, %v1396_v47 }
 0x121   :  { %v801_v33 = vadd.f32 %v800_v27, %v1369_v13  ;;  %v870_v34 = vadd.f32 %v869_v30, %v839_v29 }
 0x123   :  { %v802_v37 = vadd.f32 %v1351_v63, %v801_v33  ;;  %v871_v38 = vadd.f32 %v870_v34, %v840_v36 }
 0x125   :  { %v803_v42 = vadd.f32 %v1363_v9, %v802_v37  ;;  %v872_v44 = vadd.f32 %v871_v38, %v841_v35 }
 0x127   :  { %v804_v45 = vadd.f32 %v803_v42, %v1396_v47  ;;  %v873_v46 = vadd.f32 %v872_v44, %v842_v43  ;;  %v847_v47 = vmul.f32 %v1429_v22, %v1429_v22 }
 0x129   :  { %v805_v13 = vadd.f32 %v804_v45, %v1406_v57  ;;  %v874_v48 = vadd.f32 %v873_v46, %v843_v3 }
 0x12b   :  { %v806_v63 = vadd.f32 %v1388_v40, %v805_v13  ;;  %v875_v51 = vadd.f32 %v874_v48, %v844_v49 }
 0x12d   :  { %v807_v9 = vadd.f32 %v1403_v53, %v806_v63  ;;  %v876_v54 = vadd.f32 %v875_v51, %v845_v50 }
 0x12f   :  { %v808_v55 = vadd.f32 %v807_v9, %v1429_v22  ;;  %v877_v56 = vadd.f32 %v876_v54, %v846_v52 }
 0x131   :  { %v809_v57 = vadd.f32 %v808_v55, %v1441_v39  ;;  %v878_v58 = vadd.f32 %v877_v56, %v847_v47 }
 0x133   :  { %v810_v40 = vadd.f32 %v1423_v17, %v809_v57  ;;  %v879_v61 = vadd.f32 %v878_v58, %v848_v59 }
 0x135   :  { %v811_v53 = vadd.f32 %v1437_v31, %v810_v40  ;;  %v880_v0 = vadd.f32 %v879_v61, %v849_v60 }
 0x137   :  { %v812_v22 = vrot.slane %v811_v53, 4  ;;  %v881_v1 = vadd.f32 %v880_v0, %v850_v62 }
 0x139   :  { %v813_v2 = vadd.f32 %v812_v22, %v811_v53  ;;  %v882_v4 = vrot.slane %v881_v1, 4 }
 0x13b   :  { %v814_v5 = vrot.slane %v813_v2, 2  ;;  %v883_v6 = vadd.f32 %v882_v4, %v881_v1 }
 0x13d   :  { %v815_v7 = vadd.f32 %v814_v5, %v813_v2  ;;  %v884_v39 = vrot.slane %v883_v6, 2 }
 0x13f   :  { %v816_v8 = vrot.slane %v815_v7, 1  ;;  %v885_v10 = vadd.f32 %v884_v39, %v883_v6 }
 0x141   :  { %v817_v11 = vadd.f32 %v816_v8, %v815_v7  ;;  %v886_v12 = vrot.slane %v885_v10, 1 }
 0x143   :  { %818 = vst [vmem:[%s1539_s5] sm:$0x1] %v817_v11  ;;  %v887_v17 = vadd.f32 %v886_v12, %v885_v10 }
 0x145   :  { %888 = vst [vmem:[%s1540_s6] sm:$0x1] %v887_v17 }

// kernel: vae_forward.19
= control target key start
LH: loop header
LB: loop body
LE: loop exit
PB: predicated region body
PF: predicated region fallthrough
CT: control target
= control target key end

     0   :  { %v579_v24 = vmov 0.0   ;;  %s717_s1 = inlined_call_operand.vmem [shape: bf16[256,128], index: 1, kind: input, shape index: {}]   ;;  %s718_s0 = inlined_call_operand.vmem [shape: bf16[64,256], index: 0, kind: input, shape index: {}]   ;;  %s719_s5 = inlined_call_operand.vmem [shape: f32[8,128], index: 5, kind: output, shape index: {1}]   ;;  %s720_s6 = inlined_call_operand.vmem [shape: f32[8,128], index: 6, kind: output, shape index: {2}]   ;;  %s721_s2 = inlined_call_operand.vmem [shape: f32[1,128], index: 2, kind: input, shape index: {}]   ;;  %s722_s3 = inlined_call_operand.vmem [shape: f32[1,128], index: 3, kind: input, shape index: {}]   ;;  %s723_s4 = inlined_call_operand.vmem [shape: bf16[64,128], index: 4, kind: output, shape index: {0}]  }
   0x1   :  { %v551_v0 = vld [vmem:[%s717_s1 + $0x40] sm:$0xff]   ;;  %v553_v2 = vld [vmem:[%s717_s1 + $0x48] sm:$0xff]   ;;  %v555_v4 = vld [vmem:[%s717_s1 + $0x50] sm:$0xff]   ;;  %379 = vst [vmem:[%s719_s5] sm:$0xff] %v579_v24 }
   0x2   :  { %v552_v1 = vld [vmem:[%s717_s1] sm:$0xff]   ;;  %494 = vmatprep.subr.bf16.mxu0 %v551_v0  ;;  %534 = vmatprep.subr.bf16.mxu1 %v551_v0  ;;  %v554_v3 = vld [vmem:[%s717_s1 + $0x8] sm:$0xff]   ;;  %v556_v5 = vld [vmem:[%s717_s1 + $0x10] sm:$0xff]   ;;  %380 = vst [vmem:[%s720_s6] sm:$0xff] %v579_v24 }
   0x3   :  { %495 = vmatpush3.bf16.msra.mxu0 %v552_v1  ;;  %542 = vmatpush3.bf16.msra.mxu1 %v552_v1  ;;  %v557_v6 = vld [vmem:[%s717_s1 + $0x58] sm:$0xff]   ;;  %v559_v8 = vld [vmem:[%s717_s1 + $0x60] sm:$0xff]   ;;  %v561_v10 = vld [vmem:[%s717_s1 + $0x68] sm:$0xff]  }
   0x4   :  { %496 = vmatprep.subr.bf16.mxu0 %v553_v2  ;;  %535 = vmatprep.subr.bf16.mxu1 %v553_v2  ;;  %v558_v7 = vld [vmem:[%s717_s1 + $0x18] sm:$0xff]   ;;  %v560_v9 = vld [vmem:[%s717_s1 + $0x20] sm:$0xff]   ;;  %v562_v13 = vld [vmem:[%s717_s1 + $0x28] sm:$0xff]  }
   0x5   :  { %v569_v11 = vld [vmem:[%s718_s0 + $0x4] ss:$8 sps:$4 sm:$0xff]   ;;  %v563_v14 = vld [vmem:[%s717_s1 + $0x70] sm:$0xff]   ;;  %v565_v16 = vld [vmem:[%s717_s1 + $0x78] sm:$0xff]  }
   0x6   :  { %v572_v12 = vld [vmem:[%s718_s0 + $0x24] ss:$8 sps:$4 sm:$0xff]   ;;  %249 = vmatprep.mubr.bf16.mxu0 %v569_v11  ;;  %v564_v15 = vld [vmem:[%s717_s1 + $0x30] sm:$0xff]   ;;  %v566_v17 = vld [vmem:[%s717_s1 + $0x38] sm:$0xff]  }
   0x7   :  { %497 = vmatpush3.bf16.msra.mxu0 %v554_v3  ;;  %543 = vmatpush3.bf16.msra.mxu1 %v554_v3  ;;  %v567_v18 = vld [vmem:[%s718_s0] ss:$8 sps:$4 sm:$0xff]   ;;  %v573_v20 = vld [vmem:[%s718_s0 + $0x14] ss:$8 sps:$4 sm:$0xff]   ;;  %v575_v22 = vld [vmem:[%s718_s0 + $0x10] ss:$8 sps:$4 sm:$0xff]  }
   0x8   :  { %498 = vmatprep.subr.bf16.mxu0 %v555_v4  ;;  %536 = vmatprep.subr.bf16.mxu1 %v555_v4  ;;  %v570_v19 = vld [vmem:[%s718_s0 + $0x20] ss:$8 sps:$4 sm:$0xff]   ;;  %v576_v21 = vld [vmem:[%s718_s0 + $0x34] ss:$8 sps:$4 sm:$0xff]   ;;  %v578_v23 = vld [vmem:[%s718_s0 + $0x30] ss:$8 sps:$4 sm:$0xff]  }
   0x9   :  { %265 = vmatprep.mubr.bf16.mxu1 %v572_v12  ;;  %v453_v28 = vld [vmem:[%s721_s2] ss:$0 sm:$0xff] }
   0xa   :  { %v454_v39 = vld [vmem:[%s722_s3] ss:$0 sm:$0xff] }
   0xb   :  { %499 = vmatpush3.bf16.msra.mxu0 %v556_v5  ;;  %544 = vmatpush3.bf16.msra.mxu1 %v556_v5 }
   0xc   :  { %500 = vmatprep.subr.bf16.mxu0 %v557_v6  ;;  %537 = vmatprep.subr.bf16.mxu1 %v557_v6 }
   0xf   :  { %501 = vmatpush3.bf16.msra.mxu0 %v558_v7  ;;  %545 = vmatpush3.bf16.msra.mxu1 %v558_v7 }
  0x10   :  { %502 = vmatprep.subr.bf16.mxu0 %v559_v8  ;;  %538 = vmatprep.subr.bf16.mxu1 %v559_v8 }
  0x13   :  { %503 = vmatpush3.bf16.msra.mxu0 %v560_v9  ;;  %546 = vmatpush3.bf16.msra.mxu1 %v560_v9 }
  0x14   :  { %504 = vmatprep.subr.bf16.mxu0 %v561_v10  ;;  %539 = vmatprep.subr.bf16.mxu1 %v561_v10 }
  0x17   :  { %505 = vmatpush3.bf16.msra.mxu0 %v562_v13  ;;  %547 = vmatpush3.bf16.msra.mxu1 %v562_v13 }
  0x18   :  { %506 = vmatprep.subr.bf16.mxu0 %v563_v14  ;;  %540 = vmatprep.subr.bf16.mxu1 %v563_v14 }
  0x1b   :  { %507 = vmatpush3.bf16.msra.mxu0 %v564_v15  ;;  %548 = vmatpush3.bf16.msra.mxu1 %v564_v15 }
  0x1c   :  { %508 = vmatprep.subr.bf16.mxu0 %v565_v16  ;;  %541 = vmatprep.subr.bf16.mxu1 %v565_v16 }
  0x1f   :  { %509 = vmatpush3.bf16.msra.mxu0 %v566_v17  ;;  %549 = vmatpush3.bf16.msra.mxu1 %v566_v17 }
  0x22   :  { %250 = vmatmul.mubr.bf16.vlgmr.msra.gmra.mrb[0].mxu0 %v567_v18  ;;  %266 = vmatmul.mubr.bf16.vlgmr.msra.gmra.mrb[0].mxu1 %v570_v19 }
  0x23   :  { %257 = vmatprep.mubr.bf16.mxu0 %v573_v20  ;;  %273 = vmatprep.mubr.bf16.mxu1 %v576_v21 }
  0x2a   :  { %258 = vmatmul.mubr.bf16.gmra.mrb[4].mxu0 %v575_v22  ;;  %274 = vmatmul.mubr.bf16.gmra.mrb[4].mxu1 %v578_v23 }
  0xf5   :  { %v510_v25 = vpop.f32.mrb[0].mxu0  ;;  %v522_v26 = vpop.f32.mrb[0].mxu1 }
  0xf6   :  { %v511_v27 = vpop.f32.mrb[1].mxu0  ;;  %v523_v29 = vpop.f32.mrb[1].mxu1 }
  0xf7   :  { %v512_v30 = vadd.f32 %v511_v27, %v510_v25  ;;  %v513_v31 = vpop.f32.mrb[2].mxu0  ;;  %v524_v32 = vadd.f32 %v523_v29, %v522_v26  ;;  %v525_v33 = vpop.f32.mrb[2].mxu1 }
  0xf8   :  { %v514_v34 = vpop.f32.mrb[3].mxu0  ;;  %v526_v35 = vpop.f32.mrb[3].mxu1 }
  0xf9   :  { %v316_v36 = vmul.f32 %v512_v30, %v453_v28  ;;  %v515_v37 = vadd.f32 %v514_v34, %v513_v31  ;;  %v320_v38 = vmul.f32 %v524_v32, %v453_v28  ;;  %v527_v40 = vadd.f32 %v526_v35, %v525_v33 }
  0xfa   :  { %v395_v41 = vmul.f32 %v512_v30, %v512_v30  ;;  %v399_v14 = vmul.f32 %v524_v32, %v524_v32 }
  0xfb   :  { %v317_v42 = vmul.f32 %v515_v37, %v453_v28  ;;  %v381_v43 = vadd.f32 %v515_v37, %v512_v30  ;;  %v396_v44 = vmul.f32 %v515_v37, %v515_v37  ;;  %v335_v45 = vadd.f32 %v454_v39, %v320_v38 }
  0xfc   :  { %v321_v46 = vmul.f32 %v527_v40, %v453_v28  ;;  %v331_v47 = vadd.f32 %v454_v39, %v316_v36  ;;  %v400_v19 = vmul.f32 %v527_v40, %v527_v40 }
  0xfd   :  { %v332_v48 = vadd.f32 %v454_v39, %v317_v42  ;;  %v403_v49 = vadd.f32 %v396_v44, %v395_v41  ;;  %v516_v50 = vpop.f32.mrb[4].mxu0  ;;  %v528_v51 = vpop.f32.mrb[4].mxu1 }
  0xfe   :  { %v336_v52 = vadd.f32 %v454_v39, %v321_v46  ;;  %v517_v53 = vpop.f32.mrb[5].mxu0  ;;  %v529_v54 = vpop.f32.mrb[5].mxu1 }
  0xff   :  { %v474_v55 = vpack.c.bf16 %v332_v48, %v331_v47  ;;  %v518_v56 = vadd.f32 %v517_v53, %v516_v50  ;;  %v519_v57 = vpop.f32.mrb[6].mxu0  ;;  %v530_v58 = vadd.f32 %v529_v54, %v528_v51  ;;  %v531_v59 = vpop.f32.mrb[6].mxu1 }
 0x100   :  { %v484_v60 = vpack.c.bf16 %v336_v52, %v335_v45  ;;  %v520_v61 = vpop.f32.mrb[7].mxu0  ;;  %v532_v62 = vpop.f32.mrb[7].mxu1 }
 0x101   :  { %475 = vst [vmem:[%s723_s4] sm:$0xff] %v474_v55   ;;  %v318_v63 = vmul.f32 %v518_v56, %v453_v28  ;;  %v382_v0 = vadd.f32 %v518_v56, %v381_v43  ;;  %v397_v1 = vmul.f32 %v518_v56, %v518_v56  ;;  %v521_v2 = vadd.f32 %v520_v61, %v519_v57 }
 0x102   :  { %492 = vst [vmem:[%s723_s4 + $0x10] sm:$0xff] %v484_v60   ;;  %v322_v3 = vmul.f32 %v530_v58, %v453_v28  ;;  %v533_v4 = vadd.f32 %v532_v62, %v531_v59  ;;  %v401_v21 = vmul.f32 %v530_v58, %v530_v58 }
 0x103   :  { %v404_v5 = vadd.f32 %v403_v49, %v397_v1  ;;  %v319_v6 = vmul.f32 %v521_v2, %v453_v28  ;;  %v383_v7 = vadd.f32 %v521_v2, %v382_v0  ;;  %v398_v8 = vmul.f32 %v521_v2, %v521_v2 }
 0x104   :  { %v337_v9 = vadd.f32 %v454_v39, %v322_v3  ;;  %v323_v10 = vmul.f32 %v533_v4, %v453_v28  ;;  %v333_v11 = vadd.f32 %v454_v39, %v318_v63  ;;  %v402_v27 = vmul.f32 %v533_v4, %v533_v4 }
 0x105   :  { %v334_v12 = vadd.f32 %v454_v39, %v319_v6  ;;  %v384_v13 = vadd.f32 %v524_v32, %v383_v7  ;;  %v405_v15 = vadd.f32 %v404_v5, %v398_v8 }
 0x106   :  { %v338_v16 = vadd.f32 %v454_v39, %v323_v10 }
 0x107   :  { %v479_v17 = vpack.c.bf16 %v334_v12, %v333_v11  ;;  %v385_v18 = vadd.f32 %v527_v40, %v384_v13  ;;  %v406_v20 = vadd.f32 %v405_v15, %v399_v14 }
 0x108   :  { %v489_v22 = vpack.c.bf16 %v338_v16, %v337_v9 }
 0x109   :  { %491 = vst [vmem:[%s723_s4 + $0x8] sm:$0xff] %v479_v17   ;;  %v386_v23 = vadd.f32 %v530_v58, %v385_v18  ;;  %v407_v24 = vadd.f32 %v406_v20, %v400_v19 }
 0x10a   :  { %493 = vst [vmem:[%s723_s4 + $0x18] sm:$0xff] %v489_v22  }
 0x10b   :  { %v387_v25 = vadd.f32 %v533_v4, %v386_v23  ;;  %v408_v26 = vadd.f32 %v407_v24, %v401_v21 }
 0x10d   :  { %v388_v28 = vrot.slane %v387_v25, 4  ;;  %v409_v29 = vadd.f32 %v408_v26, %v402_v27 }
 0x10f   :  { %v389_v30 = vadd.f32 %v388_v28, %v387_v25  ;;  %v410_v31 = vrot.slane %v409_v29, 4 }
 0x111   :  { %v390_v32 = vrot.slane %v389_v30, 2  ;;  %v411_v33 = vadd.f32 %v410_v31, %v409_v29 }
 0x113   :  { %v391_v34 = vadd.f32 %v390_v32, %v389_v30  ;;  %v412_v35 = vrot.slane %v411_v33, 2 }
 0x115   :  { %v392_v36 = vrot.slane %v391_v34, 1  ;;  %v413_v37 = vadd.f32 %v412_v35, %v411_v33 }
 0x117   :  { %v393_v38 = vadd.f32 %v392_v36, %v391_v34  ;;  %v414_v39 = vrot.slane %v413_v37, 1 }
 0x119   :  { %394 = vst [vmem:[%s719_s5] sm:$0x1] %v393_v38  ;;  %v415_v40 = vadd.f32 %v414_v39, %v413_v37 }
 0x11b   :  { %416 = vst [vmem:[%s720_s6] sm:$0x1] %v415_v40 }

// kernel: tile.53
= control target key start
LH: loop header
LB: loop body
LE: loop exit
PB: predicated region body
PF: predicated region fallthrough
CT: control target
= control target key end

     0   :  { %s22_s0 = inlined_call_operand.vmem [shape: f32[16], index: 0, kind: input, shape index: {}]   ;;  %s23_s1 = inlined_call_operand.vmem [shape: f32[8,16], index: 1, kind: output, shape index: {}]  }
   0x1   :  { %v4_v0 = vld [vmem:[%s22_s0] ss:$0 sm:$0xff] }
   0x2   :  { %5 = vst [vmem:[%s23_s1] sm:$0xff] %v4_v0 }

// kernel: tile.58
= control target key start
LH: loop header
LB: loop body
LE: loop exit
PB: predicated region body
PF: predicated region fallthrough
CT: control target
= control target key end

     0   :  { %s67_s10 = smov 112   ;;  %s68_s11 = smov 80   ;;  %vm3_vm0 = vcmask 130048   ;;  %vm9_vm1 = vcmask 1048448   ;;  %vm15_vm2 = vcmask 917248   ;;  %vm21_vm3 = vcmask 786048   ;;  %s111_s0 = inlined_call_operand.vmem [shape: f32[8,16], index: 0, kind: input, shape index: {}]   ;;  %s112_s1 = inlined_call_operand.vmem [shape: f32[1,128], index: 1, kind: output, shape index: {}]  }
   0x1   :  { %v53_v0 = vld [vmem:[%s111_s0 + $0x7] sm:$0x1]   ;;  %v55_v1 = vld [vmem:[%s111_s0 + $0x5] sm:$0x1]   ;;  %v54_v2 = vld [vmem:[%s111_s0 + $0x6] sm:$0x1]  }
   0x2   :  { %7 = vrot.lane.b32.xlu0 %v53_v0, %s67_s10  ;;  %19 = vrot.lane.b32.xlu1 %v55_v1, %s68_s11  ;;  %v56_v3 = vld [vmem:[%s111_s0 + $0x4] sm:$0x1]   ;;  %v2_v4 = vld [vmem:[%s111_s0] sm:$0x1]   ;;  %s69_s18 = smov 96   ;;  %s70_s19 = smov 64  }
   0x3   :  { %4 = vst.msk [vmem:[#allocation0] sm:$0x1] %vm3_vm0, %v2_v4   ;;  %v57_v5 = vld [vmem:[%s111_s0 + $0x3] sm:$0x1]   ;;  %v58_v6 = vld [vmem:[%s111_s0 + $0x2] sm:$0x1]  }
   0x4   :  { %s71_s24 = smov 48   ;;  %s72_s25 = smov 32   ;;  %v59_v7 = vld [vmem:[%s111_s0 + $0x1] sm:$0x1]   ;;  %vm27_vm4 = vcmask 654848   ;;  %vm33_vm5 = vcmask 523648  }
   0x5   :  { %s73_s0 = smov 16   ;;  %vm39_vm6 = vcmask 392448   ;;  %vm45_vm7 = vcmask 261248  }
   0x6   :  { %13 = vrot.lane.b32.xlu0 %v54_v2, %s69_s18  ;;  %25 = vrot.lane.b32.xlu1 %v56_v3, %s70_s19 }
   0xa   :  { %31 = vrot.lane.b32.xlu0 %v57_v5, %s71_s24  ;;  %37 = vrot.lane.b32.xlu1 %v58_v6, %s72_s25 }
   0xe   :  { %43 = vrot.lane.b32.xlu0 %v59_v7, %s73_s0 }
  0x74   :  { %v8_v8 = vpop.permute.xlu0 %7   ;;  %v20_v9 = vpop.permute.xlu1 %19  }
  0x75   :  { %10 = vst.msk [vmem:[#allocation0] sm:$0x1] %vm9_vm1, %v8_v8  }
  0x78   :  { %v14_v10 = vpop.permute.xlu0 %13   ;;  %v26_v11 = vpop.permute.xlu1 %25  }
  0x79   :  { %16 = vst.msk [vmem:[#allocation0] sm:$0x1] %vm15_vm2, %v14_v10  }
  0x7a   :  { %22 = vst.msk [vmem:[#allocation0] sm:$0x1] %vm21_vm3, %v20_v9  }
  0x7b   :  { %28 = vst.msk [vmem:[#allocation0] sm:$0x1] %vm27_vm4, %v26_v11  }
  0x7c   :  { %v32_v12 = vpop.permute.xlu0 %31   ;;  %v38_v13 = vpop.permute.xlu1 %37  }
  0x7d   :  { %34 = vst.msk [vmem:[#allocation0] sm:$0x1] %vm33_vm5, %v32_v12  }
  0x7e   :  { %40 = vst.msk [vmem:[#allocation0] sm:$0x1] %vm39_vm6, %v38_v13  }
  0x80   :  { %v44_v14 = vpop.permute.xlu0 %43  }
  0x81   :  { %46 = vst.msk [vmem:[#allocation0] sm:$0x1] %vm45_vm7, %v44_v14  }
  0x88   :  { %v50_v15 = vld [vmem:[#allocation0] sm:$0x1] }
  0x89   :  { %52 = vst [vmem:[%s112_s1] sm:$0x1] %v50_v15 }

// kernel: vae_forward.20
= control target key start
LH: loop header
LB: loop body
LE: loop exit
PB: predicated region body
PF: predicated region fallthrough
CT: control target
= control target key end

     0   :  { %s75_s0 = inlined_call_operand.vmem [shape: bf16[8,128], index: 0, kind: input, shape index: {}]   ;;  %s76_s1 = inlined_call_operand.vmem [shape: f32[1,128], index: 1, kind: input, shape index: {}]   ;;  %s77_s2 = inlined_call_operand.vmem [shape: f32[1,128], index: 2, kind: input, shape index: {}]   ;;  %s78_s3 = inlined_call_operand.vmem [shape: bf16[8,128], index: 3, kind: output, shape index: {}]  }
   0x1   :  { %v14_v0 = vld [vmem:[%s75_s0] sm:$0xf] }
   0x2   :  { %v41_v1 = vld [vmem:[%s76_s1] ss:$0 sm:$0xff]  ;;  %v15_v2 = vunpack.c.l.bf16 %v14_v0 }
   0x3   :  { %v42_v3 = vld [vmem:[%s77_s2] ss:$0 sm:$0xff] }
   0x4   :  { %v23_v4 = vmul.f32 %v41_v1, %v15_v2 }
   0x6   :  { %v31_v5 = vadd.f32 %v42_v3, %v23_v4 }
   0x8   :  { %vm32_vm0 = vcmp.ge.f32.partialorder %v31_v5, 0.0  ;;  %v33_v6 = vmul.f32 0.01, %v31_v5 }
   0xa   :  { %v34_v7 = vsel %vm32_vm0, %v31_v5, %v33_v6 }
   0xb   :  { %v35_v8 = vpack.c.bf16 %v34_v7, %v34_v7 }
   0xd   :  { %36 = vst [vmem:[%s78_s3] sm:$0xf] %v35_v8 }

// kernel: vae_forward.21
= control target key start
LH: loop header
LB: loop body
LE: loop exit
PB: predicated region body
PF: predicated region fallthrough
CT: control target
= control target key end

     0   :  { %s657_s1 = inlined_call_operand.vmem [shape: bf16[512,128], index: 1, kind: input, shape index: {}]   ;;  %s658_s0 = inlined_call_operand.vmem [shape: bf16[8,512], index: 0, kind: input, shape index: {}]   ;;  %s659_s2 = inlined_call_operand.vmem [shape: f32[1,128], index: 2, kind: input, shape index: {}]   ;;  %s660_s3 = inlined_call_operand.vmem [shape: f32[1,128], index: 3, kind: input, shape index: {}]   ;;  %s661_s4 = inlined_call_operand.vmem [shape: f32[8,128], index: 4, kind: output, shape index: {}]  }
   0x1   :  { %v485_v0 = vld [vmem:[%s657_s1 + $0x40] sm:$0xff]   ;;  %v489_v4 = vld [vmem:[%s657_s1 + $0x48] sm:$0xff]   ;;  %v493_v8 = vld [vmem:[%s657_s1 + $0x50] sm:$0xff]  }
   0x2   :  { %v486_v1 = vld [vmem:[%s657_s1 + $0xc0] sm:$0xff]   ;;  %441 = vmatprep.subr.bf16.mxu0 %v485_v0  ;;  %v490_v5 = vld [vmem:[%s657_s1 + $0xc8] sm:$0xff]   ;;  %v494_v9 = vld [vmem:[%s657_s1 + $0xd0] sm:$0xff]  }
   0x3   :  { %v487_v2 = vld [vmem:[%s657_s1] sm:$0xff]   ;;  %463 = vmatprep.subr.bf16.mxu1 %v486_v1  ;;  %v491_v6 = vld [vmem:[%s657_s1 + $0x8] sm:$0xff]   ;;  %v495_v10 = vld [vmem:[%s657_s1 + $0x10] sm:$0xff]  }
   0x4   :  { %v488_v3 = vld [vmem:[%s657_s1 + $0x80] sm:$0xff]   ;;  %442 = vmatpush3.bf16.msra.mxu0 %v487_v2  ;;  %v492_v7 = vld [vmem:[%s657_s1 + $0x88] sm:$0xff]   ;;  %v496_v11 = vld [vmem:[%s657_s1 + $0x90] sm:$0xff]  }
   0x5   :  { %464 = vmatpush3.bf16.msra.mxu1 %v488_v3  ;;  %443 = vmatprep.subr.bf16.mxu0 %v489_v4  ;;  %v497_v12 = vld [vmem:[%s657_s1 + $0x58] sm:$0xff]   ;;  %v501_v16 = vld [vmem:[%s657_s1 + $0x60] sm:$0xff]   ;;  %v505_v20 = vld [vmem:[%s657_s1 + $0x68] sm:$0xff]  }
   0x6   :  { %465 = vmatprep.subr.bf16.mxu1 %v490_v5  ;;  %v498_v13 = vld [vmem:[%s657_s1 + $0xd8] sm:$0xff]   ;;  %v502_v17 = vld [vmem:[%s657_s1 + $0xe0] sm:$0xff]   ;;  %v506_v21 = vld [vmem:[%s657_s1 + $0xe8] sm:$0xff]  }
   0x7   :  { %v499_v14 = vld [vmem:[%s657_s1 + $0x18] sm:$0xff]   ;;  %v503_v18 = vld [vmem:[%s657_s1 + $0x20] sm:$0xff]   ;;  %v507_v22 = vld [vmem:[%s657_s1 + $0x28] sm:$0xff]  }
   0x8   :  { %444 = vmatpush3.bf16.msra.mxu0 %v491_v6  ;;  %v500_v15 = vld [vmem:[%s657_s1 + $0x98] sm:$0xff]   ;;  %v504_v19 = vld [vmem:[%s657_s1 + $0xa0] sm:$0xff]   ;;  %v508_v23 = vld [vmem:[%s657_s1 + $0xa8] sm:$0xff]  }
   0x9   :  { %466 = vmatpush3.bf16.msra.mxu1 %v492_v7  ;;  %445 = vmatprep.subr.bf16.mxu0 %v493_v8  ;;  %v509_v24 = vld [vmem:[%s657_s1 + $0x70] sm:$0xff]   ;;  %v513_v28 = vld [vmem:[%s657_s1 + $0x78] sm:$0xff]   ;;  %v24_v32 = vld [vmem:[%s658_s0] sm:$0xff] }
   0xa   :  { %467 = vmatprep.subr.bf16.mxu1 %v494_v9  ;;  %v510_v25 = vld [vmem:[%s657_s1 + $0xf0] sm:$0xff]   ;;  %v514_v29 = vld [vmem:[%s657_s1 + $0xf8] sm:$0xff]   ;;  %v25_v33 = vld [vmem:[%s658_s0 + $0x8] sm:$0xff]  ;;  %v403_v34 = vcombine.low %v24_v32, %v24_v32  ;;  %v404_v35 = vcombine.high %v24_v32, %v24_v32 }
   0xb   :  { %v511_v26 = vld [vmem:[%s657_s1 + $0x30] sm:$0xff]   ;;  %v515_v30 = vld [vmem:[%s657_s1 + $0x38] sm:$0xff]   ;;  %v405_v36 = vcombine.low %v25_v33, %v25_v33  ;;  %v406_v37 = vcombine.high %v25_v33, %v25_v33  ;;  %v439_v46 = vld [vmem:[%s659_s2] ss:$0 sm:$0xff] }
   0xc   :  { %446 = vmatpush3.bf16.msra.mxu0 %v495_v10  ;;  %v512_v27 = vld [vmem:[%s657_s1 + $0xb0] sm:$0xff]   ;;  %v516_v31 = vld [vmem:[%s657_s1 + $0xb8] sm:$0xff]   ;;  %328 = vmatprep.mubr.bf16.mxu0 %v404_v35  ;;  %v440_v50 = vld [vmem:[%s660_s3] ss:$0 sm:$0xff] }
   0xd   :  { %468 = vmatpush3.bf16.msra.mxu1 %v496_v11  ;;  %447 = vmatprep.subr.bf16.mxu0 %v497_v12 }
   0xe   :  { %469 = vmatprep.subr.bf16.mxu1 %v498_v13  ;;  %368 = vmatprep.mubr.bf16.mxu1 %v406_v37 }
  0x10   :  { %448 = vmatpush3.bf16.msra.mxu0 %v499_v14 }
  0x11   :  { %470 = vmatpush3.bf16.msra.mxu1 %v500_v15  ;;  %449 = vmatprep.subr.bf16.mxu0 %v501_v16 }
  0x12   :  { %471 = vmatprep.subr.bf16.mxu1 %v502_v17 }
  0x14   :  { %450 = vmatpush3.bf16.msra.mxu0 %v503_v18 }
  0x15   :  { %472 = vmatpush3.bf16.msra.mxu1 %v504_v19  ;;  %451 = vmatprep.subr.bf16.mxu0 %v505_v20 }
  0x16   :  { %473 = vmatprep.subr.bf16.mxu1 %v506_v21 }
  0x18   :  { %452 = vmatpush3.bf16.msra.mxu0 %v507_v22 }
  0x19   :  { %474 = vmatpush3.bf16.msra.mxu1 %v508_v23  ;;  %453 = vmatprep.subr.bf16.mxu0 %v509_v24 }
  0x1a   :  { %475 = vmatprep.subr.bf16.mxu1 %v510_v25 }
  0x1c   :  { %454 = vmatpush3.bf16.msra.mxu0 %v511_v26 }
  0x1d   :  { %476 = vmatpush3.bf16.msra.mxu1 %v512_v27  ;;  %455 = vmatprep.subr.bf16.mxu0 %v513_v28 }
  0x1e   :  { %477 = vmatprep.subr.bf16.mxu1 %v514_v29 }
  0x20   :  { %456 = vmatpush3.bf16.msra.mxu0 %v515_v30 }
  0x21   :  { %478 = vmatpush3.bf16.msra.mxu1 %v516_v31 }
  0x23   :  { %329 = vmatmul.mubr.bf16.vlgmr.msra.gmra.mrb[0].mxu0 %v403_v34 }
  0x24   :  { %369 = vmatmul.mubr.bf16.vlgmr.msra.gmra.mrb[0].mxu1 %v405_v36 }
  0xf6   :  { %v457_v38 = vpop.f32.mrb[0].mxu0 }
  0xf7   :  { %v479_v39 = vpop.f32.mrb[0].mxu1  ;;  %v458_v40 = vpop.f32.mrb[1].mxu0 }
  0xf8   :  { %v480_v41 = vpop.f32.mrb[1].mxu1  ;;  %v459_v42 = vadd.f32 %v458_v40, %v457_v38  ;;  %v460_v44 = vpop.f32.mrb[2].mxu0 }
  0xf9   :  { %v481_v43 = vadd.f32 %v480_v41, %v479_v39  ;;  %v482_v45 = vpop.f32.mrb[2].mxu1  ;;  %v461_v47 = vpop.f32.mrb[3].mxu0 }
  0xfa   :  { %v483_v48 = vpop.f32.mrb[3].mxu1 }
  0xfb   :  { %v371_v49 = vadd.f32 %v481_v43, %v459_v42 }
  0xfd   :  { %v389_v51 = vmul.f32 %v439_v46, %v371_v49 }
  0xff   :  { %v397_v52 = vadd.f32 %v440_v50, %v389_v51 }
 0x101   :  { %398 = vst [vmem:[%s661_s4] sm:$0xff] %v397_v52 }

// kernel: vae_forward.22
= control target key start
LH: loop header
LB: loop body
LE: loop exit
PB: predicated region body
PF: predicated region fallthrough
CT: control target
= control target key end

     0   :  { %s884_s15 = smov 0   ;;  %s886_s16 = smov 0   ;;  %s976_s0 = inlined_call_operand.vmem [shape: bf16[8,128], index: 0, kind: input, shape index: {}]   ;;  %s977_s1 = inlined_call_operand.vmem [shape: bf16[128,512], index: 1, kind: input, shape index: {}]   ;;  %s978_s2 = inlined_call_operand.vmem [shape: f32[1,512], index: 2, kind: input, shape index: {}]   ;;  %s979_s3 = inlined_call_operand.vmem [shape: f32[1,512], index: 3, kind: input, shape index: {}]   ;;  %s980_s4 = inlined_call_operand.vmem [shape: bf16[8,512], index: 4, kind: output, shape index: {}]  }
   0x1   :  { %s888_s17 = smov 0   ;;  %s890_s18 = smov 0  }
   0x2   :  { %s892_s19 = smov 0  }
   0x3 LB: > { %s29_s20 = sadd.s32 1, %s852_s18  ;;  %p77_p1 = scmp.ne.s32.totalorder %s844_s16, %s840_s15  ;;  %s856_s19 = sphi %s892_s19, %s14_s19   ;;  %s852_s18 = sphi %s890_s18, %s984_s18   ;;  %s848_s17 = sphi %s888_s17, %s983_s17   ;;  %s844_s16 = sphi %s886_s16, %s982_s16   ;;  %s840_s15 = sphi %s884_s15, %s981_s15  }
   0x4   : > { %p31_p0 = scmp.ge.s32.totalorder %s29_s20, 2  ;;  %p78_p2 = scmp.eq.s32.totalorder %s856_s19, 0 }
   0x5   : > { %s70_s22 = sadd.s32 1, %s844_s16  ;;  %p722_p5 = scmp.ge.s32.totalorder %s856_s19, 2 }
   0x6   : > { %s986_s20 = smov (%p31_p0, %s29_s20), 0  ;;  %p79_p3 = por %p78_p2, %p77_p1 }
   0x7   : > { %s66_s21 = ssub.s32 %s852_s18, %s986_s20  ;;  %193 = sbr.rel (%p722_p5) target bundleno = 26 (0x1a), region = 20 }
   0x8   : > { %p68_p4 = scmp.eq.s32.totalorder %s66_s21, 0 }
   0xa   : > { %s919_s23 = scalar_select %p68_p4, %s844_s16, %s70_s22  }
   0xe   : > { %196 = sbr.rel (!%p79_p3) target bundleno = 26 (0x1a), region = 24  ;;  %s198_s24 = sand.u32 (%p79_p3), 1, %s844_s16  }
   0xf   : > { %s751_s25 = sshll.u32 (%p79_p3), %s852_s18, 3  ;;  %s723_s26 = sshll.u32 (%p79_p3), %s198_s24, 7 }
  0x10   : > { %s927_s29 = scalar_lea.vmem (%p79_p3), %s977_s1, %s751_s25  ;;  %s200_s30 = scalar_lea.vmem (%p79_p3), [#allocation3], %s723_s26 }
  0x11   : > { %v264_v0 = vld [vmem:[%s927_s29] sm:$0xff] (%p79_p3)  ;;  %v266_v1 = vld [vmem:[%s927_s29 + $0x10] sm:$0xff] (%p79_p3) }
  0x12   : > { %v268_v2 = vld [vmem:[%s927_s29 + $0x20] sm:$0xff] (%p79_p3)  ;;  %265 = vst [vmem:[%s200_s30] sm:$0xff] (%p79_p3), %v264_v0  ;;  %267 = vst [vmem:[%s200_s30 + $0x8] sm:$0xff] (%p79_p3), %v266_v1  ;;  %v270_v3 = vld [vmem:[%s927_s29 + $0x30] sm:$0xff] (%p79_p3) }
  0x13   : > { %269 = vst [vmem:[%s200_s30 + $0x10] sm:$0xff] (%p79_p3), %v268_v2  ;;  %v272_v4 = vld [vmem:[%s927_s29 + $0x40] sm:$0xff] (%p79_p3)  ;;  %v274_v5 = vld [vmem:[%s927_s29 + $0x50] sm:$0xff] (%p79_p3)  ;;  %271 = vst [vmem:[%s200_s30 + $0x18] sm:$0xff] (%p79_p3), %v270_v3 }
  0x14   : > { %273 = vst [vmem:[%s200_s30 + $0x20] sm:$0xff] (%p79_p3), %v272_v4  ;;  %275 = vst [vmem:[%s200_s30 + $0x28] sm:$0xff] (%p79_p3), %v274_v5  ;;  %v276_v6 = vld [vmem:[%s927_s29 + $0x60] sm:$0xff] (%p79_p3)  ;;  %v278_v7 = vld [vmem:[%s927_s29 + $0x70] sm:$0xff] (%p79_p3) }
  0x15   : > { %v280_v8 = vld [vmem:[%s927_s29 + $0x80] sm:$0xff]  ;;  %277 = vst [vmem:[%s200_s30 + $0x30] sm:$0xff] %v276_v6  ;;  %279 = vst [vmem:[%s200_s30 + $0x38] sm:$0xff] %v278_v7  ;;  %v282_v9 = vld [vmem:[%s927_s29 + $0x90] sm:$0xff] }
  0x16   : > { %281 = vst [vmem:[%s200_s30 + $0x40] sm:$0xff] %v280_v8  ;;  %v284_v10 = vld [vmem:[%s927_s29 + $0xa0] sm:$0xff]  ;;  %v286_v11 = vld [vmem:[%s927_s29 + $0xb0] sm:$0xff]  ;;  %283 = vst [vmem:[%s200_s30 + $0x48] sm:$0xff] %v282_v9 }
  0x17   : > { %285 = vst [vmem:[%s200_s30 + $0x50] sm:$0xff] %v284_v10  ;;  %287 = vst [vmem:[%s200_s30 + $0x58] sm:$0xff] %v286_v11  ;;  %v288_v12 = vld [vmem:[%s927_s29 + $0xc0] sm:$0xff]  ;;  %v290_v13 = vld [vmem:[%s927_s29 + $0xd0] sm:$0xff] }
  0x18   : > { %v292_v14 = vld [vmem:[%s927_s29 + $0xe0] sm:$0xff]  ;;  %289 = vst [vmem:[%s200_s30 + $0x60] sm:$0xff] %v288_v12  ;;  %291 = vst [vmem:[%s200_s30 + $0x68] sm:$0xff] %v290_v13  ;;  %v294_v15 = vld [vmem:[%s927_s29 + $0xf0] sm:$0xff] }
  0x19   : > { %293 = vst [vmem:[%s200_s30 + $0x70] sm:$0xff] %v292_v14  ;;  %295 = vst [vmem:[%s200_s30 + $0x78] sm:$0xff] %v294_v15 }
  0x1a PF: > { %p726_p6 = scmp.ge.s32.totalorder %s856_s19, 1  ;;  %p316_p7 = scmp.lt.s32.totalorder %s856_s19, 3 }
  0x1c   : > { %p317_p8 = pnand %p726_p6, %p316_p7 }
  0x1d   : > { %s323_s5 = sand.u32 (!%p317_p8), 1, %s840_s15   ;;  %v858_v16 = vmov (!%p317_p8), 0   ;;  %v405_v33 = vld [vmem:[%s976_s0] sm:$0xf] (!%p317_p8)  ;;  %s728_s10 = sshll.u32 (!%p317_p8), %s848_s17, 1  ;;  %v554_v34 = vlaneseq (!%p317_p8) }
  0x1e   : > { %320 = sbr.rel (%p317_p8) target bundleno = 285 (0x11d), region = 70  ;;  %s727_s6 = sshll.u32 (!%p317_p8), %s323_s5, 7  ;;  %534 = vmatprep.mubr.bf16.mxu0 (!%p317_p8), %v858_v16 }
  0x1f   : > { %s325_s7 = scalar_lea.vmem (!%p317_p8), [#allocation3], %s727_s6  ;;  %p377_p9 = scmp.lt.s32.totalorder (!%p317_p8), %s728_s10, 3  ;;  %v555_v35 = vshrl.u32 (!%p317_p8), %v554_v34, 7 }
  0x20   : > { %v794_v17 = vld [vmem:[%s325_s7 + $0x4] ss:$8 sps:$4 sm:$0xff] (!%p317_p8)   ;;  %v796_v18 = vld [vmem:[%s325_s7] ss:$8 sps:$4 sm:$0xff] (!%p317_p8)   ;;  %v797_v19 = vld [vmem:[%s325_s7 + $0x14] ss:$8 sps:$4 sm:$0xff] (!%p317_p8)  }
  0x21   : > { %502 = vmatprep.subr.bf16.mxu0 (!%p317_p8), %v794_v17  ;;  %v799_v20 = vld [vmem:[%s325_s7 + $0x10] ss:$8 sps:$4 sm:$0xff] (!%p317_p8)   ;;  %v800_v21 = vld [vmem:[%s325_s7 + $0x24] ss:$8 sps:$4 sm:$0xff] (!%p317_p8)   ;;  %v802_v22 = vld [vmem:[%s325_s7 + $0x20] ss:$8 sps:$4 sm:$0xff] (!%p317_p8)  }
  0x22   : > { %503 = vmatpush1.bf16.msra.mxu0 (!%p317_p8), %v796_v18  ;;  %v803_v23 = vld [vmem:[%s325_s7 + $0x34] ss:$8 sps:$4 sm:$0xff] (!%p317_p8)   ;;  %v805_v24 = vld [vmem:[%s325_s7 + $0x30] ss:$8 sps:$4 sm:$0xff] (!%p317_p8)   ;;  %v806_v25 = vld [vmem:[%s325_s7 + $0x44] ss:$8 sps:$4 sm:$0xff] (!%p317_p8)  }
  0x23   : > { %504 = vmatprep.subr.bf16.mxu0 (!%p317_p8), %v797_v19  ;;  %v808_v26 = vld [vmem:[%s325_s7 + $0x40] ss:$8 sps:$4 sm:$0xff] (!%p317_p8)   ;;  %v809_v27 = vld [vmem:[%s325_s7 + $0x54] ss:$8 sps:$4 sm:$0xff] (!%p317_p8)   ;;  %v811_v28 = vld [vmem:[%s325_s7 + $0x50] ss:$8 sps:$4 sm:$0xff] (!%p317_p8)  }
  0x24   : > { %v812_v29 = vld [vmem:[%s325_s7 + $0x64] ss:$8 sps:$4 sm:$0xff] (!%p317_p8)   ;;  %v814_v30 = vld [vmem:[%s325_s7 + $0x60] ss:$8 sps:$4 sm:$0xff] (!%p317_p8)   ;;  %v815_v31 = vld [vmem:[%s325_s7 + $0x74] ss:$8 sps:$4 sm:$0xff] (!%p317_p8)  }
  0x25   : > { %v817_v32 = vld [vmem:[%s325_s7 + $0x70] ss:$8 sps:$4 sm:$0xff]   ;;  %s988_s10 = smov (!%p377_p9, %s728_s10), 3  ;;  %v556_v36 = vsub.s32 0, %v555_v35  ;;  %v560_v38 = vsub.s32 1, %v555_v35 }
  0x26   : > { %505 = vmatpush1.bf16.msra.mxu0 %v799_v20  ;;  %s379_s13 = scalar_lea.vmem %s978_s2, %s988_s10  ;;  %s384_s21 = scalar_lea.vmem %s979_s3, %s988_s10 }
  0x27   : > { %506 = vmatprep.subr.bf16.mxu0 %v800_v21  ;;  %v552_v37 = vld [vmem:[%s379_s13] sm:$0x3]  ;;  %s731_s17 = sshll.u32 %s988_s10, 2 }
  0x28   : > { %v566_v39 = vld [vmem:[%s384_s21] sm:$0x3]  ;;  %v557_v40 = vrot.slane %v552_v37, %v556_v36  ;;  %v561_v41 = vrot.slane %v552_v37, %v560_v38  ;;  %s394_s25 = scalar_lea.vmem %s980_s4, %s731_s17 }
  0x29   : > { %v571_v42 = vrot.slane %v566_v39, %v556_v36  ;;  %v575_v44 = vrot.slane %v566_v39, %v560_v38 }
  0x2a   : > { %507 = vmatpush1.bf16.msra.mxu0 %v802_v22 }
  0x2b   : > { %508 = vmatprep.subr.bf16.mxu0 %v803_v23 }
  0x2e   : > { %509 = vmatpush1.bf16.msra.mxu0 %v805_v24 }
  0x2f   : > { %510 = vmatprep.subr.bf16.mxu0 %v806_v25 }
  0x32   : > { %511 = vmatpush1.bf16.msra.mxu0 %v808_v26 }
  0x33   : > { %512 = vmatprep.subr.bf16.mxu0 %v809_v27 }
  0x36   : > { %513 = vmatpush1.bf16.msra.mxu0 %v811_v28 }
  0x37   : > { %514 = vmatprep.subr.bf16.mxu0 %v812_v29 }
  0x3a   : > { %515 = vmatpush1.bf16.msra.mxu0 %v814_v30 }
  0x3b   : > { %516 = vmatprep.subr.bf16.mxu0 %v815_v31 }
  0x3e   : > { %517 = vmatpush1.bf16.msra.mxu0 %v817_v32 }
  0x41   : > { %535 = vmatmul.mubr.bf16.vlgmr.msra.gmra.mrb[0].mxu0 %v405_v33 }
 0x114   : > { %v536_v43 = vpop.f32.mrb[0].mxu0 }
 0x115   : > { %v564_v45 = vmul.f32 %v557_v40, %v536_v43  ;;  %v538_v46 = vpop.f32.mrb[1].mxu0 }
 0x116   : > { %v565_v47 = vmul.f32 %v561_v41, %v538_v46  ;;  %v540_v48 = vpop.f32.mrb[2].mxu0 }
 0x117   : > { %v578_v49 = vadd.f32 %v571_v42, %v564_v45  ;;  %v541_v50 = vpop.f32.mrb[3].mxu0 }
 0x118   : > { %v579_v51 = vadd.f32 %v575_v44, %v565_v47 }
 0x11a   : > { %v752_v52 = vpack.c.bf16 %v579_v51, %v578_v49 }
 0x11c   : > { %588 = vst [vmem:[%s394_s25] sm:$0xff] %v752_v52 }
 0x11d PF: > { %s14_s19 = sadd.s32 1, %s856_s19   ;;  %s981_s15 = smov %s844_s16 }
 0x11e   : > { %p11_p10 = scmp.ge.s32.totalorder %s14_s19, 4   ;;  %s982_s16 = smov %s919_s23 }
 0x11f   : > { %s983_s17 = smov %s852_s18  ;;  %s984_s18 = smov %s986_s20 }
 0x120   :  { %13 = sbr.rel (!%p11_p10) target bundleno = 3 (0x3), region = 126 }

// kernel: vae_forward.23
= control target key start
LH: loop header
LB: loop body
LE: loop exit
PB: predicated region body
PF: predicated region fallthrough
CT: control target
= control target key end

     0   :  { %v467_v12 = vmov 0.0   ;;  %s569_s1 = inlined_call_operand.vmem [shape: bf16[128,128], index: 1, kind: input, shape index: {}]   ;;  %s570_s0 = inlined_call_operand.vmem [shape: bf16[64,128], index: 0, kind: input, shape index: {}]   ;;  %s571_s5 = inlined_call_operand.vmem [shape: f32[8,128], index: 5, kind: output, shape index: {1}]   ;;  %s572_s6 = inlined_call_operand.vmem [shape: f32[8,128], index: 6, kind: output, shape index: {2}]   ;;  %s573_s2 = inlined_call_operand.vmem [shape: f32[1,128], index: 2, kind: input, shape index: {}]   ;;  %s574_s3 = inlined_call_operand.vmem [shape: f32[1,128], index: 3, kind: input, shape index: {}]   ;;  %s575_s4 = inlined_call_operand.vmem [shape: bf16[64,128], index: 4, kind: output, shape index: {0}]  }
   0x1   :  { %v455_v0 = vld [vmem:[%s569_s1] sm:$0xff]   ;;  %v456_v1 = vld [vmem:[%s569_s1 + $0x8] sm:$0xff]   ;;  %v457_v2 = vld [vmem:[%s569_s1 + $0x10] sm:$0xff]   ;;  %299 = vst [vmem:[%s571_s5] sm:$0xff] %v467_v12 }
   0x2   :  { %414 = vmatprep.subr.bf16.mxu0 %v455_v0  ;;  %438 = vmatprep.subr.bf16.mxu1 %v455_v0  ;;  %v458_v3 = vld [vmem:[%s569_s1 + $0x18] sm:$0xff]   ;;  %v463_v4 = vld [vmem:[%s570_s0] sm:$0xff]   ;;  %v465_v5 = vld [vmem:[%s570_s0 + $0x10] sm:$0xff]   ;;  %300 = vst [vmem:[%s572_s6] sm:$0xff] %v467_v12 }
   0x3   :  { %415 = vmatpush3.bf16.msra.mxu0 %v455_v0  ;;  %446 = vmatpush3.bf16.msra.mxu1 %v455_v0  ;;  %v459_v6 = vld [vmem:[%s569_s1 + $0x20] sm:$0xff]   ;;  %v460_v7 = vld [vmem:[%s569_s1 + $0x28] sm:$0xff]   ;;  %v461_v8 = vld [vmem:[%s569_s1 + $0x30] sm:$0xff]  }
   0x4   :  { %416 = vmatprep.subr.bf16.mxu0 %v456_v1  ;;  %439 = vmatprep.subr.bf16.mxu1 %v456_v1  ;;  %v462_v9 = vld [vmem:[%s569_s1 + $0x38] sm:$0xff]   ;;  %v464_v10 = vld [vmem:[%s570_s0 + $0x8] sm:$0xff]   ;;  %v361_v13 = vld [vmem:[%s573_s2] ss:$0 sm:$0xff] }
   0x5   :  { %430 = vmatprep.mubr.bf16.mxu0 %v463_v4  ;;  %434 = vmatprep.mubr.bf16.mxu1 %v465_v5  ;;  %v466_v11 = vld [vmem:[%s570_s0 + $0x18] sm:$0xff]   ;;  %v362_v15 = vld [vmem:[%s574_s3] ss:$0 sm:$0xff] }
   0x7   :  { %417 = vmatpush3.bf16.msra.mxu0 %v456_v1  ;;  %447 = vmatpush3.bf16.msra.mxu1 %v456_v1 }
   0x8   :  { %418 = vmatprep.subr.bf16.mxu0 %v457_v2  ;;  %440 = vmatprep.subr.bf16.mxu1 %v457_v2 }
   0xb   :  { %419 = vmatpush3.bf16.msra.mxu0 %v457_v2  ;;  %448 = vmatpush3.bf16.msra.mxu1 %v457_v2 }
   0xc   :  { %420 = vmatprep.subr.bf16.mxu0 %v458_v3  ;;  %441 = vmatprep.subr.bf16.mxu1 %v458_v3 }
   0xf   :  { %421 = vmatpush3.bf16.msra.mxu0 %v458_v3  ;;  %449 = vmatpush3.bf16.msra.mxu1 %v458_v3 }
  0x10   :  { %422 = vmatprep.subr.bf16.mxu0 %v459_v6  ;;  %442 = vmatprep.subr.bf16.mxu1 %v459_v6 }
  0x13   :  { %423 = vmatpush3.bf16.msra.mxu0 %v459_v6  ;;  %450 = vmatpush3.bf16.msra.mxu1 %v459_v6 }
  0x14   :  { %424 = vmatprep.subr.bf16.mxu0 %v460_v7  ;;  %443 = vmatprep.subr.bf16.mxu1 %v460_v7 }
  0x17   :  { %425 = vmatpush3.bf16.msra.mxu0 %v460_v7  ;;  %451 = vmatpush3.bf16.msra.mxu1 %v460_v7 }
  0x18   :  { %426 = vmatprep.subr.bf16.mxu0 %v461_v8  ;;  %444 = vmatprep.subr.bf16.mxu1 %v461_v8 }
  0x1b   :  { %427 = vmatpush3.bf16.msra.mxu0 %v461_v8  ;;  %452 = vmatpush3.bf16.msra.mxu1 %v461_v8 }
  0x1c   :  { %428 = vmatprep.subr.bf16.mxu0 %v462_v9  ;;  %445 = vmatprep.subr.bf16.mxu1 %v462_v9 }
  0x1f   :  { %429 = vmatpush3.bf16.msra.mxu0 %v462_v9  ;;  %453 = vmatpush3.bf16.msra.mxu1 %v462_v9 }
  0x22   :  { %431 = vmatmul.mubr.bf16.vlgmr.msra.gmra.mrb[0].mxu0 %v464_v10  ;;  %435 = vmatmul.mubr.bf16.vlgmr.msra.gmra.mrb[0].mxu1 %v466_v11 }
  0xf5   :  { %v432_v14 = vpop.f32.mrb[0].mxu0  ;;  %v436_v16 = vpop.f32.mrb[0].mxu1 }
  0xf6   :  { %v238_v17 = vmul.f32 %v432_v14, %v361_v13  ;;  %v171_v18 = vpop.f32.mrb[1].mxu0  ;;  %v242_v19 = vmul.f32 %v436_v16, %v361_v13  ;;  %v187_v20 = vpop.f32.mrb[1].mxu1  ;;  %v317_v26 = vmul.f32 %v432_v14, %v432_v14  ;;  %v321_v58 = vmul.f32 %v436_v16, %v436_v16 }
  0xf7   :  { %v236_v21 = vmul.f32 %v361_v13, %v171_v18  ;;  %v433_v22 = vpop.f32.mrb[2].mxu0  ;;  %v240_v23 = vmul.f32 %v361_v13, %v187_v20  ;;  %v437_v24 = vpop.f32.mrb[2].mxu1  ;;  %v315_v27 = vmul.f32 %v171_v18, %v171_v18  ;;  %v319_v45 = vmul.f32 %v187_v20, %v187_v20 }
  0xf8   :  { %v253_v25 = vadd.f32 %v362_v15, %v238_v17  ;;  %v239_v28 = vmul.f32 %v433_v22, %v361_v13  ;;  %v174_v29 = vpop.f32.mrb[3].mxu0  ;;  %v190_v30 = vpop.f32.mrb[3].mxu1  ;;  %v257_v34 = vadd.f32 %v362_v15, %v242_v19  ;;  %v243_v38 = vmul.f32 %v437_v24, %v361_v13 }
  0xf9   :  { %v237_v31 = vmul.f32 %v361_v13, %v174_v29  ;;  %v301_v32 = vadd.f32 %v174_v29, %v171_v18  ;;  %v316_v33 = vmul.f32 %v174_v29, %v174_v29  ;;  %v251_v35 = vadd.f32 %v362_v15, %v236_v21 }
  0xfa   :  { %v254_v36 = vadd.f32 %v362_v15, %v239_v28  ;;  %v255_v37 = vadd.f32 %v362_v15, %v240_v23  ;;  %v241_v42 = vmul.f32 %v361_v13, %v190_v30  ;;  %v318_v44 = vmul.f32 %v433_v22, %v433_v22 }
  0xfb   :  { %v252_v39 = vadd.f32 %v362_v15, %v237_v31  ;;  %v302_v40 = vadd.f32 %v432_v14, %v301_v32  ;;  %v323_v41 = vadd.f32 %v316_v33, %v315_v27  ;;  %v258_v46 = vadd.f32 %v362_v15, %v243_v38 }
  0xfc   :  { %v387_v43 = vpack.c.bf16 %v254_v36, %v253_v25  ;;  %v256_v50 = vadd.f32 %v362_v15, %v241_v42  ;;  %v320_v57 = vmul.f32 %v190_v30, %v190_v30  ;;  %v322_v61 = vmul.f32 %v437_v24, %v437_v24 }
  0xfd   :  { %v382_v47 = vpack.c.bf16 %v252_v39, %v251_v35  ;;  %v324_v48 = vadd.f32 %v323_v41, %v317_v26  ;;  %v303_v49 = vadd.f32 %v433_v22, %v302_v40  ;;  %v397_v51 = vpack.c.bf16 %v258_v46, %v257_v34 }
  0xfe   :  { %399 = vst [vmem:[%s575_s4 + $0x8] sm:$0xff] %v387_v43   ;;  %v392_v54 = vpack.c.bf16 %v256_v50, %v255_v37 }
  0xff   :  { %383 = vst [vmem:[%s575_s4] sm:$0xff] %v382_v47   ;;  %v304_v52 = vadd.f32 %v303_v49, %v187_v20  ;;  %v325_v53 = vadd.f32 %v324_v48, %v318_v44  ;;  %401 = vst [vmem:[%s575_s4 + $0x18] sm:$0xff] %v397_v51  }
 0x100   :  { %400 = vst [vmem:[%s575_s4 + $0x10] sm:$0xff] %v392_v54  }
 0x101   :  { %v326_v55 = vadd.f32 %v325_v53, %v319_v45  ;;  %v305_v56 = vadd.f32 %v304_v52, %v190_v30 }
 0x103   :  { %v306_v59 = vadd.f32 %v436_v16, %v305_v56  ;;  %v327_v60 = vadd.f32 %v326_v55, %v320_v57 }
 0x105   :  { %v307_v62 = vadd.f32 %v437_v24, %v306_v59  ;;  %v328_v63 = vadd.f32 %v327_v60, %v321_v58 }
 0x107   :  { %v308_v0 = vrot.slane %v307_v62, 4  ;;  %v329_v1 = vadd.f32 %v328_v63, %v322_v61 }
 0x109   :  { %v309_v2 = vadd.f32 %v308_v0, %v307_v62  ;;  %v330_v3 = vrot.slane %v329_v1, 4 }
 0x10b   :  { %v310_v4 = vrot.slane %v309_v2, 2  ;;  %v331_v5 = vadd.f32 %v330_v3, %v329_v1 }
 0x10d   :  { %v311_v6 = vadd.f32 %v310_v4, %v309_v2  ;;  %v332_v7 = vrot.slane %v331_v5, 2 }
 0x10f   :  { %v312_v8 = vrot.slane %v311_v6, 1  ;;  %v333_v9 = vadd.f32 %v332_v7, %v331_v5 }
 0x111   :  { %v313_v10 = vadd.f32 %v312_v8, %v311_v6  ;;  %v334_v11 = vrot.slane %v333_v9, 1 }
 0x113   :  { %314 = vst [vmem:[%s571_s5] sm:$0x1] %v313_v10  ;;  %v335_v12 = vadd.f32 %v334_v11, %v333_v9 }
 0x115   :  { %336 = vst [vmem:[%s572_s6] sm:$0x1] %v335_v12 }

// kernel: vae_forward.32
= control target key start
LH: loop header
LB: loop body
LE: loop exit
PB: predicated region body
PF: predicated region fallthrough
CT: control target
= control target key end

     0   :  { %s238_s0 = inlined_call_operand.vmem [shape: bf16[64,128], index: 0, kind: input, shape index: {}]   ;;  %s239_s1 = inlined_call_operand.vmem [shape: f32[1,128], index: 1, kind: input, shape index: {}]   ;;  %s240_s2 = inlined_call_operand.vmem [shape: f32[1,128], index: 2, kind: input, shape index: {}]   ;;  %s241_s3 = inlined_call_operand.vmem [shape: bf16[64,128], index: 3, kind: output, shape index: {}]  }
   0x1   :  { %v147_v0 = vld [vmem:[%s238_s0] sm:$0xff]   ;;  %v182_v4 = vld [vmem:[%s238_s0 + $0x8] sm:$0xff]   ;;  %v183_v5 = vld [vmem:[%s238_s0 + $0x10] sm:$0xff]  }
   0x2   :  { %v128_v1 = vld [vmem:[%s239_s1] ss:$0 sm:$0xff]  ;;  %v148_v2 = vunpack.c.l.bf16 %v147_v0  ;;  %v149_v3 = vunpack.c.h.bf16 %v147_v0  ;;  %v184_v6 = vld [vmem:[%s238_s0 + $0x18] sm:$0xff]   ;;  %v152_v8 = vunpack.c.l.bf16 %v182_v4  ;;  %v153_v9 = vunpack.c.h.bf16 %v182_v4 }
   0x3   :  { %v129_v7 = vld [vmem:[%s240_s2] ss:$0 sm:$0xff]  ;;  %v156_v10 = vunpack.c.l.bf16 %v183_v5  ;;  %v157_v11 = vunpack.c.h.bf16 %v183_v5  ;;  %v160_v14 = vunpack.c.l.bf16 %v184_v6  ;;  %v161_v15 = vunpack.c.h.bf16 %v184_v6 }
   0x4   :  { %v37_v12 = vmul.f32 %v148_v2, %v128_v1  ;;  %v38_v13 = vmul.f32 %v149_v3, %v128_v1  ;;  %v39_v16 = vmul.f32 %v152_v8, %v128_v1  ;;  %v40_v17 = vmul.f32 %v153_v9, %v128_v1 }
   0x5   :  { %v41_v18 = vmul.f32 %v156_v10, %v128_v1  ;;  %v42_v19 = vmul.f32 %v157_v11, %v128_v1  ;;  %v43_v22 = vmul.f32 %v160_v14, %v128_v1  ;;  %v44_v23 = vmul.f32 %v161_v15, %v128_v1 }
   0x6   :  { %v52_v20 = vadd.f32 %v129_v7, %v37_v12  ;;  %v53_v21 = vadd.f32 %v129_v7, %v38_v13  ;;  %v54_v24 = vadd.f32 %v129_v7, %v39_v16  ;;  %v55_v25 = vadd.f32 %v129_v7, %v40_v17 }
   0x7   :  { %v56_v26 = vadd.f32 %v129_v7, %v41_v18  ;;  %v57_v27 = vadd.f32 %v129_v7, %v42_v19  ;;  %v58_v40 = vadd.f32 %v129_v7, %v43_v22  ;;  %v59_v41 = vadd.f32 %v129_v7, %v44_v23 }
   0x8   :  { %vm60_vm0 = vcmp.ge.f32.partialorder %v52_v20, 0.0  ;;  %vm61_vm1 = vcmp.ge.f32.partialorder %v53_v21, 0.0  ;;  %v68_v28 = vmul.f32 0.01, %v52_v20  ;;  %v69_v29 = vmul.f32 0.01, %v53_v21 }
   0x9   :  { %vm62_vm2 = vcmp.ge.f32.partialorder %v54_v24, 0.0  ;;  %vm63_vm3 = vcmp.ge.f32.partialorder %v55_v25, 0.0  ;;  %v70_v30 = vmul.f32 0.01, %v54_v24  ;;  %v71_v31 = vmul.f32 0.01, %v55_v25 }
   0xa   :  { %v76_v32 = vsel %vm60_vm0, %v52_v20, %v68_v28  ;;  %v77_v33 = vsel %vm61_vm1, %v53_v21, %v69_v29  ;;  %vm64_vm4 = vcmp.ge.f32.partialorder %v56_v26, 0.0  ;;  %vm65_vm5 = vcmp.ge.f32.partialorder %v57_v27, 0.0 }
   0xb   :  { %v165_v34 = vpack.c.bf16 %v77_v33, %v76_v32  ;;  %v78_v35 = vsel %vm62_vm2, %v54_v24, %v70_v30  ;;  %v79_v36 = vsel %vm63_vm3, %v55_v25, %v71_v31  ;;  %v72_v37 = vmul.f32 0.01, %v56_v26 }
   0xc   :  { %v170_v38 = vpack.c.bf16 %v79_v36, %v78_v35  ;;  %v73_v39 = vmul.f32 0.01, %v57_v27  ;;  %vm66_vm6 = vcmp.ge.f32.partialorder %v58_v40, 0.0  ;;  %vm67_vm7 = vcmp.ge.f32.partialorder %v59_v41, 0.0 }
   0xd   :  { %166 = vst [vmem:[%s241_s3] sm:$0xff] %v165_v34   ;;  %v80_v42 = vsel %vm64_vm4, %v56_v26, %v72_v37  ;;  %v74_v44 = vmul.f32 0.01, %v58_v40  ;;  %v75_v46 = vmul.f32 0.01, %v59_v41 }
   0xe   :  { %185 = vst [vmem:[%s241_s3 + $0x8] sm:$0xff] %v170_v38   ;;  %v81_v43 = vsel %vm65_vm5, %v57_v27, %v73_v39 }
   0xf   :  { %v175_v45 = vpack.c.bf16 %v81_v43, %v80_v42  ;;  %v82_v47 = vsel %vm66_vm6, %v58_v40, %v74_v44  ;;  %v83_v48 = vsel %vm67_vm7, %v59_v41, %v75_v46 }
  0x10   :  { %v180_v49 = vpack.c.bf16 %v83_v48, %v82_v47 }
  0x11   :  { %186 = vst [vmem:[%s241_s3 + $0x10] sm:$0xff] %v175_v45  }
  0x12   :  { %187 = vst [vmem:[%s241_s3 + $0x18] sm:$0xff] %v180_v49  }

// kernel: vae_forward.33
= control target key start
LH: loop header
LB: loop body
LE: loop exit
PB: predicated region body
PF: predicated region fallthrough
CT: control target
= control target key end

     0   :  { %s2278_s15 = smov 0   ;;  %s2280_s16 = smov 0   ;;  %s2668_s0 = inlined_call_operand.vmem [shape: bf16[1024,256], index: 0, kind: input, shape index: {}]   ;;  %s2669_s1 = inlined_call_operand.vmem [shape: bf16[256,128], index: 1, kind: input, shape index: {}]   ;;  %s2670_s2 = inlined_call_operand.vmem [shape: f32[1,128], index: 2, kind: input, shape index: {}]   ;;  %s2671_s3 = inlined_call_operand.vmem [shape: f32[1,128], index: 3, kind: input, shape index: {}]   ;;  %s2672_s4 = inlined_call_operand.vmem [shape: f32[1024,128], index: 4, kind: output, shape index: {}]  }
   0x1   :  { %s2282_s17 = smov 0  }
   0x2 LB: > { %s33_s18 = sadd.s32 1, %s2246_s16  ;;  %p1840_p0 = scmp.ge.s32.totalorder %s2250_s17, 1  ;;  %s2250_s17 = sphi %s2282_s17, %s14_s17   ;;  %s2246_s16 = sphi %s2280_s16, %s2674_s16   ;;  %s2242_s15 = sphi %s2278_s15, %s2673_s15  }
   0x3   : > { %p35_p1 = scmp.ge.s32.totalorder %s33_s18, 2  ;;  %p224_p2 = scmp.lt.s32.totalorder %s2250_s17, 3 }
   0x5   : > { %s2676_s18 = smov (%p35_p1, %s33_s18), 0  ;;  %p225_p3 = pnand %p1840_p0, %p224_p2 }
   0x6   : > { %v1988_v0 = vld [vmem:[%s2669_s1] sm:$0xff] (!%p225_p3)   ;;  %v2252_v1 = vmov (!%p225_p3), 0   ;;  %s1841_s21 = sshll.u32 (!%p225_p3), %s2242_s15, 6  ;;  %v1989_v2 = vld [vmem:[%s2669_s1 + $0x8] sm:$0xff] (!%p225_p3)   ;;  %v1990_v3 = vld [vmem:[%s2669_s1 + $0x10] sm:$0xff] (!%p225_p3)  }
   0x7   : > { %228 = sbr.rel (%p225_p3) target bundleno = 423 (0x1a7), region = 36  ;;  %953 = vmatprep.subr.bf16.mxu0 (!%p225_p3), %v2252_v1  ;;  %1931 = vmatprep.subr.bf16.mxu1 (!%p225_p3), %v2252_v1  ;;  %p274_p4 = scmp.lt.s32.totalorder (!%p225_p3), %s1841_s21, 127  ;;  %v1991_v4 = vld [vmem:[%s2669_s1 + $0x18] sm:$0xff] (!%p225_p3)   ;;  %v1992_v5 = vld [vmem:[%s2669_s1 + $0x20] sm:$0xff] (!%p225_p3)   ;;  %v1993_v7 = vld [vmem:[%s2669_s1 + $0x28] sm:$0xff] (!%p225_p3)  }
   0x8   : > { %954 = vmatpush1.bf16.msra.mxu0 (!%p225_p3), %v1988_v0  ;;  %1947 = vmatpush1.bf16.msra.mxu1 (!%p225_p3), %v1988_v0  ;;  %v1994_v9 = vld [vmem:[%s2669_s1 + $0x30] sm:$0xff] (!%p225_p3)   ;;  %v1995_v10 = vld [vmem:[%s2669_s1 + $0x38] sm:$0xff] (!%p225_p3)   ;;  %v1996_v11 = vld [vmem:[%s2669_s1 + $0x40] sm:$0xff] (!%p225_p3)  }
   0x9   : > { %955 = vmatprep.subr.bf16.mxu0 (!%p225_p3), %v2252_v1  ;;  %1932 = vmatprep.subr.bf16.mxu1 (!%p225_p3), %v2252_v1  ;;  %v1997_v12 = vld [vmem:[%s2669_s1 + $0x48] sm:$0xff] (!%p225_p3)   ;;  %v1998_v13 = vld [vmem:[%s2669_s1 + $0x50] sm:$0xff] (!%p225_p3)   ;;  %v1999_v14 = vld [vmem:[%s2669_s1 + $0x58] sm:$0xff] (!%p225_p3)  }
   0xa   : > { %v2000_v15 = vld [vmem:[%s2669_s1 + $0x60] sm:$0xff] (!%p225_p3)   ;;  %v2001_v16 = vld [vmem:[%s2669_s1 + $0x68] sm:$0xff] (!%p225_p3)   ;;  %v2002_v17 = vld [vmem:[%s2669_s1 + $0x70] sm:$0xff] (!%p225_p3)  }
   0xb   : > { %v2003_v18 = vld [vmem:[%s2669_s1 + $0x78] sm:$0xff] (!%p225_p3)  }
   0xc   : > { %956 = vmatpush1.bf16.msra.mxu0 (!%p225_p3), %v1989_v2  ;;  %1948 = vmatpush1.bf16.msra.mxu1 (!%p225_p3), %v1989_v2 }
   0xd   : > { %957 = vmatprep.subr.bf16.mxu0 (!%p225_p3), %v2252_v1  ;;  %1933 = vmatprep.subr.bf16.mxu1 (!%p225_p3), %v2252_v1 }
   0xe   : > { %s2678_s21 = smov (!%p274_p4, %s1841_s21), 127 }
   0xf   : > { %s1930_s28 = sshll.u32 %s2678_s21, 3 }
  0x10   : > { %958 = vmatpush1.bf16.msra.mxu0 %v1990_v3  ;;  %1949 = vmatpush1.bf16.msra.mxu1 %v1990_v3  ;;  %s2327_s7 = scalar_lea.vmem %s2668_s0, %s1930_s28  ;;  %s2479_s15 = scalar_lea.vmem %s2672_s4, %s1930_s28 }
  0x11   : > { %959 = vmatprep.subr.bf16.mxu0 %v2252_v1  ;;  %1934 = vmatprep.subr.bf16.mxu1 %v2252_v1  ;;  %v2006_v6 = vld [vmem:[%s2327_s7 + $0x4] ss:$8 sps:$4 sm:$0xff]   ;;  %v2004_v19 = vld [vmem:[%s2327_s7] ss:$8 sps:$4 sm:$0xff]   ;;  %v2010_v21 = vld [vmem:[%s2327_s7 + $0x14] ss:$8 sps:$4 sm:$0xff]  }
  0x12   : > { %v2009_v8 = vld [vmem:[%s2327_s7 + $0x104] ss:$8 sps:$4 sm:$0xff]   ;;  %985 = vmatprep.mubr.bf16.mxu0 %v2006_v6  ;;  %v2007_v20 = vld [vmem:[%s2327_s7 + $0x100] ss:$8 sps:$4 sm:$0xff]   ;;  %v2012_v22 = vld [vmem:[%s2327_s7 + $0x114] ss:$8 sps:$4 sm:$0xff]  }
  0x13   : > { %1113 = vmatprep.mubr.bf16.mxu1 %v2009_v8  ;;  %v2014_v23 = vld [vmem:[%s2327_s7 + $0x10] ss:$8 sps:$4 sm:$0xff]   ;;  %v2016_v25 = vld [vmem:[%s2327_s7 + $0x24] ss:$8 sps:$4 sm:$0xff]   ;;  %v2020_v27 = vld [vmem:[%s2327_s7 + $0x20] ss:$8 sps:$4 sm:$0xff]  }
  0x14   : > { %960 = vmatpush1.bf16.msra.mxu0 %v1991_v4  ;;  %1950 = vmatpush1.bf16.msra.mxu1 %v1991_v4  ;;  %v2015_v24 = vld [vmem:[%s2327_s7 + $0x110] ss:$8 sps:$4 sm:$0xff]   ;;  %v2018_v26 = vld [vmem:[%s2327_s7 + $0x124] ss:$8 sps:$4 sm:$0xff]   ;;  %v2021_v28 = vld [vmem:[%s2327_s7 + $0x120] ss:$8 sps:$4 sm:$0xff]  }
  0x15   : > { %961 = vmatprep.subr.bf16.mxu0 %v2252_v1  ;;  %1935 = vmatprep.subr.bf16.mxu1 %v2252_v1  ;;  %v2022_v29 = vld [vmem:[%s2327_s7 + $0x34] ss:$8 sps:$4 sm:$0xff]   ;;  %v2026_v31 = vld [vmem:[%s2327_s7 + $0x30] ss:$8 sps:$4 sm:$0xff]   ;;  %v2028_v33 = vld [vmem:[%s2327_s7 + $0x44] ss:$8 sps:$4 sm:$0xff]  }
  0x16   : > { %v2024_v30 = vld [vmem:[%s2327_s7 + $0x134] ss:$8 sps:$4 sm:$0xff]   ;;  %v2027_v32 = vld [vmem:[%s2327_s7 + $0x130] ss:$8 sps:$4 sm:$0xff]   ;;  %v2030_v34 = vld [vmem:[%s2327_s7 + $0x144] ss:$8 sps:$4 sm:$0xff]  }
  0x17   : > { %v2032_v35 = vld [vmem:[%s2327_s7 + $0x40] ss:$8 sps:$4 sm:$0xff]   ;;  %v2034_v37 = vld [vmem:[%s2327_s7 + $0x54] ss:$8 sps:$4 sm:$0xff]   ;;  %v2038_v39 = vld [vmem:[%s2327_s7 + $0x50] ss:$8 sps:$4 sm:$0xff]  }
  0x18   : > { %962 = vmatpush1.bf16.msra.mxu0 %v1992_v5  ;;  %1951 = vmatpush1.bf16.msra.mxu1 %v1992_v5  ;;  %v2033_v36 = vld [vmem:[%s2327_s7 + $0x140] ss:$8 sps:$4 sm:$0xff]   ;;  %v2036_v38 = vld [vmem:[%s2327_s7 + $0x154] ss:$8 sps:$4 sm:$0xff]   ;;  %v2039_v40 = vld [vmem:[%s2327_s7 + $0x150] ss:$8 sps:$4 sm:$0xff]  }
  0x19   : > { %963 = vmatprep.subr.bf16.mxu0 %v2252_v1  ;;  %1936 = vmatprep.subr.bf16.mxu1 %v2252_v1  ;;  %v2040_v41 = vld [vmem:[%s2327_s7 + $0x64] ss:$8 sps:$4 sm:$0xff]   ;;  %v2044_v43 = vld [vmem:[%s2327_s7 + $0x60] ss:$8 sps:$4 sm:$0xff]   ;;  %v2046_v45 = vld [vmem:[%s2327_s7 + $0x74] ss:$8 sps:$4 sm:$0xff]  }
  0x1a   : > { %v2042_v42 = vld [vmem:[%s2327_s7 + $0x164] ss:$8 sps:$4 sm:$0xff]   ;;  %v2045_v44 = vld [vmem:[%s2327_s7 + $0x160] ss:$8 sps:$4 sm:$0xff]   ;;  %v2048_v46 = vld [vmem:[%s2327_s7 + $0x174] ss:$8 sps:$4 sm:$0xff]  }
  0x1b   : > { %v2050_v47 = vld [vmem:[%s2327_s7 + $0x70] ss:$8 sps:$4 sm:$0xff]   ;;  %v2052_v49 = vld [vmem:[%s2327_s7 + $0x84] ss:$8 sps:$4 sm:$0xff]   ;;  %v2056_v51 = vld [vmem:[%s2327_s7 + $0x80] ss:$8 sps:$4 sm:$0xff]  }
  0x1c   : > { %964 = vmatpush1.bf16.msra.mxu0 %v1993_v7  ;;  %1952 = vmatpush1.bf16.msra.mxu1 %v1993_v7  ;;  %v2051_v48 = vld [vmem:[%s2327_s7 + $0x170] ss:$8 sps:$4 sm:$0xff]   ;;  %v2054_v50 = vld [vmem:[%s2327_s7 + $0x184] ss:$8 sps:$4 sm:$0xff]   ;;  %v2057_v52 = vld [vmem:[%s2327_s7 + $0x180] ss:$8 sps:$4 sm:$0xff]  }
  0x1d   : > { %965 = vmatprep.subr.bf16.mxu0 %v2252_v1  ;;  %1937 = vmatprep.subr.bf16.mxu1 %v2252_v1  ;;  %v2058_v53 = vld [vmem:[%s2327_s7 + $0x94] ss:$8 sps:$4 sm:$0xff]   ;;  %v2062_v55 = vld [vmem:[%s2327_s7 + $0x90] ss:$8 sps:$4 sm:$0xff]   ;;  %v2064_v57 = vld [vmem:[%s2327_s7 + $0xa4] ss:$8 sps:$4 sm:$0xff]  }
  0x1e   : > { %v2060_v54 = vld [vmem:[%s2327_s7 + $0x194] ss:$8 sps:$4 sm:$0xff]   ;;  %v2063_v56 = vld [vmem:[%s2327_s7 + $0x190] ss:$8 sps:$4 sm:$0xff]   ;;  %v2066_v58 = vld [vmem:[%s2327_s7 + $0x1a4] ss:$8 sps:$4 sm:$0xff]  }
  0x1f   : > { %v2068_v59 = vld [vmem:[%s2327_s7 + $0xa0] ss:$8 sps:$4 sm:$0xff]   ;;  %v2070_v61 = vld [vmem:[%s2327_s7 + $0xb4] ss:$8 sps:$4 sm:$0xff]   ;;  %v2074_v63 = vld [vmem:[%s2327_s7 + $0xb0] ss:$8 sps:$4 sm:$0xff]  }
  0x20   : > { %966 = vmatpush1.bf16.msra.mxu0 %v1994_v9  ;;  %1953 = vmatpush1.bf16.msra.mxu1 %v1994_v9  ;;  %v2069_v60 = vld [vmem:[%s2327_s7 + $0x1a0] ss:$8 sps:$4 sm:$0xff]   ;;  %v2072_v62 = vld [vmem:[%s2327_s7 + $0x1b4] ss:$8 sps:$4 sm:$0xff]   ;;  %v2075_v0 = vld [vmem:[%s2327_s7 + $0x1b0] ss:$8 sps:$4 sm:$0xff]  }
  0x21   : > { %967 = vmatprep.subr.bf16.mxu0 %v2252_v1  ;;  %1938 = vmatprep.subr.bf16.mxu1 %v2252_v1  ;;  %v2078_v2 = vld [vmem:[%s2327_s7 + $0x1c4] ss:$8 sps:$4 sm:$0xff]   ;;  %v2080_v3 = vld [vmem:[%s2327_s7 + $0xc0] ss:$8 sps:$4 sm:$0xff]   ;;  %v2082_v5 = vld [vmem:[%s2327_s7 + $0xd4] ss:$8 sps:$4 sm:$0xff]  }
  0x22   : > { %v2081_v4 = vld [vmem:[%s2327_s7 + $0x1c0] ss:$8 sps:$4 sm:$0xff]   ;;  %v2084_v6 = vld [vmem:[%s2327_s7 + $0x1d4] ss:$8 sps:$4 sm:$0xff]   ;;  %v2086_v7 = vld [vmem:[%s2327_s7 + $0xd0] ss:$8 sps:$4 sm:$0xff]  }
  0x23   : > { %v2087_v8 = vld [vmem:[%s2327_s7 + $0x1d0] ss:$8 sps:$4 sm:$0xff]   ;;  %v2088_v9 = vld [vmem:[%s2327_s7 + $0xe4] ss:$8 sps:$4 sm:$0xff]  }
  0x24   : > { %968 = vmatpush1.bf16.msra.mxu0 %v1995_v10  ;;  %1954 = vmatpush1.bf16.msra.mxu1 %v1995_v10  ;;  %v2090_v10 = vld [vmem:[%s2327_s7 + $0x1e4] ss:$8 sps:$4 sm:$0xff]  }
  0x25   : > { %969 = vmatprep.subr.bf16.mxu0 %v2252_v1  ;;  %1939 = vmatprep.subr.bf16.mxu1 %v2252_v1 }
  0x28   : > { %970 = vmatpush1.bf16.msra.mxu0 %v1996_v11  ;;  %1955 = vmatpush1.bf16.msra.mxu1 %v1996_v11  ;;  %v2092_v11 = vld [vmem:[%s2327_s7 + $0xe0] ss:$8 sps:$4 sm:$0xff]  }
  0x29   : > { %971 = vmatprep.subr.bf16.mxu0 %v2252_v1  ;;  %1940 = vmatprep.subr.bf16.mxu1 %v2252_v1 }
  0x2c   : > { %972 = vmatpush1.bf16.msra.mxu0 %v1997_v12  ;;  %1956 = vmatpush1.bf16.msra.mxu1 %v1997_v12  ;;  %v2093_v12 = vld [vmem:[%s2327_s7 + $0x1e0] ss:$8 sps:$4 sm:$0xff]  }
  0x2d   : > { %973 = vmatprep.subr.bf16.mxu0 %v2252_v1  ;;  %1941 = vmatprep.subr.bf16.mxu1 %v2252_v1 }
  0x30   : > { %974 = vmatpush1.bf16.msra.mxu0 %v1998_v13  ;;  %1957 = vmatpush1.bf16.msra.mxu1 %v1998_v13  ;;  %v2094_v13 = vld [vmem:[%s2327_s7 + $0xf4] ss:$8 sps:$4 sm:$0xff]  }
  0x31   : > { %975 = vmatprep.subr.bf16.mxu0 %v2252_v1  ;;  %1942 = vmatprep.subr.bf16.mxu1 %v2252_v1 }
  0x34   : > { %976 = vmatpush1.bf16.msra.mxu0 %v1999_v14  ;;  %1958 = vmatpush1.bf16.msra.mxu1 %v1999_v14  ;;  %v2096_v14 = vld [vmem:[%s2327_s7 + $0x1f4] ss:$8 sps:$4 sm:$0xff]  }
  0x35   : > { %977 = vmatprep.subr.bf16.mxu0 %v2252_v1  ;;  %1943 = vmatprep.subr.bf16.mxu1 %v2252_v1 }
  0x38   : > { %978 = vmatpush1.bf16.msra.mxu0 %v2000_v15  ;;  %1959 = vmatpush1.bf16.msra.mxu1 %v2000_v15  ;;  %v2098_v15 = vld [vmem:[%s2327_s7 + $0xf0] ss:$8 sps:$4 sm:$0xff]  }
  0x39   : > { %979 = vmatprep.subr.bf16.mxu0 %v2252_v1  ;;  %1944 = vmatprep.subr.bf16.mxu1 %v2252_v1 }
  0x3c   : > { %980 = vmatpush1.bf16.msra.mxu0 %v2001_v16  ;;  %1960 = vmatpush1.bf16.msra.mxu1 %v2001_v16  ;;  %v2099_v16 = vld [vmem:[%s2327_s7 + $0x1f0] ss:$8 sps:$4 sm:$0xff]  }
  0x3d   : > { %981 = vmatprep.subr.bf16.mxu0 %v2252_v1  ;;  %1945 = vmatprep.subr.bf16.mxu1 %v2252_v1 }
  0x40   : > { %982 = vmatpush1.bf16.msra.mxu0 %v2002_v17  ;;  %1961 = vmatpush1.bf16.msra.mxu1 %v2002_v17  ;;  %v2453_v17 = vld [vmem:[%s2670_s2] ss:$0 sm:$0xff] }
  0x41   : > { %983 = vmatprep.subr.bf16.mxu0 %v2252_v1  ;;  %1946 = vmatprep.subr.bf16.mxu1 %v2252_v1  ;;  %v2076_v1 = vld [vmem:[%s2327_s7 + $0xc4] ss:$8 sps:$4 sm:$0xff]  }
  0x44   : > { %984 = vmatpush1.bf16.msra.mxu0 %v2003_v18  ;;  %1962 = vmatpush1.bf16.msra.mxu1 %v2003_v18 }
  0x47   : > { %986 = vmatmul.mubr.bf16.vlgmr.msra.gmra.mrb[0].mxu0 %v2004_v19  ;;  %1114 = vmatmul.mubr.bf16.vlgmr.msra.gmra.mrb[0].mxu1 %v2007_v20  ;;  %v2458_v19 = vld [vmem:[%s2671_s3] ss:$0 sm:$0xff] }
  0x48   : > { %993 = vmatprep.mubr.bf16.mxu0 %v2010_v21  ;;  %1121 = vmatprep.mubr.bf16.mxu1 %v2012_v22 }
  0x4f   : > { %994 = vmatmul.mubr.bf16.gmra.mrb[4].mxu0 %v2014_v23  ;;  %1122 = vmatmul.mubr.bf16.gmra.mrb[4].mxu1 %v2015_v24 }
  0x50   : > { %1001 = vmatprep.mubr.bf16.mxu0 %v2016_v25  ;;  %1129 = vmatprep.mubr.bf16.mxu1 %v2018_v26 }
  0x57   : > { %1002 = vmatmul.mubr.bf16.gmra.mrb[8].mxu0 %v2020_v27  ;;  %1130 = vmatmul.mubr.bf16.gmra.mrb[8].mxu1 %v2021_v28 }
  0x58   : > { %1009 = vmatprep.mubr.bf16.mxu0 %v2022_v29  ;;  %1137 = vmatprep.mubr.bf16.mxu1 %v2024_v30 }
  0x5f   : > { %1010 = vmatmul.mubr.bf16.gmra.mrb[12].mxu0 %v2026_v31  ;;  %1138 = vmatmul.mubr.bf16.gmra.mrb[12].mxu1 %v2027_v32 }
  0x60   : > { %1017 = vmatprep.mubr.bf16.mxu0 %v2028_v33  ;;  %1145 = vmatprep.mubr.bf16.mxu1 %v2030_v34 }
  0x67   : > { %1018 = vmatmul.mubr.bf16.gmra.mrb[16].mxu0 %v2032_v35  ;;  %1146 = vmatmul.mubr.bf16.gmra.mrb[16].mxu1 %v2033_v36 }
  0x68   : > { %1025 = vmatprep.mubr.bf16.mxu0 %v2034_v37  ;;  %1153 = vmatprep.mubr.bf16.mxu1 %v2036_v38 }
  0x6f   : > { %1026 = vmatmul.mubr.bf16.gmra.mrb[20].mxu0 %v2038_v39  ;;  %1154 = vmatmul.mubr.bf16.gmra.mrb[20].mxu1 %v2039_v40 }
  0x70   : > { %1033 = vmatprep.mubr.bf16.mxu0 %v2040_v41  ;;  %1161 = vmatprep.mubr.bf16.mxu1 %v2042_v42 }
  0x77   : > { %1034 = vmatmul.mubr.bf16.gmra.mrb[24].mxu0 %v2044_v43  ;;  %1162 = vmatmul.mubr.bf16.gmra.mrb[24].mxu1 %v2045_v44 }
  0x78   : > { %1041 = vmatprep.mubr.bf16.mxu0 %v2046_v45  ;;  %1169 = vmatprep.mubr.bf16.mxu1 %v2048_v46 }
  0x7f   : > { %1042 = vmatmul.mubr.bf16.gmra.mrb[28].mxu0 %v2050_v47  ;;  %1170 = vmatmul.mubr.bf16.gmra.mrb[28].mxu1 %v2051_v48 }
  0x80   : > { %1049 = vmatprep.mubr.bf16.mxu0 %v2052_v49  ;;  %1177 = vmatprep.mubr.bf16.mxu1 %v2054_v50 }
  0x87   : > { %1050 = vmatmul.mubr.bf16.gmra.mrb[32].mxu0 %v2056_v51  ;;  %1178 = vmatmul.mubr.bf16.gmra.mrb[32].mxu1 %v2057_v52 }
  0x88   : > { %1057 = vmatprep.mubr.bf16.mxu0 %v2058_v53  ;;  %1185 = vmatprep.mubr.bf16.mxu1 %v2060_v54 }
  0x8f   : > { %1058 = vmatmul.mubr.bf16.gmra.mrb[36].mxu0 %v2062_v55  ;;  %1186 = vmatmul.mubr.bf16.gmra.mrb[36].mxu1 %v2063_v56 }
  0x90   : > { %1065 = vmatprep.mubr.bf16.mxu0 %v2064_v57  ;;  %1193 = vmatprep.mubr.bf16.mxu1 %v2066_v58 }
  0x97   : > { %1066 = vmatmul.mubr.bf16.gmra.mrb[40].mxu0 %v2068_v59  ;;  %1194 = vmatmul.mubr.bf16.gmra.mrb[40].mxu1 %v2069_v60 }
  0x98   : > { %1073 = vmatprep.mubr.bf16.mxu0 %v2070_v61  ;;  %1201 = vmatprep.mubr.bf16.mxu1 %v2072_v62 }
  0x9f   : > { %1074 = vmatmul.mubr.bf16.gmra.mrb[44].mxu0 %v2074_v63  ;;  %1202 = vmatmul.mubr.bf16.gmra.mrb[44].mxu1 %v2075_v0 }
  0xa0   : > { %1081 = vmatprep.mubr.bf16.mxu0 %v2076_v1  ;;  %1209 = vmatprep.mubr.bf16.mxu1 %v2078_v2 }
  0xa7   : > { %1082 = vmatmul.mubr.bf16.gmra.mrb[48].mxu0 %v2080_v3  ;;  %1210 = vmatmul.mubr.bf16.gmra.mrb[48].mxu1 %v2081_v4 }
  0xa8   : > { %1089 = vmatprep.mubr.bf16.mxu0 %v2082_v5  ;;  %1217 = vmatprep.mubr.bf16.mxu1 %v2084_v6 }
  0xaf   : > { %1090 = vmatmul.mubr.bf16.gmra.mrb[52].mxu0 %v2086_v7  ;;  %1218 = vmatmul.mubr.bf16.gmra.mrb[52].mxu1 %v2087_v8 }
  0xb0   : > { %1097 = vmatprep.mubr.bf16.mxu0 %v2088_v9  ;;  %1225 = vmatprep.mubr.bf16.mxu1 %v2090_v10 }
  0xb7   : > { %1098 = vmatmul.mubr.bf16.gmra.mrb[56].mxu0 %v2092_v11  ;;  %1226 = vmatmul.mubr.bf16.gmra.mrb[56].mxu1 %v2093_v12 }
  0xb8   : > { %1105 = vmatprep.mubr.bf16.mxu0 %v2094_v13  ;;  %1233 = vmatprep.mubr.bf16.mxu1 %v2096_v14 }
  0xbf   : > { %1106 = vmatmul.mubr.bf16.gmra.mrb[60].mxu0 %v2098_v15  ;;  %1234 = vmatmul.mubr.bf16.gmra.mrb[60].mxu1 %v2099_v16 }
 0x11a   : > { %v987_v18 = vpop.f32.mrb[0].mxu0  ;;  %v1115_v20 = vpop.f32.mrb[0].mxu1 }
 0x11b   : > { %v1444_v21 = vmul.f32 %v2453_v17, %v987_v18  ;;  %v1476_v22 = vmul.f32 %v2453_v17, %v1115_v20  ;;  %v989_v23 = vpop.f32.mrb[1].mxu0  ;;  %v1117_v24 = vpop.f32.mrb[1].mxu1 }
 0x11c   : > { %v990_v25 = vpop.f32.mrb[2].mxu0  ;;  %v1118_v26 = vpop.f32.mrb[2].mxu1 }
 0x11d   : > { %v1515_v27 = vadd.f32 %v2458_v19, %v1444_v21  ;;  %v1547_v28 = vadd.f32 %v2458_v19, %v1476_v22  ;;  %v1445_v29 = vmul.f32 %v2453_v17, %v990_v25  ;;  %v1477_v30 = vmul.f32 %v2453_v17, %v1118_v26  ;;  %v992_v31 = vpop.f32.mrb[3].mxu0  ;;  %v1120_v32 = vpop.f32.mrb[3].mxu1 }
 0x11f   : > { %2100 = vtanh.f32 %v1515_v27  ;;  %v1516_v33 = vadd.f32 %v2458_v19, %v1445_v29  ;;  %v1548_v34 = vadd.f32 %v2458_v19, %v1477_v30 }
 0x120   : > { %2102 = vtanh.f32 %v1547_v28 }
 0x121   : > { %2104 = vtanh.f32 %v1516_v33 }
 0x122   : > { %2106 = vtanh.f32 %v1548_v34  ;;  %v995_v35 = vpop.f32.mrb[4].mxu0  ;;  %v1123_v36 = vpop.f32.mrb[4].mxu1 }
 0x123   : > { %v1446_v37 = vmul.f32 %v2453_v17, %v995_v35  ;;  %v1478_v38 = vmul.f32 %v2453_v17, %v1123_v36  ;;  %v997_v39 = vpop.f32.mrb[5].mxu0  ;;  %v1125_v40 = vpop.f32.mrb[5].mxu1 }
 0x124   : > { %v998_v41 = vpop.f32.mrb[6].mxu0  ;;  %v1126_v42 = vpop.f32.mrb[6].mxu1 }
 0x125   : > { %v1517_v43 = vadd.f32 %v2458_v19, %v1446_v37  ;;  %v1549_v44 = vadd.f32 %v2458_v19, %v1478_v38  ;;  %v1447_v45 = vmul.f32 %v2453_v17, %v998_v41  ;;  %v1479_v46 = vmul.f32 %v2453_v17, %v1126_v42  ;;  %v1000_v47 = vpop.f32.mrb[7].mxu0  ;;  %v1128_v48 = vpop.f32.mrb[7].mxu1 }
 0x127   : > { %2108 = vtanh.f32 %v1517_v43  ;;  %v1518_v49 = vadd.f32 %v2458_v19, %v1447_v45  ;;  %v1550_v50 = vadd.f32 %v2458_v19, %v1479_v46 }
 0x128   : > { %2110 = vtanh.f32 %v1549_v44 }
 0x129   : > { %v2101_v51 = vpop.eup %2100  ;;  %2112 = vtanh.f32 %v1518_v49 }
 0x12a   : > { %v2103_v52 = vpop.eup %2102  ;;  %1643 = vst [vmem:[%s2479_s15] sm:$0xff] %v2101_v51  ;;  %2114 = vtanh.f32 %v1550_v50  ;;  %v1003_v53 = vpop.f32.mrb[8].mxu0 }
 0x12b   : > { %v1131_v54 = vpop.f32.mrb[8].mxu1  ;;  %v2105_v55 = vpop.eup %2104  ;;  %1675 = vst [vmem:[%s2479_s15 + $0x100] sm:$0xff] %v2103_v52  ;;  %v1448_v56 = vmul.f32 %v2453_v17, %v1003_v53 }
 0x12c   : > { %v1480_v57 = vmul.f32 %v2453_v17, %v1131_v54  ;;  %v1005_v58 = vpop.f32.mrb[9].mxu0  ;;  %v1133_v59 = vpop.f32.mrb[9].mxu1  ;;  %1644 = vst [vmem:[%s2479_s15 + $0x8] sm:$0xff] %v2105_v55 }
 0x12d   : > { %v2107_v60 = vpop.eup %2106  ;;  %v1006_v61 = vpop.f32.mrb[10].mxu0  ;;  %v1519_v63 = vadd.f32 %v2458_v19, %v1448_v56 }
 0x12e   : > { %v1134_v62 = vpop.f32.mrb[10].mxu1  ;;  %1676 = vst [vmem:[%s2479_s15 + $0x108] sm:$0xff] %v2107_v60  ;;  %v1551_v0 = vadd.f32 %v2458_v19, %v1480_v57  ;;  %v1449_v1 = vmul.f32 %v2453_v17, %v1006_v61  ;;  %v1008_v3 = vpop.f32.mrb[11].mxu0 }
 0x12f   : > { %v1481_v2 = vmul.f32 %v2453_v17, %v1134_v62  ;;  %v1136_v4 = vpop.f32.mrb[11].mxu1  ;;  %2116 = vtanh.f32 %v1519_v63 }
 0x130   : > { %v1520_v5 = vadd.f32 %v2458_v19, %v1449_v1  ;;  %2118 = vtanh.f32 %v1551_v0 }
 0x131   : > { %v1552_v6 = vadd.f32 %v2458_v19, %v1481_v2  ;;  %v2109_v7 = vpop.eup %2108 }
 0x132   : > { %2120 = vtanh.f32 %v1520_v5  ;;  %v2111_v8 = vpop.eup %2110  ;;  %1645 = vst [vmem:[%s2479_s15 + $0x10] sm:$0xff] %v2109_v7  ;;  %v1011_v9 = vpop.f32.mrb[12].mxu0 }
 0x133   : > { %2122 = vtanh.f32 %v1552_v6  ;;  %v1139_v10 = vpop.f32.mrb[12].mxu1  ;;  %v2113_v11 = vpop.eup %2112  ;;  %1677 = vst [vmem:[%s2479_s15 + $0x110] sm:$0xff] %v2111_v8  ;;  %v1450_v12 = vmul.f32 %v2453_v17, %v1011_v9 }
 0x134   : > { %v1482_v13 = vmul.f32 %v2453_v17, %v1139_v10  ;;  %v1013_v14 = vpop.f32.mrb[13].mxu0  ;;  %v1141_v15 = vpop.f32.mrb[13].mxu1  ;;  %1646 = vst [vmem:[%s2479_s15 + $0x18] sm:$0xff] %v2113_v11 }
 0x135   : > { %v2115_v16 = vpop.eup %2114  ;;  %v1014_v18 = vpop.f32.mrb[14].mxu0  ;;  %v1521_v21 = vadd.f32 %v2458_v19, %v1450_v12 }
 0x136   : > { %v1142_v20 = vpop.f32.mrb[14].mxu1  ;;  %1678 = vst [vmem:[%s2479_s15 + $0x118] sm:$0xff] %v2115_v16  ;;  %v1553_v22 = vadd.f32 %v2458_v19, %v1482_v13  ;;  %v1451_v23 = vmul.f32 %v2453_v17, %v1014_v18  ;;  %v1016_v25 = vpop.f32.mrb[15].mxu0 }
 0x137   : > { %v1483_v24 = vmul.f32 %v2453_v17, %v1142_v20  ;;  %v1144_v26 = vpop.f32.mrb[15].mxu1  ;;  %2124 = vtanh.f32 %v1521_v21 }
 0x138   : > { %v1522_v27 = vadd.f32 %v2458_v19, %v1451_v23  ;;  %2126 = vtanh.f32 %v1553_v22 }
 0x139   : > { %v1554_v28 = vadd.f32 %v2458_v19, %v1483_v24  ;;  %v2117_v29 = vpop.eup %2116 }
 0x13a   : > { %2128 = vtanh.f32 %v1522_v27  ;;  %v2119_v30 = vpop.eup %2118  ;;  %1647 = vst [vmem:[%s2479_s15 + $0x20] sm:$0xff] %v2117_v29  ;;  %v1019_v31 = vpop.f32.mrb[16].mxu0 }
 0x13b   : > { %2130 = vtanh.f32 %v1554_v28  ;;  %v1147_v32 = vpop.f32.mrb[16].mxu1  ;;  %1679 = vst [vmem:[%s2479_s15 + $0x120] sm:$0xff] %v2119_v30  ;;  %v1452_v34 = vmul.f32 %v2453_v17, %v1019_v31  ;;  %v1021_v36 = vpop.f32.mrb[17].mxu0 }
 0x13c   : > { %v2121_v33 = vpop.eup %2120  ;;  %v1484_v35 = vmul.f32 %v2453_v17, %v1147_v32  ;;  %v1149_v37 = vpop.f32.mrb[17].mxu1 }
 0x13d   : > { %v2123_v38 = vpop.eup %2122  ;;  %1648 = vst [vmem:[%s2479_s15 + $0x28] sm:$0xff] %v2121_v33  ;;  %v1022_v39 = vpop.f32.mrb[18].mxu0  ;;  %v1523_v41 = vadd.f32 %v2458_v19, %v1452_v34 }
 0x13e   : > { %v1150_v40 = vpop.f32.mrb[18].mxu1  ;;  %1680 = vst [vmem:[%s2479_s15 + $0x128] sm:$0xff] %v2123_v38  ;;  %v1555_v42 = vadd.f32 %v2458_v19, %v1484_v35  ;;  %v1453_v43 = vmul.f32 %v2453_v17, %v1022_v39  ;;  %v1024_v45 = vpop.f32.mrb[19].mxu0 }
 0x13f   : > { %v1485_v44 = vmul.f32 %v2453_v17, %v1150_v40  ;;  %v1152_v46 = vpop.f32.mrb[19].mxu1  ;;  %2132 = vtanh.f32 %v1523_v41 }
 0x140   : > { %v1524_v47 = vadd.f32 %v2458_v19, %v1453_v43  ;;  %2134 = vtanh.f32 %v1555_v42 }
 0x141   : > { %v1556_v48 = vadd.f32 %v2458_v19, %v1485_v44  ;;  %v2125_v49 = vpop.eup %2124 }
 0x142   : > { %2136 = vtanh.f32 %v1524_v47  ;;  %v2127_v50 = vpop.eup %2126  ;;  %1649 = vst [vmem:[%s2479_s15 + $0x30] sm:$0xff] %v2125_v49  ;;  %v1027_v51 = vpop.f32.mrb[20].mxu0 }
 0x143   : > { %2138 = vtanh.f32 %v1556_v48  ;;  %v1155_v52 = vpop.f32.mrb[20].mxu1  ;;  %1681 = vst [vmem:[%s2479_s15 + $0x130] sm:$0xff] %v2127_v50  ;;  %v1454_v54 = vmul.f32 %v2453_v17, %v1027_v51  ;;  %v1029_v56 = vpop.f32.mrb[21].mxu0 }
 0x144   : > { %v2129_v53 = vpop.eup %2128  ;;  %v1486_v55 = vmul.f32 %v2453_v17, %v1155_v52  ;;  %v1157_v57 = vpop.f32.mrb[21].mxu1 }
 0x145   : > { %v2131_v58 = vpop.eup %2130  ;;  %1650 = vst [vmem:[%s2479_s15 + $0x38] sm:$0xff] %v2129_v53  ;;  %v1030_v59 = vpop.f32.mrb[22].mxu0  ;;  %v1525_v61 = vadd.f32 %v2458_v19, %v1454_v54 }
 0x146   : > { %v1158_v60 = vpop.f32.mrb[22].mxu1  ;;  %1682 = vst [vmem:[%s2479_s15 + $0x138] sm:$0xff] %v2131_v58  ;;  %v1557_v62 = vadd.f32 %v2458_v19, %v1486_v55  ;;  %v1455_v63 = vmul.f32 %v2453_v17, %v1030_v59  ;;  %v1032_v1 = vpop.f32.mrb[23].mxu0 }
 0x147   : > { %v1487_v0 = vmul.f32 %v2453_v17, %v1158_v60  ;;  %v1160_v2 = vpop.f32.mrb[23].mxu1  ;;  %2140 = vtanh.f32 %v1525_v61 }
 0x148   : > { %v1526_v3 = vadd.f32 %v2458_v19, %v1455_v63  ;;  %2142 = vtanh.f32 %v1557_v62 }
 0x149   : > { %v1558_v4 = vadd.f32 %v2458_v19, %v1487_v0  ;;  %v2133_v5 = vpop.eup %2132 }
 0x14a   : > { %2144 = vtanh.f32 %v1526_v3  ;;  %v2135_v6 = vpop.eup %2134  ;;  %1651 = vst [vmem:[%s2479_s15 + $0x40] sm:$0xff] %v2133_v5  ;;  %v1035_v7 = vpop.f32.mrb[24].mxu0 }
 0x14b   : > { %2146 = vtanh.f32 %v1558_v4  ;;  %v1163_v8 = vpop.f32.mrb[24].mxu1  ;;  %1683 = vst [vmem:[%s2479_s15 + $0x140] sm:$0xff] %v2135_v6  ;;  %v1456_v10 = vmul.f32 %v2453_v17, %v1035_v7  ;;  %v1037_v12 = vpop.f32.mrb[25].mxu0 }
 0x14c   : > { %v2137_v9 = vpop.eup %2136  ;;  %v1488_v11 = vmul.f32 %v2453_v17, %v1163_v8  ;;  %v1165_v13 = vpop.f32.mrb[25].mxu1 }
 0x14d   : > { %v2139_v14 = vpop.eup %2138  ;;  %1652 = vst [vmem:[%s2479_s15 + $0x48] sm:$0xff] %v2137_v9  ;;  %v1038_v15 = vpop.f32.mrb[26].mxu0  ;;  %v1527_v18 = vadd.f32 %v2458_v19, %v1456_v10 }
 0x14e   : > { %v1166_v16 = vpop.f32.mrb[26].mxu1  ;;  %1684 = vst [vmem:[%s2479_s15 + $0x148] sm:$0xff] %v2139_v14  ;;  %v1559_v20 = vadd.f32 %v2458_v19, %v1488_v11  ;;  %v1457_v21 = vmul.f32 %v2453_v17, %v1038_v15  ;;  %v1040_v23 = vpop.f32.mrb[27].mxu0 }
 0x14f   : > { %v1489_v22 = vmul.f32 %v2453_v17, %v1166_v16  ;;  %v1168_v24 = vpop.f32.mrb[27].mxu1  ;;  %2148 = vtanh.f32 %v1527_v18 }
 0x150   : > { %v1528_v25 = vadd.f32 %v2458_v19, %v1457_v21  ;;  %2150 = vtanh.f32 %v1559_v20 }
 0x151   : > { %v1560_v26 = vadd.f32 %v2458_v19, %v1489_v22  ;;  %v2141_v27 = vpop.eup %2140 }
 0x152   : > { %2152 = vtanh.f32 %v1528_v25  ;;  %v2143_v28 = vpop.eup %2142  ;;  %1653 = vst [vmem:[%s2479_s15 + $0x50] sm:$0xff] %v2141_v27  ;;  %v1043_v29 = vpop.f32.mrb[28].mxu0 }
 0x153   : > { %2154 = vtanh.f32 %v1560_v26  ;;  %v1171_v30 = vpop.f32.mrb[28].mxu1  ;;  %1685 = vst [vmem:[%s2479_s15 + $0x150] sm:$0xff] %v2143_v28  ;;  %v1458_v32 = vmul.f32 %v2453_v17, %v1043_v29  ;;  %v1045_v34 = vpop.f32.mrb[29].mxu0 }
 0x154   : > { %v2145_v31 = vpop.eup %2144  ;;  %v1490_v33 = vmul.f32 %v2453_v17, %v1171_v30  ;;  %v1173_v35 = vpop.f32.mrb[29].mxu1 }
 0x155   : > { %v2147_v36 = vpop.eup %2146  ;;  %1654 = vst [vmem:[%s2479_s15 + $0x58] sm:$0xff] %v2145_v31  ;;  %v1046_v37 = vpop.f32.mrb[30].mxu0  ;;  %v1529_v39 = vadd.f32 %v2458_v19, %v1458_v32 }
 0x156   : > { %v1174_v38 = vpop.f32.mrb[30].mxu1  ;;  %1686 = vst [vmem:[%s2479_s15 + $0x158] sm:$0xff] %v2147_v36  ;;  %v1561_v40 = vadd.f32 %v2458_v19, %v1490_v33  ;;  %v1459_v41 = vmul.f32 %v2453_v17, %v1046_v37  ;;  %v1048_v43 = vpop.f32.mrb[31].mxu0 }
 0x157   : > { %v1491_v42 = vmul.f32 %v2453_v17, %v1174_v38  ;;  %v1176_v44 = vpop.f32.mrb[31].mxu1  ;;  %2156 = vtanh.f32 %v1529_v39 }
 0x158   : > { %v1530_v45 = vadd.f32 %v2458_v19, %v1459_v41  ;;  %2158 = vtanh.f32 %v1561_v40 }
 0x159   : > { %v1562_v46 = vadd.f32 %v2458_v19, %v1491_v42  ;;  %v2149_v47 = vpop.eup %2148 }
 0x15a   : > { %2160 = vtanh.f32 %v1530_v45  ;;  %v2151_v48 = vpop.eup %2150  ;;  %1655 = vst [vmem:[%s2479_s15 + $0x60] sm:$0xff] %v2149_v47  ;;  %v1051_v49 = vpop.f32.mrb[32].mxu0 }
 0x15b   : > { %2162 = vtanh.f32 %v1562_v46  ;;  %v1179_v50 = vpop.f32.mrb[32].mxu1  ;;  %1687 = vst [vmem:[%s2479_s15 + $0x160] sm:$0xff] %v2151_v48  ;;  %v1460_v52 = vmul.f32 %v2453_v17, %v1051_v49  ;;  %v1053_v54 = vpop.f32.mrb[33].mxu0 }
 0x15c   : > { %v2153_v51 = vpop.eup %2152  ;;  %v1492_v53 = vmul.f32 %v2453_v17, %v1179_v50  ;;  %v1181_v55 = vpop.f32.mrb[33].mxu1 }
 0x15d   : > { %v2155_v56 = vpop.eup %2154  ;;  %1656 = vst [vmem:[%s2479_s15 + $0x68] sm:$0xff] %v2153_v51  ;;  %v1054_v57 = vpop.f32.mrb[34].mxu0  ;;  %v1531_v59 = vadd.f32 %v2458_v19, %v1460_v52 }
 0x15e   : > { %v1182_v58 = vpop.f32.mrb[34].mxu1  ;;  %1688 = vst [vmem:[%s2479_s15 + $0x168] sm:$0xff] %v2155_v56  ;;  %v1563_v60 = vadd.f32 %v2458_v19, %v1492_v53  ;;  %v1461_v61 = vmul.f32 %v2453_v17, %v1054_v57  ;;  %v1056_v63 = vpop.f32.mrb[35].mxu0 }
 0x15f   : > { %v1493_v62 = vmul.f32 %v2453_v17, %v1182_v58  ;;  %v1184_v0 = vpop.f32.mrb[35].mxu1  ;;  %2164 = vtanh.f32 %v1531_v59 }
 0x160   : > { %v1532_v1 = vadd.f32 %v2458_v19, %v1461_v61  ;;  %2166 = vtanh.f32 %v1563_v60 }
 0x161   : > { %v1564_v2 = vadd.f32 %v2458_v19, %v1493_v62  ;;  %v2157_v3 = vpop.eup %2156 }
 0x162   : > { %2168 = vtanh.f32 %v1532_v1  ;;  %v2159_v4 = vpop.eup %2158  ;;  %1657 = vst [vmem:[%s2479_s15 + $0x70] sm:$0xff] %v2157_v3  ;;  %v1059_v5 = vpop.f32.mrb[36].mxu0 }
 0x163   : > { %2170 = vtanh.f32 %v1564_v2  ;;  %v1187_v6 = vpop.f32.mrb[36].mxu1  ;;  %1689 = vst [vmem:[%s2479_s15 + $0x170] sm:$0xff] %v2159_v4  ;;  %v1462_v8 = vmul.f32 %v2453_v17, %v1059_v5  ;;  %v1061_v10 = vpop.f32.mrb[37].mxu0 }
 0x164   : > { %v2161_v7 = vpop.eup %2160  ;;  %v1494_v9 = vmul.f32 %v2453_v17, %v1187_v6  ;;  %v1189_v11 = vpop.f32.mrb[37].mxu1 }
 0x165   : > { %v2163_v12 = vpop.eup %2162  ;;  %1658 = vst [vmem:[%s2479_s15 + $0x78] sm:$0xff] %v2161_v7  ;;  %v1062_v13 = vpop.f32.mrb[38].mxu0  ;;  %v1533_v15 = vadd.f32 %v2458_v19, %v1462_v8 }
 0x166   : > { %v1190_v14 = vpop.f32.mrb[38].mxu1  ;;  %1690 = vst [vmem:[%s2479_s15 + $0x178] sm:$0xff] %v2163_v12  ;;  %v1565_v16 = vadd.f32 %v2458_v19, %v1494_v9  ;;  %v1463_v18 = vmul.f32 %v2453_v17, %v1062_v13  ;;  %v1064_v21 = vpop.f32.mrb[39].mxu0 }
 0x167   : > { %v1495_v20 = vmul.f32 %v2453_v17, %v1190_v14  ;;  %v1192_v22 = vpop.f32.mrb[39].mxu1  ;;  %2172 = vtanh.f32 %v1533_v15 }
 0x168   : > { %v1534_v23 = vadd.f32 %v2458_v19, %v1463_v18  ;;  %2174 = vtanh.f32 %v1565_v16 }
 0x169   : > { %v1566_v24 = vadd.f32 %v2458_v19, %v1495_v20  ;;  %v2165_v25 = vpop.eup %2164 }
 0x16a   : > { %2176 = vtanh.f32 %v1534_v23  ;;  %v2167_v26 = vpop.eup %2166  ;;  %1659 = vst [vmem:[%s2479_s15 + $0x80] sm:$0xff] %v2165_v25  ;;  %v1067_v27 = vpop.f32.mrb[40].mxu0 }
 0x16b   : > { %2178 = vtanh.f32 %v1566_v24  ;;  %v1195_v28 = vpop.f32.mrb[40].mxu1  ;;  %1691 = vst [vmem:[%s2479_s15 + $0x180] sm:$0xff] %v2167_v26  ;;  %v1464_v30 = vmul.f32 %v2453_v17, %v1067_v27  ;;  %v1069_v32 = vpop.f32.mrb[41].mxu0 }
 0x16c   : > { %v2169_v29 = vpop.eup %2168  ;;  %v1496_v31 = vmul.f32 %v2453_v17, %v1195_v28  ;;  %v1197_v33 = vpop.f32.mrb[41].mxu1 }
 0x16d   : > { %v2171_v34 = vpop.eup %2170  ;;  %1660 = vst [vmem:[%s2479_s15 + $0x88] sm:$0xff] %v2169_v29  ;;  %v1070_v35 = vpop.f32.mrb[42].mxu0  ;;  %v1535_v37 = vadd.f32 %v2458_v19, %v1464_v30 }
 0x16e   : > { %v1198_v36 = vpop.f32.mrb[42].mxu1  ;;  %1692 = vst [vmem:[%s2479_s15 + $0x188] sm:$0xff] %v2171_v34  ;;  %v1567_v38 = vadd.f32 %v2458_v19, %v1496_v31  ;;  %v1465_v39 = vmul.f32 %v2453_v17, %v1070_v35  ;;  %v1072_v41 = vpop.f32.mrb[43].mxu0 }
 0x16f   : > { %v1497_v40 = vmul.f32 %v2453_v17, %v1198_v36  ;;  %v1200_v42 = vpop.f32.mrb[43].mxu1  ;;  %2180 = vtanh.f32 %v1535_v37 }
 0x170   : > { %v1536_v43 = vadd.f32 %v2458_v19, %v1465_v39  ;;  %2182 = vtanh.f32 %v1567_v38 }
 0x171   : > { %v1568_v44 = vadd.f32 %v2458_v19, %v1497_v40  ;;  %v2173_v45 = vpop.eup %2172 }
 0x172   : > { %2184 = vtanh.f32 %v1536_v43  ;;  %v2175_v46 = vpop.eup %2174  ;;  %1661 = vst [vmem:[%s2479_s15 + $0x90] sm:$0xff] %v2173_v45  ;;  %v1075_v47 = vpop.f32.mrb[44].mxu0 }
 0x173   : > { %2186 = vtanh.f32 %v1568_v44  ;;  %v1203_v48 = vpop.f32.mrb[44].mxu1  ;;  %1693 = vst [vmem:[%s2479_s15 + $0x190] sm:$0xff] %v2175_v46  ;;  %v1466_v50 = vmul.f32 %v2453_v17, %v1075_v47  ;;  %v1077_v52 = vpop.f32.mrb[45].mxu0 }
 0x174   : > { %v2177_v49 = vpop.eup %2176  ;;  %v1498_v51 = vmul.f32 %v2453_v17, %v1203_v48  ;;  %v1205_v53 = vpop.f32.mrb[45].mxu1 }
 0x175   : > { %v2179_v54 = vpop.eup %2178  ;;  %1662 = vst [vmem:[%s2479_s15 + $0x98] sm:$0xff] %v2177_v49  ;;  %v1078_v55 = vpop.f32.mrb[46].mxu0  ;;  %v1537_v57 = vadd.f32 %v2458_v19, %v1466_v50 }
 0x176   : > { %v1206_v56 = vpop.f32.mrb[46].mxu1  ;;  %1694 = vst [vmem:[%s2479_s15 + $0x198] sm:$0xff] %v2179_v54  ;;  %v1569_v58 = vadd.f32 %v2458_v19, %v1498_v51  ;;  %v1467_v59 = vmul.f32 %v2453_v17, %v1078_v55  ;;  %v1080_v61 = vpop.f32.mrb[47].mxu0 }
 0x177   : > { %v1499_v60 = vmul.f32 %v2453_v17, %v1206_v56  ;;  %v1208_v62 = vpop.f32.mrb[47].mxu1  ;;  %2188 = vtanh.f32 %v1537_v57 }
 0x178   : > { %v1538_v63 = vadd.f32 %v2458_v19, %v1467_v59  ;;  %2190 = vtanh.f32 %v1569_v58 }
 0x179   : > { %v1570_v0 = vadd.f32 %v2458_v19, %v1499_v60  ;;  %v2181_v1 = vpop.eup %2180 }
 0x17a   : > { %2192 = vtanh.f32 %v1538_v63  ;;  %v2183_v2 = vpop.eup %2182  ;;  %1663 = vst [vmem:[%s2479_s15 + $0xa0] sm:$0xff] %v2181_v1  ;;  %v1083_v3 = vpop.f32.mrb[48].mxu0 }
 0x17b   : > { %2194 = vtanh.f32 %v1570_v0  ;;  %v1211_v4 = vpop.f32.mrb[48].mxu1  ;;  %1695 = vst [vmem:[%s2479_s15 + $0x1a0] sm:$0xff] %v2183_v2  ;;  %v1468_v6 = vmul.f32 %v2453_v17, %v1083_v3  ;;  %v1085_v8 = vpop.f32.mrb[49].mxu0 }
 0x17c   : > { %v2185_v5 = vpop.eup %2184  ;;  %v1500_v7 = vmul.f32 %v2453_v17, %v1211_v4  ;;  %v1213_v9 = vpop.f32.mrb[49].mxu1 }
 0x17d   : > { %v2187_v10 = vpop.eup %2186  ;;  %1664 = vst [vmem:[%s2479_s15 + $0xa8] sm:$0xff] %v2185_v5  ;;  %v1086_v11 = vpop.f32.mrb[50].mxu0  ;;  %v1539_v13 = vadd.f32 %v2458_v19, %v1468_v6 }
 0x17e   : > { %v1214_v12 = vpop.f32.mrb[50].mxu1  ;;  %1696 = vst [vmem:[%s2479_s15 + $0x1a8] sm:$0xff] %v2187_v10  ;;  %v1571_v14 = vadd.f32 %v2458_v19, %v1500_v7  ;;  %v1469_v15 = vmul.f32 %v2453_v17, %v1086_v11  ;;  %v1088_v18 = vpop.f32.mrb[51].mxu0 }
 0x17f   : > { %v1501_v16 = vmul.f32 %v2453_v17, %v1214_v12  ;;  %v1216_v20 = vpop.f32.mrb[51].mxu1  ;;  %2196 = vtanh.f32 %v1539_v13 }
 0x180   : > { %v1540_v21 = vadd.f32 %v2458_v19, %v1469_v15  ;;  %2198 = vtanh.f32 %v1571_v14 }
 0x181   : > { %v1572_v22 = vadd.f32 %v2458_v19, %v1501_v16  ;;  %v2189_v23 = vpop.eup %2188 }
 0x182   : > { %2200 = vtanh.f32 %v1540_v21  ;;  %v2191_v24 = vpop.eup %2190  ;;  %1665 = vst [vmem:[%s2479_s15 + $0xb0] sm:$0xff] %v2189_v23  ;;  %v1091_v25 = vpop.f32.mrb[52].mxu0 }
 0x183   : > { %2202 = vtanh.f32 %v1572_v22  ;;  %v1219_v26 = vpop.f32.mrb[52].mxu1  ;;  %1697 = vst [vmem:[%s2479_s15 + $0x1b0] sm:$0xff] %v2191_v24  ;;  %v1470_v28 = vmul.f32 %v2453_v17, %v1091_v25  ;;  %v1093_v30 = vpop.f32.mrb[53].mxu0 }
 0x184   : > { %v2193_v27 = vpop.eup %2192  ;;  %v1502_v29 = vmul.f32 %v2453_v17, %v1219_v26  ;;  %v1221_v31 = vpop.f32.mrb[53].mxu1 }
 0x185   : > { %v2195_v32 = vpop.eup %2194  ;;  %1666 = vst [vmem:[%s2479_s15 + $0xb8] sm:$0xff] %v2193_v27  ;;  %v1094_v33 = vpop.f32.mrb[54].mxu0  ;;  %v1541_v35 = vadd.f32 %v2458_v19, %v1470_v28 }
 0x186   : > { %v1222_v34 = vpop.f32.mrb[54].mxu1  ;;  %1698 = vst [vmem:[%s2479_s15 + $0x1b8] sm:$0xff] %v2195_v32  ;;  %v1573_v36 = vadd.f32 %v2458_v19, %v1502_v29  ;;  %v1471_v37 = vmul.f32 %v2453_v17, %v1094_v33  ;;  %v1096_v39 = vpop.f32.mrb[55].mxu0 }
 0x187   : > { %v1503_v38 = vmul.f32 %v2453_v17, %v1222_v34  ;;  %v1224_v40 = vpop.f32.mrb[55].mxu1  ;;  %2204 = vtanh.f32 %v1541_v35 }
 0x188   : > { %v1542_v41 = vadd.f32 %v2458_v19, %v1471_v37  ;;  %2206 = vtanh.f32 %v1573_v36 }
 0x189   : > { %v1574_v42 = vadd.f32 %v2458_v19, %v1503_v38  ;;  %v2197_v43 = vpop.eup %2196 }
 0x18a   : > { %2208 = vtanh.f32 %v1542_v41  ;;  %v2199_v44 = vpop.eup %2198  ;;  %1667 = vst [vmem:[%s2479_s15 + $0xc0] sm:$0xff] %v2197_v43  ;;  %v1099_v45 = vpop.f32.mrb[56].mxu0 }
 0x18b   : > { %2210 = vtanh.f32 %v1574_v42  ;;  %v1227_v46 = vpop.f32.mrb[56].mxu1  ;;  %1699 = vst [vmem:[%s2479_s15 + $0x1c0] sm:$0xff] %v2199_v44  ;;  %v1472_v48 = vmul.f32 %v2453_v17, %v1099_v45  ;;  %v1101_v50 = vpop.f32.mrb[57].mxu0 }
 0x18c   : > { %v2201_v47 = vpop.eup %2200  ;;  %v1504_v49 = vmul.f32 %v2453_v17, %v1227_v46  ;;  %v1229_v51 = vpop.f32.mrb[57].mxu1 }
 0x18d   : > { %v2203_v52 = vpop.eup %2202  ;;  %1668 = vst [vmem:[%s2479_s15 + $0xc8] sm:$0xff] %v2201_v47  ;;  %v1102_v53 = vpop.f32.mrb[58].mxu0  ;;  %v1543_v55 = vadd.f32 %v2458_v19, %v1472_v48 }
 0x18e   : > { %v1230_v54 = vpop.f32.mrb[58].mxu1  ;;  %1700 = vst [vmem:[%s2479_s15 + $0x1c8] sm:$0xff] %v2203_v52  ;;  %v1575_v56 = vadd.f32 %v2458_v19, %v1504_v49  ;;  %v1473_v57 = vmul.f32 %v2453_v17, %v1102_v53  ;;  %v1104_v59 = vpop.f32.mrb[59].mxu0 }
 0x18f   : > { %v1505_v58 = vmul.f32 %v2453_v17, %v1230_v54  ;;  %v1232_v60 = vpop.f32.mrb[59].mxu1  ;;  %2212 = vtanh.f32 %v1543_v55 }
 0x190   : > { %v1544_v61 = vadd.f32 %v2458_v19, %v1473_v57  ;;  %2214 = vtanh.f32 %v1575_v56 }
 0x191   : > { %v1576_v62 = vadd.f32 %v2458_v19, %v1505_v58  ;;  %v2205_v63 = vpop.eup %2204 }
 0x192   : > { %2216 = vtanh.f32 %v1544_v61  ;;  %v2207_v0 = vpop.eup %2206  ;;  %1669 = vst [vmem:[%s2479_s15 + $0xd0] sm:$0xff] %v2205_v63  ;;  %v1107_v1 = vpop.f32.mrb[60].mxu0 }
 0x193   : > { %2218 = vtanh.f32 %v1576_v62  ;;  %v1235_v2 = vpop.f32.mrb[60].mxu1  ;;  %1701 = vst [vmem:[%s2479_s15 + $0x1d0] sm:$0xff] %v2207_v0  ;;  %v1474_v4 = vmul.f32 %v2453_v17, %v1107_v1  ;;  %v1109_v6 = vpop.f32.mrb[61].mxu0 }
 0x194   : > { %v2209_v3 = vpop.eup %2208  ;;  %v1506_v5 = vmul.f32 %v2453_v17, %v1235_v2  ;;  %v1237_v7 = vpop.f32.mrb[61].mxu1 }
 0x195   : > { %v2211_v8 = vpop.eup %2210  ;;  %1670 = vst [vmem:[%s2479_s15 + $0xd8] sm:$0xff] %v2209_v3  ;;  %v1110_v9 = vpop.f32.mrb[62].mxu0  ;;  %v1545_v11 = vadd.f32 %v2458_v19, %v1474_v4 }
 0x196   : > { %v1238_v10 = vpop.f32.mrb[62].mxu1  ;;  %1702 = vst [vmem:[%s2479_s15 + $0x1d8] sm:$0xff] %v2211_v8  ;;  %v1577_v12 = vadd.f32 %v2458_v19, %v1506_v5  ;;  %v1475_v13 = vmul.f32 %v2453_v17, %v1110_v9  ;;  %v1112_v15 = vpop.f32.mrb[63].mxu0 }
 0x197   : > { %v1507_v14 = vmul.f32 %v2453_v17, %v1238_v10  ;;  %v1240_v16 = vpop.f32.mrb[63].mxu1  ;;  %2220 = vtanh.f32 %v1545_v11 }
 0x198   : > { %v1546_v18 = vadd.f32 %v2458_v19, %v1475_v13  ;;  %2222 = vtanh.f32 %v1577_v12 }
 0x199   : > { %v1578_v20 = vadd.f32 %v2458_v19, %v1507_v14  ;;  %v2213_v21 = vpop.eup %2212 }
 0x19a   : > { %2224 = vtanh.f32 %v1546_v18  ;;  %v2215_v22 = vpop.eup %2214  ;;  %1671 = vst [vmem:[%s2479_s15 + $0xe0] sm:$0xff] %v2213_v21 }
 0x19b   : > { %2226 = vtanh.f32 %v1578_v20  ;;  %1703 = vst [vmem:[%s2479_s15 + $0x1e0] sm:$0xff] %v2215_v22 }
 0x19c   : > { %v2217_v23 = vpop.eup %2216 }
 0x19d   : > { %v2219_v17 = vpop.eup %2218  ;;  %1672 = vst [vmem:[%s2479_s15 + $0xe8] sm:$0xff] %v2217_v23 }
 0x19e   : > { %1704 = vst [vmem:[%s2479_s15 + $0x1e8] sm:$0xff] %v2219_v17 }
 0x1a1   : > { %v2221_v24 = vpop.eup %2220 }
 0x1a2   : > { %v2223_v25 = vpop.eup %2222  ;;  %1673 = vst [vmem:[%s2479_s15 + $0xf0] sm:$0xff] %v2221_v24 }
 0x1a3   : > { %1705 = vst [vmem:[%s2479_s15 + $0x1f0] sm:$0xff] %v2223_v25 }
 0x1a4   : > { %v2225_v26 = vpop.eup %2224 }
 0x1a5   : > { %v2227_v19 = vpop.eup %2226  ;;  %1674 = vst [vmem:[%s2479_s15 + $0xf8] sm:$0xff] %v2225_v26 }
 0x1a6   : > { %1706 = vst [vmem:[%s2479_s15 + $0x1f8] sm:$0xff] %v2227_v19 }
 0x1a7 PF: > { %s14_s17 = sadd.s32 1, %s2250_s17   ;;  %s2673_s15 = smov %s2246_s16 }
 0x1a8   : > { %p11_p5 = scmp.ge.s32.totalorder %s14_s17, 4   ;;  %s2674_s16 = smov %s2676_s18 }
 0x1aa   :  { %13 = sbr.rel (!%p11_p5) target bundleno = 2 (0x2), region = 83 }

</bundles_post_ra>
